<compile_context>
chip_gen: v5e
topology: v5e:2x2
jax: 0.10.0
libtpu: 0.0.40
codegen_flags: <defaults>
</compile_context>

<pallas_src>
import functools

import jax
import jax.numpy as jnp
from jax.experimental import pallas as pl
from jax.experimental.pallas import tpu as pltpu

LEAKY_SLOPE = 0.01   # nn.LeakyReLU default
BN_EPS = 1e-5        # nn.BatchNorm1d default
LANE = 128
SUBLANE = 8


def _round_up(x, m):
    return (x + m - 1) // m * m


def model_kernel(sup_ref, q1_ref, q2_ref,
                 w1_ref, s1_ref, sh1_ref,
                 w2_ref, s2_ref, sh2_ref,
                 w3_ref, s3_ref, sh3_ref,
                 out_ref, rel_sc, *, bt, few, compute_dtype):
    """Grid step = (batch tile b, query tile n).

    sup_ref : (bt*few, IN_p)      pre-flattened support features (head||tail embeddings)
    q*_ref  : (bt, bnq, E)        query node embeddings (unpadded lane dim E)
    w*_ref  : padded weights [in_p, out_p]   (layer-3 out is exactly E)
    s*_ref  : (bt*few, 1)         folded BN scale (gamma * rsqrt(var+eps), tiled over bt)
    sh*_ref : (bt*few, out_p)     folded BN shift + linear bias (zero on padded lanes)
    out_ref : (bt, bnq)           scores
    rel_sc  : (bt, 1, E) VMEM     relation vector cached across query tiles
    """
    # Relation meta-learner runs once per batch tile; result reused for all query tiles.
    @pl.when(pl.program_id(1) == 0)
    def _():
        x = sup_ref[...]                                                 # (bt*few, IN_p)

        # fc[0]: Linear + folded BN + LeakyReLU (dropout inactive in eval)
        h = jnp.dot(x.astype(compute_dtype), w1_ref[...],
                    preferred_element_type=jnp.float32)
        h = s1_ref[...] * h + sh1_ref[...]
        h = jnp.where(h > 0, h, LEAKY_SLOPE * h)

        # fc[1]
        h = jnp.dot(h.astype(compute_dtype), w2_ref[...],
                    preferred_element_type=jnp.float32)
        h = s2_ref[...] * h + sh2_ref[...]
        h = jnp.where(h > 0, h, LEAKY_SLOPE * h)

        # out_fc: Linear + folded BN
        h = jnp.dot(h.astype(compute_dtype), w3_ref[...],
                    preferred_element_type=jnp.float32)
        h = s3_ref[...] * h + sh3_ref[...]                               # (bt*few, E)

        out_dim = w3_ref.shape[1]
        rel_sc[...] = jnp.mean(h.reshape(bt, few, out_dim), axis=1,
                               keepdims=True)                            # (bt, 1, E)

    # TransE scoring: -||q1 + q2 - rel||_2 over the embedding dim (VPU + XLU reduce).
    rel = rel_sc[...]                                                    # (bt, 1, E)
    q = q1_ref[...] + q2_ref[...]                                        # (bt, bnq, E)
    diff = q - rel
    out_ref[...] = -jnp.sqrt(jnp.sum(diff * diff, axis=-1))              # (bt, bnq)


def model_forward(sup_feat, q1, q2, params, *, block_b=None, block_nq=None,
                  matmul_dtype=jnp.float32):
    """sup_feat: [B, few, 2E] f32; q1/q2: [B, Nq, E] f32; returns scores [B, Nq] f32."""
    B, few, twoE = sup_feat.shape
    _, Nq, E = q1.shape

    (w1, b1, g1, be1, m1, v1,
     w2, b2, g2, be2, m2, v2,
     w3, b3, g3, be3, m3, v3) = params
    H1, H2, OUT = w1.shape[1], w2.shape[1], w3.shape[1]
    assert OUT == E, "TransE scoring requires out_size == embedding_size"

    f32 = jnp.float32
    IN_p = _round_up(twoE, LANE)
    H1_p = _round_up(H1, LANE)
    H2_p = _round_up(H2, LANE)

    # ---- batch tiling: fill >=128 MXU sublane rows per matmul, sublane-aligned tile.
    if block_b is None:
        block_b = min(max(1, 128 // few), 32)
    block_b = _round_up(block_b, SUBLANE)
    Bp = _round_up(max(B, block_b), block_b)
    grid_b = Bp // block_b

    # ---- query tiling: single full-dim tile when small, 128-aligned tiles otherwise.
    if block_nq is None:
        block_nq = Nq if Nq <= 256 else 256
    if block_nq < Nq:
        block_nq = _round_up(block_nq, LANE)
        Nq_pad = _round_up(Nq, block_nq)
    else:
        block_nq = Nq
        Nq_pad = Nq
    grid_nq = Nq_pad // block_nq

    def pad2(a, rows, cols):
        return jnp.pad(a, ((0, rows - a.shape[0]), (0, cols - a.shape[1])))

    # Fold eval-mode BN (+ linear bias) into per-(few)-row scale & shift; padded feature lanes of
    # the shift are zero; tile across the batch tile so the kernel applies them directly to the
    # (bt*few, H)-shaped activations.
    def fold(b, g, be, m, v, h_p):
        s = (g * jax.lax.rsqrt(v + BN_EPS)).astype(f32)        # (few, 1)
        sh = (s * b + (be - m * s)).astype(f32)                # (few, H)
        sh = pad2(sh, few, h_p)                                # padded lanes -> 0
        return jnp.tile(s, (block_b, 1)), jnp.tile(sh, (block_b, 1))

    s1, sh1 = fold(b1, g1, be1, m1, v1, H1_p)
    s2, sh2 = fold(b2, g2, be2, m2, v2, H2_p)
    s3, sh3 = fold(b3, g3, be3, m3, v3, OUT)                   # last layer stays at OUT == E

    w1p = pad2(w1, IN_p, H1_p).astype(matmul_dtype)
    w2p = pad2(w2, H1_p, H2_p).astype(matmul_dtype)
    w3p = pad2(w3, H2_p, OUT).astype(matmul_dtype)             # only contraction dim padded

    # Support: pad batch & input lanes with zeros (inert through zero-padded weights), pre-flatten.
    sup_p = jnp.pad(sup_feat.astype(f32),
                    ((0, Bp - B), (0, 0), (0, IN_p - twoE)))
    sup_flat = sup_p.reshape(Bp * few, IN_p)

    # Queries: only batch (and, when tiling a huge Nq, the query axis) are padded; the embedding
    # lane dim stays at E (full-dim block), avoiding two full-array pad copies of the dominant
    # HBM traffic.
    def pad_q(q):
        return jnp.pad(q.astype(f32),
                       ((0, Bp - B), (0, Nq_pad - Nq), (0, 0)))
    q1p, q2p = pad_q(q1), pad_q(q2)

    def full(shape):
        nd = len(shape)
        return pl.BlockSpec(shape, lambda b, n, _nd=nd: (0,) * _nd)

    in_specs = [
        pl.BlockSpec((block_b * few, IN_p), lambda b, n: (b, 0)),        # support (flattened)
        pl.BlockSpec((block_b, block_nq, E), lambda b, n: (b, n, 0)),    # query node1
        pl.BlockSpec((block_b, block_nq, E), lambda b, n: (b, n, 0)),    # query node2
        full(w1p.shape), full(s1.shape), full(sh1.shape),
        full(w2p.shape), full(s2.shape), full(sh2.shape),
        full(w3p.shape), full(s3.shape), full(sh3.shape),
    ]
    out_spec = pl.BlockSpec((block_b, block_nq), lambda b, n: (b, n))

    kernel = functools.partial(model_kernel, bt=block_b, few=few,
                               compute_dtype=matmul_dtype)

    out = pl.pallas_call(
        kernel,
        out_shape=jax.ShapeDtypeStruct((Bp, Nq_pad), f32),
        grid=(grid_b, grid_nq),
        in_specs=in_specs,
        out_specs=out_spec,
        scratch_shapes=[pltpu.VMEM((block_b, 1, OUT), f32)],             # cached relation vector
        compiler_params=pltpu.CompilerParams(
            dimension_semantics=("parallel", "arbitrary"),               # batch tiles -> megacore
        ),
    )(sup_flat, q1p, q2p, w1p, s1, sh1, w2p, s2, sh2, w3p, s3, sh3)

    return out[:B, :Nq]


def reference_forward(sup_feat, q1, q2, params):
    """Pure-JAX eval-mode reference (unfolded BN)."""
    (w1, b1, g1, be1, m1, v1,
     w2, b2, g2, be2, m2, v2,
     w3, b3, g3, be3, m3, v3) = params

    def bn(x, g, be, m, v):
        return g[None] * (x - m[None]) / jnp.sqrt(v[None] + BN_EPS) + be[None]

    def lrelu(x):
        return jnp.where(x > 0, x, LEAKY_SLOPE * x)

    h = sup_feat @ w1 + b1
    h = lrelu(bn(h, g1, be1, m1, v1))
    h = h @ w2 + b2
    h = lrelu(bn(h, g2, be2, m2, v2))
    h = h @ w3 + b3
    h = bn(h, g3, be3, m3, v3)
    rel = jnp.mean(h, axis=1, keepdims=True)            # [B, 1, OUT]
    diff = q1 + q2 - rel
    return -jnp.sqrt(jnp.sum(diff * diff, axis=-1))     # [B, Nq]


def make_params(key, few, E, H1, H2, OUT):
    ks = jax.random.split(key, 18)

    def lin(kw, kb, fi, fo):
        w = jax.random.normal(kw, (fi, fo), jnp.float32) * (1.0 / jnp.sqrt(fi))
        b = jax.random.normal(kb, (1, fo), jnp.float32) * 0.01
        return w, b

    def bn(kg, kb, km, kv):
        g = 1.0 + 0.1 * jax.random.normal(kg, (few, 1), jnp.float32)
        be = 0.05 * jax.random.normal(kb, (few, 1), jnp.float32)
        m = 0.02 * jax.random.normal(km, (few, 1), jnp.float32)
        v = 1.0 + 0.1 * jax.random.uniform(kv, (few, 1), jnp.float32)
        return g, be, m, v

    w1, b1 = lin(ks[0], ks[1], 2 * E, H1)
    g1, be1, m1, v1 = bn(ks[2], ks[3], ks[4], ks[5])
    w2, b2 = lin(ks[6], ks[7], H1, H2)
    g2, be2, m2, v2 = bn(ks[8], ks[9], ks[10], ks[11])
    w3, b3 = lin(ks[12], ks[13], H2, OUT)
    g3, be3, m3, v3 = bn(ks[14], ks[15], ks[16], ks[17])
    return (w1, b1, g1, be1, m1, v1,
            w2, b2, g2, be2, m2, v2,
            w3, b3, g3, be3, m3, v3)


def make_inputs(key, B, few, Nq, E, n_ent=20):
    k0, k1, k2 = jax.random.split(key, 3)
    # "Pretrained" entity embedding table; the entity-name -> id dict lookup is host-side glue,
    # so integer ids are gathered here in plain JAX.
    emb = jax.random.normal(k0, (n_ent, E), jnp.float32) * 0.1
    sup_idx = jax.random.randint(k1, (B, few, 2), 0, n_ent)
    sup_emb = emb[sup_idx]                                                # [B, few, 2, E]
    sup_feat = jnp.concatenate([sup_emb[:, :, 0, :], sup_emb[:, :, 1, :]], axis=-1)
    query = jax.random.normal(k2, (B, Nq, 2, E), jnp.float32) * 0.1       # query already embedded
    return sup_feat, query[:, :, 0, :], query[:, :, 1, :]


if __name__ == "__main__":
    # Module defaults: embed_size=100, hidden=[500, 200], out=100; few chosen sublane-aligned.
    E, H1, H2, OUT = 100, 500, 200, 100
    key = jax.random.PRNGKey(0)
    kp, ki1, ki2, ki3 = jax.random.split(key, 4)

    few = 8
    params = make_params(kp, few, E, H1, H2, OUT)

    # Case A: tiny shapes, f32 matmuls, tight tolerance vs. the pure-JAX eval reference.
    B, Nq = 2, 8
    sup, q1, q2 = make_inputs(ki1, B, few, Nq, E)
    out = model_forward(sup, q1, q2, params, matmul_dtype=jnp.float32)
    jax.block_until_ready(out)
    ref = reference_forward(sup, q1, q2, params)
    assert out.shape == (B, Nq)
    assert jnp.allclose(out, ref, atol=1e-3, rtol=1e-3), (out, ref)

    # Case B: larger batch / query set, bf16 matmul inputs (v6e/v7x fast path),
    # multi-tile batch grid (2 tiles of 16 keep both v7x TensorCores busy).
    B2, Nq2 = 32, 128
    sup2, q12, q22 = make_inputs(ki2, B2, few, Nq2, E)
    out2 = model_forward(sup2, q12, q22, params, matmul_dtype=jnp.bfloat16)
    jax.block_until_ready(out2)
    ref2 = reference_forward(sup2, q12, q22, params)
    assert out2.shape == (B2, Nq2)
    assert jnp.allclose(out2, ref2, atol=5e-2, rtol=2e-2), float(jnp.max(jnp.abs(out2 - ref2)))

    # Case C: large candidate set -> query axis tiled (grid_nq=2), relation vector cached in VMEM
    # scratch across query tiles; f32 for a tight check.
    B3, Nq3 = 8, 512
    sup3, q13, q23 = make_inputs(ki3, B3, few, Nq3, E)
    out3 = model_forward(sup3, q13, q23, params, matmul_dtype=jnp.float32)
    jax.block_until_ready(out3)
    ref3 = reference_forward(sup3, q13, q23, params)
    assert out3.shape == (B3, Nq3)
    assert jnp.allclose(out3, ref3, atol=1e-3, rtol=1e-3), float(jnp.max(jnp.abs(out3 - ref3)))

    print("KERNEL_OK")
</pallas_src>

<mosaic_0001>
module attributes {stable_mosaic.version = 11 : i64} {
  func.func @model_kernel(%arg0: i32, %arg1: i32, %arg2: memref<128x256xf32, #tpu.memory_space<vmem>>, %arg3: memref<16x8x100xf32, #tpu.memory_space<vmem>>, %arg4: memref<16x8x100xf32, #tpu.memory_space<vmem>>, %arg5: memref<256x512xf32, #tpu.memory_space<vmem>>, %arg6: memref<128x1xf32, #tpu.memory_space<vmem>>, %arg7: memref<128x512xf32, #tpu.memory_space<vmem>>, %arg8: memref<512x256xf32, #tpu.memory_space<vmem>>, %arg9: memref<128x1xf32, #tpu.memory_space<vmem>>, %arg10: memref<128x256xf32, #tpu.memory_space<vmem>>, %arg11: memref<256x100xf32, #tpu.memory_space<vmem>>, %arg12: memref<128x1xf32, #tpu.memory_space<vmem>>, %arg13: memref<128x100xf32, #tpu.memory_space<vmem>>, %arg14: memref<16x8xf32, #tpu.memory_space<vmem>>, %arg15: memref<16x1x100xf32, #tpu.memory_space<vmem>>) attributes {dimension_semantics = [#tpu.dimension_semantics<parallel>, #tpu.dimension_semantics<arbitrary>], iteration_bounds = array<i64: 1, 1>, scalar_prefetch = 0 : i64, scratch_operands = 1 : i64, tpu.core_type = #tpu.core_type<tc>, window_params = [{transform_indices = @transform_0, window_bounds = array<i64: 128, 256>}, {transform_indices = @transform_1, window_bounds = array<i64: 16, 8, 100>}, {transform_indices = @transform_2, window_bounds = array<i64: 16, 8, 100>}, {pipeline_mode = #tpu.pipeline_mode<synchronous>, transform_indices = @transform_3, window_bounds = array<i64: 256, 512>}, {pipeline_mode = #tpu.pipeline_mode<synchronous>, transform_indices = @transform_4, window_bounds = array<i64: 128, 1>}, {pipeline_mode = #tpu.pipeline_mode<synchronous>, transform_indices = @transform_5, window_bounds = array<i64: 128, 512>}, {pipeline_mode = #tpu.pipeline_mode<synchronous>, transform_indices = @transform_6, window_bounds = array<i64: 512, 256>}, {pipeline_mode = #tpu.pipeline_mode<synchronous>, transform_indices = @transform_7, window_bounds = array<i64: 128, 1>}, {pipeline_mode = #tpu.pipeline_mode<synchronous>, transform_indices = @transform_8, window_bounds = array<i64: 128, 256>}, {pipeline_mode = #tpu.pipeline_mode<synchronous>, transform_indices = @transform_9, window_bounds = array<i64: 256, 100>}, {pipeline_mode = #tpu.pipeline_mode<synchronous>, transform_indices = @transform_10, window_bounds = array<i64: 128, 1>}, {pipeline_mode = #tpu.pipeline_mode<synchronous>, transform_indices = @transform_11, window_bounds = array<i64: 128, 100>}, {transform_indices = @transform_12, window_bounds = array<i64: 16, 8>}]} {
    %c0_i32 = arith.constant 0 : i32
    %0 = arith.cmpi eq, %arg1, %c0_i32 : i32
    %1 = arith.extui %0 : i1 to i32
    %c0_i32_0 = arith.constant 0 : i32
    %2 = arith.cmpi ne, %1, %c0_i32_0 : i32
    scf.if %2 {
      %c0_12 = arith.constant 0 : index
      %c0_13 = arith.constant 0 : index
      %15 = vector.load %arg2[%c0_12, %c0_13] : memref<128x256xf32, #tpu.memory_space<vmem>>, vector<128x256xf32>
      %c0_14 = arith.constant 0 : index
      %c0_15 = arith.constant 0 : index
      %16 = vector.load %arg5[%c0_14, %c0_15] : memref<256x512xf32, #tpu.memory_space<vmem>>, vector<256x512xf32>
      %cst_16 = arith.constant dense<0.000000e+00> : vector<128x512xf32>
      %17 = tpu.matmul %15, %16, %cst_16 {dimension_numbers = #tpu.dot_dimension_numbers<[1], [0], [0], [1], [0, 0, 1, 1], [], []>} : vector<128x256xf32>, vector<256x512xf32>, vector<128x512xf32> -> vector<128x512xf32>
      %c0_17 = arith.constant 0 : index
      %c0_18 = arith.constant 0 : index
      %18 = vector.load %arg6[%c0_17, %c0_18] : memref<128x1xf32, #tpu.memory_space<vmem>>, vector<128x1xf32>
      %19 = vector.broadcast %18 : vector<128x1xf32> to vector<128x512xf32>
      %20 = arith.mulf %19, %17 : vector<128x512xf32>
      %c0_19 = arith.constant 0 : index
      %c0_20 = arith.constant 0 : index
      %21 = vector.load %arg7[%c0_19, %c0_20] : memref<128x512xf32, #tpu.memory_space<vmem>>, vector<128x512xf32>
      %22 = arith.addf %20, %21 : vector<128x512xf32>
      %cst_21 = arith.constant 0.000000e+00 : f32
      %23 = vector.broadcast %cst_21 : f32 to vector<128x512xf32>
      %24 = arith.cmpf ogt, %22, %23 : vector<128x512xf32>
      %cst_22 = arith.constant 0.00999999977 : f32
      %25 = vector.broadcast %cst_22 : f32 to vector<128x512xf32>
      %26 = arith.mulf %25, %22 : vector<128x512xf32>
      %27 = arith.select %24, %22, %26 : vector<128x512xi1>, vector<128x512xf32>
      %c0_23 = arith.constant 0 : index
      %c0_24 = arith.constant 0 : index
      %28 = vector.load %arg8[%c0_23, %c0_24] : memref<512x256xf32, #tpu.memory_space<vmem>>, vector<512x256xf32>
      %cst_25 = arith.constant dense<0.000000e+00> : vector<128x256xf32>
      %29 = tpu.matmul %27, %28, %cst_25 {dimension_numbers = #tpu.dot_dimension_numbers<[1], [0], [0], [1], [0, 0, 1, 1], [], []>} : vector<128x512xf32>, vector<512x256xf32>, vector<128x256xf32> -> vector<128x256xf32>
      %c0_26 = arith.constant 0 : index
      %c0_27 = arith.constant 0 : index
      %30 = vector.load %arg9[%c0_26, %c0_27] : memref<128x1xf32, #tpu.memory_space<vmem>>, vector<128x1xf32>
      %31 = vector.broadcast %30 : vector<128x1xf32> to vector<128x256xf32>
      %32 = arith.mulf %31, %29 : vector<128x256xf32>
      %c0_28 = arith.constant 0 : index
      %c0_29 = arith.constant 0 : index
      %33 = vector.load %arg10[%c0_28, %c0_29] : memref<128x256xf32, #tpu.memory_space<vmem>>, vector<128x256xf32>
      %34 = arith.addf %32, %33 : vector<128x256xf32>
      %cst_30 = arith.constant 0.000000e+00 : f32
      %35 = vector.broadcast %cst_30 : f32 to vector<128x256xf32>
      %36 = arith.cmpf ogt, %34, %35 : vector<128x256xf32>
      %cst_31 = arith.constant 0.00999999977 : f32
      %37 = vector.broadcast %cst_31 : f32 to vector<128x256xf32>
      %38 = arith.mulf %37, %34 : vector<128x256xf32>
      %39 = arith.select %36, %34, %38 : vector<128x256xi1>, vector<128x256xf32>
      %c0_32 = arith.constant 0 : index
      %c0_33 = arith.constant 0 : index
      %40 = vector.load %arg11[%c0_32, %c0_33] : memref<256x100xf32, #tpu.memory_space<vmem>>, vector<256x100xf32>
      %cst_34 = arith.constant dense<0.000000e+00> : vector<128x100xf32>
      %41 = tpu.matmul %39, %40, %cst_34 {dimension_numbers = #tpu.dot_dimension_numbers<[1], [0], [0], [1], [0, 0, 1, 1], [], []>} : vector<128x256xf32>, vector<256x100xf32>, vector<128x100xf32> -> vector<128x100xf32>
      %c0_35 = arith.constant 0 : index
      %c0_36 = arith.constant 0 : index
      %42 = vector.load %arg12[%c0_35, %c0_36] : memref<128x1xf32, #tpu.memory_space<vmem>>, vector<128x1xf32>
      %43 = vector.broadcast %42 : vector<128x1xf32> to vector<128x100xf32>
      %44 = arith.mulf %43, %41 : vector<128x100xf32>
      %c0_37 = arith.constant 0 : index
      %c0_38 = arith.constant 0 : index
      %45 = vector.load %arg13[%c0_37, %c0_38] : memref<128x100xf32, #tpu.memory_space<vmem>>, vector<128x100xf32>
      %46 = arith.addf %44, %45 : vector<128x100xf32>
      %47 = vector.shape_cast %46 : vector<128x100xf32> to vector<16x8x100xf32>
      %cst_39 = arith.constant dense<0.000000e+00> : vector<16x100xf32>
      %48 = vector.multi_reduction <add>, %47, %cst_39 [1] : vector<16x8x100xf32> to vector<16x100xf32>
      %49 = vector.shape_cast %48 : vector<16x100xf32> to vector<16x1x100xf32>
      %cst_40 = arith.constant 8.000000e+00 : f32
      %50 = vector.broadcast %cst_40 : f32 to vector<16x1x100xf32>
      %51 = arith.divf %49, %50 : vector<16x1x100xf32>
      %c0_41 = arith.constant 0 : index
      %c0_42 = arith.constant 0 : index
      %c0_43 = arith.constant 0 : index
      %52 = vector.load %arg15[%c0_41, %c0_42, %c0_43] : memref<16x1x100xf32, #tpu.memory_space<vmem>>, vector<16x1x100xf32>
      tpu.vector_store %arg15[%c0_41, %c0_42, %c0_43], %51 {strides = array<i32>} : memref<16x1x100xf32, #tpu.memory_space<vmem>>, vector<16x1x100xf32>,
    } else {
    }
    %c0 = arith.constant 0 : index
    %c0_1 = arith.constant 0 : index
    %c0_2 = arith.constant 0 : index
    %3 = vector.load %arg15[%c0, %c0_1, %c0_2] : memref<16x1x100xf32, #tpu.memory_space<vmem>>, vector<16x1x100xf32>
    %c0_3 = arith.constant 0 : index
    %c0_4 = arith.constant 0 : index
    %c0_5 = arith.constant 0 : index
    %4 = vector.load %arg3[%c0_3, %c0_4, %c0_5] : memref<16x8x100xf32, #tpu.memory_space<vmem>>, vector<16x8x100xf32>
    %c0_6 = arith.constant 0 : index
    %c0_7 = arith.constant 0 : index
    %c0_8 = arith.constant 0 : index
    %5 = vector.load %arg4[%c0_6, %c0_7, %c0_8] : memref<16x8x100xf32, #tpu.memory_space<vmem>>, vector<16x8x100xf32>
    %6 = arith.addf %4, %5 : vector<16x8x100xf32>
    %7 = vector.broadcast %3 : vector<16x1x100xf32> to vector<16x8x100xf32>
    %8 = arith.subf %6, %7 : vector<16x8x100xf32>
    %9 = arith.mulf %8, %8 : vector<16x8x100xf32>
    %cst = arith.constant dense<0.000000e+00> : vector<16x8xf32>
    %10 = vector.multi_reduction <add>, %9, %cst [2] : vector<16x8x100xf32> to vector<16x8xf32>
    %11 = math.sqrt %10 : vector<16x8xf32>
    %cst_9 = arith.constant 0.000000e+00 : f32
    %12 = vector.broadcast %cst_9 : f32 to vector<16x8xf32>
    %13 = arith.subf %12, %11 : vector<16x8xf32>
    %c0_10 = arith.constant 0 : index
    %c0_11 = arith.constant 0 : index
    %14 = vector.load %arg14[%c0_10, %c0_11] : memref<16x8xf32, #tpu.memory_space<vmem>>, vector<16x8xf32>
    tpu.vector_store %arg14[%c0_10, %c0_11], %13 {strides = array<i32>} : memref<16x8xf32, #tpu.memory_space<vmem>>, vector<16x8xf32>,
    return
  }
  func.func @transform_0(%arg0: i32, %arg1: i32) -> (i32, i32) {
    %c0_i32 = arith.constant 0 : i32
    %c0_i32_0 = arith.constant 0 : i32
    return %arg0, %c0_i32 : i32, i32
  }
  func.func @transform_1(%arg0: i32, %arg1: i32) -> (i32, i32, i32) {
    %c0_i32 = arith.constant 0 : i32
    %c0_i32_0 = arith.constant 0 : i32
    return %arg0, %arg1, %c0_i32 : i32, i32, i32
  }
  func.func @transform_2(%arg0: i32, %arg1: i32) -> (i32, i32, i32) {
    %c0_i32 = arith.constant 0 : i32
    %c0_i32_0 = arith.constant 0 : i32
    return %arg0, %arg1, %c0_i32 : i32, i32, i32
  }
  func.func @transform_3(%arg0: i32, %arg1: i32) -> (i32, i32) {
    %c0_i32 = arith.constant 0 : i32
    %c0_i32_0 = arith.constant 0 : i32
    %c0_i32_1 = arith.constant 0 : i32
    return %c0_i32, %c0_i32_0 : i32, i32
  }
  func.func @transform_4(%arg0: i32, %arg1: i32) -> (i32, i32) {
    %c0_i32 = arith.constant 0 : i32
    %c0_i32_0 = arith.constant 0 : i32
    %c0_i32_1 = arith.constant 0 : i32
    return %c0_i32, %c0_i32_0 : i32, i32
  }
  func.func @transform_5(%arg0: i32, %arg1: i32) -> (i32, i32) {
    %c0_i32 = arith.constant 0 : i32
    %c0_i32_0 = arith.constant 0 : i32
    %c0_i32_1 = arith.constant 0 : i32
    return %c0_i32, %c0_i32_0 : i32, i32
  }
  func.func @transform_6(%arg0: i32, %arg1: i32) -> (i32, i32) {
    %c0_i32 = arith.constant 0 : i32
    %c0_i32_0 = arith.constant 0 : i32
    %c0_i32_1 = arith.constant 0 : i32
    return %c0_i32, %c0_i32_0 : i32, i32
  }
  func.func @transform_7(%arg0: i32, %arg1: i32) -> (i32, i32) {
    %c0_i32 = arith.constant 0 : i32
    %c0_i32_0 = arith.constant 0 : i32
    %c0_i32_1 = arith.constant 0 : i32
    return %c0_i32, %c0_i32_0 : i32, i32
  }
  func.func @transform_8(%arg0: i32, %arg1: i32) -> (i32, i32) {
    %c0_i32 = arith.constant 0 : i32
    %c0_i32_0 = arith.constant 0 : i32
    %c0_i32_1 = arith.constant 0 : i32
    return %c0_i32, %c0_i32_0 : i32, i32
  }
  func.func @transform_9(%arg0: i32, %arg1: i32) -> (i32, i32) {
    %c0_i32 = arith.constant 0 : i32
    %c0_i32_0 = arith.constant 0 : i32
    %c0_i32_1 = arith.constant 0 : i32
    return %c0_i32, %c0_i32_0 : i32, i32
  }
  func.func @transform_10(%arg0: i32, %arg1: i32) -> (i32, i32) {
    %c0_i32 = arith.constant 0 : i32
    %c0_i32_0 = arith.constant 0 : i32
    %c0_i32_1 = arith.constant 0 : i32
    return %c0_i32, %c0_i32_0 : i32, i32
  }
  func.func @transform_11(%arg0: i32, %arg1: i32) -> (i32, i32) {
    %c0_i32 = arith.constant 0 : i32
    %c0_i32_0 = arith.constant 0 : i32
    %c0_i32_1 = arith.constant 0 : i32
    return %c0_i32, %c0_i32_0 : i32, i32
  }
  func.func @transform_12(%arg0: i32, %arg1: i32) -> (i32, i32) {
    %c0_i32 = arith.constant 0 : i32
    return %arg0, %arg1 : i32, i32
  }
}

</mosaic_0001>

<bundles_post_ra>
// kernel: tpu_custom_call.1
= control target key start
LH: loop header
LB: loop body
LE: loop exit
PB: predicated region body
PF: predicated region fallthrough
CT: control target
= control target key end

     0   :  { %17 = vsyncpa [#allocation4], 0  ;;  %s5205_s0 = inlined_call_operand.hbm [shape: f32[128,256], index: 0, kind: input, shape index: {}]   ;;  %s5206_s1 = inlined_call_operand.vmem [shape: f32[16,8,100], index: 1, kind: input, shape index: {}]   ;;  %s5207_s2 = inlined_call_operand.vmem [shape: f32[16,8,100], index: 2, kind: input, shape index: {}]   ;;  %s5208_s3 = inlined_call_operand.hbm [shape: f32[256,512], index: 3, kind: input, shape index: {}]   ;;  %s5209_s4 = inlined_call_operand.vmem [shape: f32[128,1], index: 4, kind: input, shape index: {}]   ;;  %s5210_s5 = inlined_call_operand.vmem [shape: f32[128,512], index: 5, kind: input, shape index: {}]   ;;  %s5211_s6 = inlined_call_operand.hbm [shape: f32[512,256], index: 6, kind: input, shape index: {}]   ;;  %s5212_s7 = inlined_call_operand.vmem [shape: f32[128,1], index: 7, kind: input, shape index: {}]   ;;  %s5213_s8 = inlined_call_operand.hbm [shape: f32[128,256], index: 8, kind: input, shape index: {}]   ;;  %s5214_s9 = inlined_call_operand.vmem [shape: f32[256,100], index: 9, kind: input, shape index: {}]   ;;  %s5215_s10 = inlined_call_operand.vmem [shape: f32[128,1], index: 10, kind: input, shape index: {}]   ;;  %s5216_s11 = inlined_call_operand.vmem [shape: f32[128,100], index: 11, kind: input, shape index: {}]   ;;  %s5217_s12 = inlined_call_operand.vmem [shape: f32[16,8], index: 12, kind: output, shape index: {}]  }
   0x1   :  { %18 = vsyncpa [#allocation6], 0  ;;  %s41_s23 = sshll.u32 %s5208_s3, 4  ;;  %s42_s23 = int_to_ptr.hbm [resolvable:$true] %s41_s23 }
   0x2   :  { %19 = vsyncpa [#allocation9], 0  ;;  %s3352_s24 = smov [#allocation5]   ;;  %s24_s28 = sshll.u32 %s5205_s0, 4  ;;  %s25_s28 = int_to_ptr.hbm [resolvable:$true] %s24_s28 }
   0x3   :  { %s43_s25 = sshll.u32 %s3352_s24, 4  ;;  %s3353_s29 = smov 512   ;;  %s44_s25 = int_to_ptr.vmem [resolvable:$true] %s43_s25 }
   0x4   :  { %s3354_s30 = smov 32   ;;  %s3355_s13 = smov [#allocation3]  }
   0x5   :  { %49 = dma.hbm_to_vmem [thread:$0]  %s42_s23, 16384, %s44_s25, [#allocation6], %s3353_s29, %s3353_s29, %s3354_s30  }
   0x6   :  { %s26_s14 = sshll.u32 %s3355_s13, 4  ;;  %s3356_s15 = smov 256   ;;  %s27_s14 = int_to_ptr.vmem [resolvable:$true] %s26_s14 }
   0x7   :  { %s3357_s16 = smov 16   ;;  %s58_s18 = sshll.u32 %s5211_s6, 4  ;;  %s59_s18 = int_to_ptr.hbm [resolvable:$true] %s58_s18 }
   0x8   :  { %32 = dma.hbm_to_vmem [thread:$0]  %s25_s28, 4096, %s27_s14, [#allocation4], %s3356_s15, %s3356_s15, %s3357_s16  }
   0x9   :  { %s3358_s19 = smov [#allocation7]   ;;  %s73_s22 = sshll.u32 %s5213_s8, 4  ;;  %s74_s22 = int_to_ptr.hbm [resolvable:$true] %s73_s22 }
   0xa   :  { %s60_s20 = sshll.u32 %s3358_s19, 4  ;;  %s3359_s23 = smov [#allocation8]   ;;  %s61_s20 = int_to_ptr.vmem [resolvable:$true] %s60_s20 }
   0xb   :  { %66 = dma.hbm_to_vmem [thread:$0]  %s59_s18, 16384, %s61_s20, [#allocation6], %s3356_s15, %s3356_s15, %s3357_s16  }
   0xc   :  { %s75_s24 = sshll.u32 %s3359_s23, 4  ;;  %s76_s24 = int_to_ptr.vmem [resolvable:$true] %s75_s24 }
   0xd   :  { %81 = dma.hbm_to_vmem [thread:$0]  %s74_s22, 4096, %s76_s24, [#allocation9], %s3356_s15, %s3356_s15, %s3357_s16  }
   0xe   :  { %3346 = dma.done.wait [#allocation4], 4096  }
   0xf   :  { %3347 = vsyncadd [#allocation4], 4294963200 }
  0x10   :  { %3348 = dma.done.wait [#allocation6], 32768  }
  0x11   :  { %3349 = vsyncadd [#allocation6], 4294934528 }
  0x12   :  { %3350 = dma.done.wait [#allocation9], 4096  }
  0x13   :  { %3351 = vsyncadd [#allocation9], 4294963200  ;;  %v200_v0 = vld [vmem:[#allocation5 + $0x1e0] sm:$0xff]  ;;  %v788_v28 = vld [vmem:[%s5209_s4] sm:$0xff]  ;;  %v3360_v30 = vmov 0  }
  0x14   :  { %v264_v1 = vld [vmem:[#allocation5 + $0x3e0] sm:$0xff]  ;;  %268 = vmatpush.msra.mxu0 %v200_v0  ;;  %3131 = vmatpush.msra.mxu2 %v200_v0  ;;  %v3446_v36 = vld [vmem:[#allocation3 + $0x88] sm:$0xff]  ;;  %v789_v44 = vld [vmem:[%s5209_s4 + $0x8] sm:$0xff] }
  0x15   :  { %v196_v2 = vld [vmem:[#allocation5 + $0x1c0] sm:$0xff]  ;;  %3147 = vmatpush.msra.mxu3 %v264_v1  ;;  %333 = vmatpush.msra.mxu1 %v264_v1  ;;  %v201_v37 = vld [vmem:[#allocation5 + $0x1e8] sm:$0xff]  ;;  %v3457_v45 = vld [vmem:[#allocation3 + $0x10] sm:$0xff] }
  0x16   :  { %v260_v3 = vld [vmem:[#allocation5 + $0x3c0] sm:$0xff]  ;;  %269 = vmatpush.msra.mxu0 %v196_v2  ;;  %3132 = vmatpush.msra.mxu2 %v196_v2  ;;  %v265_v38 = vld [vmem:[#allocation5 + $0x3e8] sm:$0xff]  ;;  %v3461_v47 = vld [vmem:[#allocation3 + $0x90] sm:$0xff] }
  0x17   :  { %v192_v4 = vld [vmem:[#allocation5 + $0x1a0] sm:$0xff]  ;;  %3148 = vmatpush.msra.mxu3 %v260_v3  ;;  %334 = vmatpush.msra.mxu1 %v260_v3  ;;  %v197_v39 = vld [vmem:[#allocation5 + $0x1c8] sm:$0xff]  ;;  %v3463_v48 = vld [vmem:[#allocation3 + $0x98] sm:$0xff] }
  0x18   :  { %v256_v5 = vld [vmem:[#allocation5 + $0x3a0] sm:$0xff]  ;;  %270 = vmatpush.msra.mxu0 %v192_v4  ;;  %3133 = vmatpush.msra.mxu2 %v192_v4  ;;  %v261_v40 = vld [vmem:[#allocation5 + $0x3c8] sm:$0xff]  ;;  %v202_v51 = vld [vmem:[#allocation5 + $0x1f0] sm:$0xff] }
  0x19   :  { %v188_v6 = vld [vmem:[#allocation5 + $0x180] sm:$0xff]  ;;  %3149 = vmatpush.msra.mxu3 %v256_v5  ;;  %335 = vmatpush.msra.mxu1 %v256_v5  ;;  %v193_v42 = vld [vmem:[#allocation5 + $0x1a8] sm:$0xff]  ;;  %v792_v55 = vld [vmem:[%s5209_s4 + $0x20] sm:$0xff] }
  0x1a   :  { %v252_v7 = vld [vmem:[#allocation5 + $0x380] sm:$0xff]  ;;  %271 = vmatpush.msra.mxu0 %v188_v6  ;;  %3134 = vmatpush.msra.mxu2 %v188_v6  ;;  %v257_v43 = vld [vmem:[#allocation5 + $0x3a8] sm:$0xff]  ;;  %v198_v59 = vld [vmem:[#allocation5 + $0x1d0] sm:$0xff] }
  0x1b   :  { %v184_v8 = vld [vmem:[#allocation5 + $0x160] sm:$0xff]  ;;  %3150 = vmatpush.msra.mxu3 %v252_v7  ;;  %336 = vmatpush.msra.mxu1 %v252_v7  ;;  %v3459_v46 = vld [vmem:[#allocation3 + $0x8] sm:$0xff]  ;;  %v3480_v61 = vld [vmem:[#allocation3 + $0x18] sm:$0xff] }
  0x1c   :  { %v248_v9 = vld [vmem:[#allocation5 + $0x360] sm:$0xff]  ;;  %272 = vmatpush.msra.mxu0 %v184_v8  ;;  %3135 = vmatpush.msra.mxu2 %v184_v8  ;;  %v189_v49 = vld [vmem:[#allocation5 + $0x188] sm:$0xff]  ;;  %v194_v2 = vld [vmem:[#allocation5 + $0x1b0] sm:$0xff] }
  0x1d   :  { %v180_v10 = vld [vmem:[#allocation5 + $0x140] sm:$0xff]  ;;  %3151 = vmatpush.msra.mxu3 %v248_v9  ;;  %337 = vmatpush.msra.mxu1 %v248_v9  ;;  %v253_v50 = vld [vmem:[#allocation5 + $0x388] sm:$0xff]  ;;  %v266_v3 = vld [vmem:[#allocation5 + $0x3f0] sm:$0xff] }
  0x1e   :  { %v244_v11 = vld [vmem:[#allocation5 + $0x340] sm:$0xff]  ;;  %273 = vmatpush.msra.mxu0 %v180_v10  ;;  %3136 = vmatpush.msra.mxu2 %v180_v10  ;;  %v185_v52 = vld [vmem:[#allocation5 + $0x168] sm:$0xff]  ;;  %v793_v7 = vld [vmem:[%s5209_s4 + $0x28] sm:$0xff] }
  0x1f   :  { %v176_v12 = vld [vmem:[#allocation5 + $0x120] sm:$0xff]  ;;  %3152 = vmatpush.msra.mxu3 %v244_v11  ;;  %338 = vmatpush.msra.mxu1 %v244_v11  ;;  %v249_v53 = vld [vmem:[#allocation5 + $0x368] sm:$0xff]  ;;  %v797_v10 = vld [vmem:[%s5209_s4 + $0x48] sm:$0xff] }
  0x20   :  { %v240_v13 = vld [vmem:[#allocation5 + $0x320] sm:$0xff]  ;;  %274 = vmatpush.msra.mxu0 %v176_v12  ;;  %3137 = vmatpush.msra.mxu2 %v176_v12  ;;  %v791_v54 = vld [vmem:[%s5209_s4 + $0x18] sm:$0xff]  ;;  %v190_v11 = vld [vmem:[#allocation5 + $0x190] sm:$0xff] }
  0x21   :  { %v172_v14 = vld [vmem:[#allocation5 + $0x100] sm:$0xff]  ;;  %3153 = vmatpush.msra.mxu3 %v240_v13  ;;  %339 = vmatpush.msra.mxu1 %v240_v13  ;;  %v181_v56 = vld [vmem:[#allocation5 + $0x148] sm:$0xff]  ;;  %v3499_v12 = vld [vmem:[#allocation3 + $0x30] sm:$0xff] }
  0x22   :  { %v236_v15 = vld [vmem:[#allocation5 + $0x300] sm:$0xff]  ;;  %275 = vmatpush.msra.mxu0 %v172_v14  ;;  %3138 = vmatpush.msra.mxu2 %v172_v14  ;;  %v245_v57 = vld [vmem:[#allocation5 + $0x348] sm:$0xff]  ;;  %v3503_v14 = vld [vmem:[#allocation3 + $0xb0] sm:$0xff] }
  0x23   :  { %v168_v16 = vld [vmem:[#allocation5 + $0xe0] sm:$0xff]  ;;  %3154 = vmatpush.msra.mxu3 %v236_v15  ;;  %340 = vmatpush.msra.mxu1 %v236_v15  ;;  %v3484_v63 = vld [vmem:[#allocation3 + $0xa8] sm:$0xff]  ;;  %v3505_v15 = vld [vmem:[#allocation3 + $0xb8] sm:$0xff] }
  0x24   :  { %v232_v17 = vld [vmem:[#allocation5 + $0x2e0] sm:$0xff]  ;;  %276 = vmatpush.msra.mxu0 %v168_v16  ;;  %3139 = vmatpush.msra.mxu2 %v168_v16  ;;  %v177_v0 = vld [vmem:[#allocation5 + $0x128] sm:$0xff] }
  0x25   :  { %v164_v18 = vld [vmem:[#allocation5 + $0xc0] sm:$0xff]  ;;  %3155 = vmatpush.msra.mxu3 %v232_v17  ;;  %341 = vmatpush.msra.mxu1 %v232_v17  ;;  %v241_v1 = vld [vmem:[#allocation5 + $0x328] sm:$0xff] }
  0x26   :  { %v228_v19 = vld [vmem:[#allocation5 + $0x2c0] sm:$0xff]  ;;  %277 = vmatpush.msra.mxu0 %v164_v18  ;;  %3140 = vmatpush.msra.mxu2 %v164_v18  ;;  %v173_v4 = vld [vmem:[#allocation5 + $0x108] sm:$0xff]  ;;  %v186_v18 = vld [vmem:[#allocation5 + $0x170] sm:$0xff] }
  0x27   :  { %v160_v20 = vld [vmem:[#allocation5 + $0xa0] sm:$0xff]  ;;  %3156 = vmatpush.msra.mxu3 %v228_v19  ;;  %342 = vmatpush.msra.mxu1 %v228_v19  ;;  %v237_v5 = vld [vmem:[#allocation5 + $0x308] sm:$0xff]  ;;  %v262_v19 = vld [vmem:[#allocation5 + $0x3d0] sm:$0xff] }
  0x28   :  { %v224_v21 = vld [vmem:[#allocation5 + $0x2a0] sm:$0xff]  ;;  %278 = vmatpush.msra.mxu0 %v160_v20  ;;  %3141 = vmatpush.msra.mxu2 %v160_v20  ;;  %v795_v6 = vld [vmem:[%s5209_s4 + $0x38] sm:$0xff] }
  0x29   :  { %v156_v22 = vld [vmem:[#allocation5 + $0x80] sm:$0xff]  ;;  %3157 = vmatpush.msra.mxu3 %v224_v21  ;;  %343 = vmatpush.msra.mxu1 %v224_v21  ;;  %v169_v8 = vld [vmem:[#allocation5 + $0xe8] sm:$0xff] }
  0x2a   :  { %v220_v23 = vld [vmem:[#allocation5 + $0x280] sm:$0xff]  ;;  %279 = vmatpush.msra.mxu0 %v156_v22  ;;  %3142 = vmatpush.msra.mxu2 %v156_v22  ;;  %v233_v9 = vld [vmem:[#allocation5 + $0x2e8] sm:$0xff] }
  0x2b   :  { %v152_v24 = vld [vmem:[#allocation5 + $0x60] sm:$0xff]  ;;  %3158 = vmatpush.msra.mxu3 %v220_v23  ;;  %344 = vmatpush.msra.mxu1 %v220_v23  ;;  %v3501_v13 = vld [vmem:[#allocation3 + $0x28] sm:$0xff]  ;;  %v796_v23 = vld [vmem:[%s5209_s4 + $0x40] sm:$0xff] }
  0x2c   :  { %v216_v25 = vld [vmem:[#allocation5 + $0x260] sm:$0xff]  ;;  %280 = vmatpush.msra.mxu0 %v152_v24  ;;  %3143 = vmatpush.msra.mxu2 %v152_v24  ;;  %v165_v16 = vld [vmem:[#allocation5 + $0xc8] sm:$0xff]  ;;  %v182_v24 = vld [vmem:[#allocation5 + $0x150] sm:$0xff] }
  0x2d   :  { %v148_v26 = vld [vmem:[#allocation5 + $0x40] sm:$0xff]  ;;  %3159 = vmatpush.msra.mxu3 %v216_v25  ;;  %3173 = vset.pattern.permute.xlu0 %v3360_v30  ;;  %v229_v17 = vld [vmem:[#allocation5 + $0x2c8] sm:$0xff] }
  0x2e   :  { %v212_v27 = vld [vmem:[#allocation5 + $0x240] sm:$0xff]  ;;  %281 = vmatpush.msra.mxu0 %v148_v26  ;;  %3144 = vmatpush.msra.mxu2 %v148_v26  ;;  %v161_v20 = vld [vmem:[#allocation5 + $0xa8] sm:$0xff] }
  0x2f   :  { %v144_v29 = vld [vmem:[#allocation5 + $0x20] sm:$0xff]  ;;  %3160 = vmatpush.msra.mxu3 %v212_v27  ;;  %806 = vperm.xlu0 %3173, %v788_v28   ;;  %v225_v21 = vld [vmem:[#allocation5 + $0x2a8] sm:$0xff] }
  0x30   :  { %v208_v31 = vld [vmem:[#allocation5 + $0x220] sm:$0xff]  ;;  %282 = vmatpush.msra.mxu0 %v144_v29  ;;  %3145 = vmatpush.msra.mxu2 %v144_v29  ;;  %v221_v26 = vld [vmem:[#allocation5 + $0x288] sm:$0xff]  ;;  %v3519_v29 = vld [vmem:[#allocation3 + $0x38] sm:$0xff] }
  0x31   :  { %v140_v32 = vld [vmem:[#allocation5] sm:$0xff]  ;;  %3161 = vmatpush.msra.mxu3 %v208_v31  ;;  %345 = vmatpush.msra.mxu1 %v216_v25  ;;  %v157_v25 = vld [vmem:[#allocation5 + $0x88] sm:$0xff] }
  0x32   :  { %v204_v33 = vld [vmem:[#allocation5 + $0x200] sm:$0xff]  ;;  %283 = vmatpush.msra.mxu0 %v140_v32  ;;  %3146 = vmatpush.msra.mxu2 %v140_v32  ;;  %v178_v32 = vld [vmem:[#allocation5 + $0x130] sm:$0xff] }
  0x33   :  { %v3442_v34 = vld [vmem:[#allocation3] sm:$0xff]  ;;  %3162 = vmatpush.msra.mxu3 %v204_v33  ;;  %346 = vmatpush.msra.mxu1 %v212_v27  ;;  %v258_v27 = vld [vmem:[#allocation5 + $0x3b0] sm:$0xff] }
  0x34   :  { %v3444_v35 = vld [vmem:[#allocation3 + $0x80] sm:$0xff]  ;;  %284 = vmatmul.f32.vlgmr.msra.gmra.mxu0 %v3442_v34  ;;  %373 = vmatmul.f32.vlgmr.msra.gmra.mxu3 %v3446_v36 }
  0x35   :  { %308 = vmatmul.f32.vlgmr.msra.gmra.mxu2 %v3444_v35  ;;  %463 = vmatpush.msrb.mxu3 %v265_v38  ;;  %v790_v41 = vld [vmem:[%s5209_s4 + $0x10] sm:$0xff]  ;;  %v254_v38 = vld [vmem:[#allocation5 + $0x390] sm:$0xff] }
  0x36   :  { %398 = vmatpush.msrb.mxu2 %v201_v37  ;;  %3174 = vset.pattern.permute.xlu1 %v3360_v30  ;;  %v794_v58 = vld [vmem:[%s5209_s4 + $0x30] sm:$0xff]  ;;  %v217_v37 = vld [vmem:[#allocation5 + $0x268] sm:$0xff] }
  0x37   :  { %464 = vmatpush.msrb.mxu3 %v261_v40  ;;  %347 = vmatpush.msra.mxu1 %v208_v31  ;;  %v3478_v60 = vld [vmem:[#allocation3 + $0x20] sm:$0xff]  ;;  %v3523_v31 = vld [vmem:[#allocation3 + $0xc8] sm:$0xff]  ;;  %v800_v40 = vld [vmem:[%s5209_s4 + $0x60] sm:$0xff] }
  0x38   :  { %399 = vmatpush.msrb.mxu2 %v197_v39  ;;  %816 = vperm.xlu1 %3174, %v790_v41   ;;  %v3482_v62 = vld [vmem:[#allocation3 + $0xa0] sm:$0xff]  ;;  %v174_v39 = vld [vmem:[#allocation5 + $0x110] sm:$0xff] }
  0x39   :  { %465 = vmatpush.msrb.mxu3 %v257_v43  ;;  %348 = vmatpush.msra.mxu1 %v204_v33  ;;  %v798_v22 = vld [vmem:[%s5209_s4 + $0x50] sm:$0xff]  ;;  %v153_v33 = vld [vmem:[#allocation5 + $0x68] sm:$0xff]  ;;  %v250_v41 = vld [vmem:[#allocation5 + $0x370] sm:$0xff] }
  0x3a   :  { %400 = vmatpush.msrb.mxu2 %v193_v42  ;;  %811 = vperm.xlu0 %3173, %v789_v44   ;;  %v3517_v28 = vld [vmem:[#allocation3 + $0x40] sm:$0xff]  ;;  %v149_v42 = vld [vmem:[#allocation5 + $0x48] sm:$0xff]  ;;  %v170_v43 = vld [vmem:[#allocation5 + $0xf0] sm:$0xff] }
  0x3b   :  { %349 = vmatmul.f32.vlgmr.msra.gmra.mxu1 %v3459_v46  ;;  %466 = vmatpush.msrb.mxu3 %v253_v50  ;;  %v213_v44 = vld [vmem:[#allocation5 + $0x248] sm:$0xff] }
  0x3c   :  { %287 = vmatmul.f32.gmra.mxu0 %v3457_v45  ;;  %376 = vmatmul.f32.gmra.mxu3 %v3463_v48  ;;  %v145_v50 = vld [vmem:[#allocation5 + $0x28] sm:$0xff] }
  0x3d   :  { %311 = vmatmul.f32.gmra.mxu2 %v3461_v47  ;;  %3175 = vset.pattern.permute.xlu2 %v3360_v30  ;;  %v3521_v30 = vld [vmem:[#allocation3 + $0xc0] sm:$0xff] }
  0x3e   :  { %401 = vmatpush.msrb.mxu2 %v189_v49  ;;  %528 = vmatpush.msrb.mxu0 %v202_v51  ;;  %v246_v49 = vld [vmem:[#allocation5 + $0x350] sm:$0xff] }
  0x3f   :  { %467 = vmatpush.msrb.mxu3 %v249_v53  ;;  %826 = vperm.xlu2 %3175, %v792_v55   ;;  %v3532_v51 = vld [vmem:[#allocation3 + $0x50] sm:$0xff] }
  0x40   :  { %402 = vmatpush.msrb.mxu2 %v185_v52  ;;  %821 = vperm.xlu1 %3174, %v791_v54   ;;  %v3534_v52 = vld [vmem:[#allocation3 + $0x48] sm:$0xff]  ;;  %v3536_v53 = vld [vmem:[#allocation3 + $0xd0] sm:$0xff]  ;;  %v3538_v54 = vld [vmem:[#allocation3 + $0xd8] sm:$0xff] }
  0x41   :  { %468 = vmatpush.msrb.mxu3 %v245_v57  ;;  %529 = vmatpush.msrb.mxu0 %v198_v59  ;;  %v166_v55 = vld [vmem:[#allocation5 + $0xd0] sm:$0xff]  ;;  %v209_v57 = vld [vmem:[#allocation5 + $0x228] sm:$0xff] }
  0x42   :  { %403 = vmatpush.msrb.mxu2 %v181_v56  ;;  %836 = vperm.xlu0 %3173, %v794_v58   ;;  %v242_v56 = vld [vmem:[#allocation5 + $0x330] sm:$0xff]  ;;  %v801_v58 = vld [vmem:[%s5209_s4 + $0x68] sm:$0xff] }
  0x43   :  { %352 = vmatmul.f32.gmra.mxu1 %v3480_v61  ;;  %469 = vmatpush.msrb.mxu3 %v241_v1  ;;  %v162_v59 = vld [vmem:[#allocation5 + $0xb0] sm:$0xff]  ;;  %v141_v1 = vld [vmem:[#allocation5 + $0x8] sm:$0xff] }
  0x44   :  { %290 = vmatmul.f32.gmra.mxu0 %v3478_v60  ;;  %379 = vmatmul.f32.gmra.mxu3 %v3484_v63 }
  0x45   :  { %314 = vmatmul.f32.gmra.mxu2 %v3482_v62  ;;  %530 = vmatpush.msrb.mxu0 %v194_v2  ;;  %v205_v2 = vld [vmem:[#allocation5 + $0x208] sm:$0xff] }
  0x46   :  { %404 = vmatpush.msrb.mxu2 %v177_v0  ;;  %593 = vmatpush.msrb.mxu1 %v266_v3  ;;  %v238_v0 = vld [vmem:[#allocation5 + $0x310] sm:$0xff] }
  0x47   :  { %470 = vmatpush.msrb.mxu3 %v237_v5  ;;  %831 = vperm.xlu2 %3175, %v793_v7   ;;  %v158_v3 = vld [vmem:[#allocation5 + $0x90] sm:$0xff]  ;;  %v203_v5 = vld [vmem:[#allocation5 + $0x1f8] sm:$0xff]  ;;  %v3547_v7 = vld [vmem:[#allocation3 + $0x60] sm:$0xff] }
  0x48   :  { %405 = vmatpush.msrb.mxu2 %v173_v4  ;;  %841 = vperm.xlu1 %3174, %v795_v6   ;;  %v234_v4 = vld [vmem:[#allocation5 + $0x2f0] sm:$0xff]  ;;  %v267_v6 = vld [vmem:[#allocation5 + $0x3f8] sm:$0xff] }
  0x49   :  { %471 = vmatpush.msrb.mxu3 %v233_v9  ;;  %531 = vmatpush.msrb.mxu0 %v190_v11  ;;  %v3551_v9 = vld [vmem:[#allocation3 + $0xe0] sm:$0xff]  ;;  %v154_v11 = vld [vmem:[#allocation5 + $0x70] sm:$0xff] }
  0x4a   :  { %406 = vmatpush.msrb.mxu2 %v169_v8  ;;  %851 = vperm.xlu0 %3173, %v797_v10   ;;  %v3549_v8 = vld [vmem:[#allocation3 + $0x58] sm:$0xff]  ;;  %v3553_v10 = vld [vmem:[#allocation3 + $0xe8] sm:$0xff] }
  0x4b   :  { %355 = vmatmul.f32.gmra.mxu1 %v3501_v13  ;;  %472 = vmatpush.msrb.mxu3 %v229_v17  ;;  %v799_v17 = vld [vmem:[%s5209_s4 + $0x58] sm:$0xff] }
  0x4c   :  { %293 = vmatmul.f32.gmra.mxu0 %v3499_v12  ;;  %382 = vmatmul.f32.gmra.mxu3 %v3505_v15 }
  0x4d   :  { %317 = vmatmul.f32.gmra.mxu2 %v3503_v14  ;;  %532 = vmatpush.msrb.mxu0 %v186_v18  ;;  %v199_v18 = vld [vmem:[#allocation5 + $0x1d8] sm:$0xff] }
  0x4e   :  { %407 = vmatpush.msrb.mxu2 %v165_v16  ;;  %594 = vmatpush.msrb.mxu1 %v262_v19  ;;  %v230_v16 = vld [vmem:[#allocation5 + $0x2d0] sm:$0xff] }
  0x4f   :  { %473 = vmatpush.msrb.mxu3 %v225_v21  ;;  %846 = vperm.xlu2 %3175, %v796_v23   ;;  %v150_v19 = vld [vmem:[#allocation5 + $0x50] sm:$0xff]  ;;  %v263_v21 = vld [vmem:[#allocation5 + $0x3d8] sm:$0xff] }
  0x50   :  { %408 = vmatpush.msrb.mxu2 %v161_v20  ;;  %856 = vperm.xlu1 %3174, %v798_v22   ;;  %v226_v20 = vld [vmem:[#allocation5 + $0x2b0] sm:$0xff]  ;;  %v803_v22 = vld [vmem:[%s5209_s4 + $0x78] sm:$0xff] }
  0x51   :  { %533 = vmatpush.msrb.mxu0 %v182_v24  ;;  %474 = vmatpush.msrb.mxu3 %v221_v26  ;;  %v146_v23 = vld [vmem:[#allocation5 + $0x30] sm:$0xff]  ;;  %v259_v26 = vld [vmem:[#allocation5 + $0x3b8] sm:$0xff] }
  0x52   :  { %409 = vmatpush.msrb.mxu2 %v157_v25  ;;  %595 = vmatpush.msrb.mxu1 %v258_v27  ;;  %v222_v24 = vld [vmem:[#allocation5 + $0x290] sm:$0xff]  ;;  %v195_v25 = vld [vmem:[#allocation5 + $0x1b8] sm:$0xff] }
  0x53   :  { %358 = vmatmul.f32.gmra.mxu1 %v3519_v29  ;;  %534 = vmatpush.msrb.mxu0 %v178_v32  ;;  %v3565_v27 = vld [vmem:[#allocation3 + $0x70] sm:$0xff]  ;;  %v3567_v32 = vld [vmem:[#allocation3 + $0x68] sm:$0xff] }
  0x54   :  { %296 = vmatmul.f32.gmra.mxu0 %v3517_v28  ;;  %385 = vmatmul.f32.gmra.mxu3 %v3523_v31 }
  0x55   :  { %320 = vmatmul.f32.gmra.mxu2 %v3521_v30  ;;  %475 = vmatpush.msrb.mxu3 %v217_v37  ;;  %v3571_v37 = vld [vmem:[#allocation3 + $0xf8] sm:$0xff] }
  0x56   :  { %410 = vmatpush.msrb.mxu2 %v153_v33  ;;  %596 = vmatpush.msrb.mxu1 %v254_v38  ;;  %v3569_v33 = vld [vmem:[#allocation3 + $0xf0] sm:$0xff] }
  0x57   :  { %535 = vmatpush.msrb.mxu0 %v174_v39  ;;  %866 = vperm.xlu0 %3173, %v800_v40   ;;  %v142_v38 = vld [vmem:[#allocation5 + $0x10] sm:$0xff] }
  0x58   :  { %597 = vmatpush.msrb.mxu1 %v250_v41  ;;  %411 = vmatpush.msrb.mxu2 %v149_v42  ;;  %v218_v39 = vld [vmem:[#allocation5 + $0x270] sm:$0xff]  ;;  %v191_v41 = vld [vmem:[#allocation5 + $0x198] sm:$0xff] }
  0x59   :  { %536 = vmatpush.msrb.mxu0 %v170_v43  ;;  %476 = vmatpush.msrb.mxu3 %v213_v44  ;;  %v214_v40 = vld [vmem:[#allocation5 + $0x250] sm:$0xff]  ;;  %v255_v42 = vld [vmem:[#allocation5 + $0x398] sm:$0xff]  ;;  %v802_v43 = vld [vmem:[%s5209_s4 + $0x70] sm:$0xff] }
  0x5a   :  { %598 = vmatpush.msrb.mxu1 %v246_v49  ;;  %412 = vmatpush.msrb.mxu2 %v145_v50  ;;  %v210_v44 = vld [vmem:[#allocation5 + $0x230] sm:$0xff]  ;;  %v3580_v49 = vld [vmem:[#allocation3 + $0x78] sm:$0xff] }
  0x5b   :  { %361 = vmatmul.f32.gmra.mxu1 %v3534_v52  ;;  %537 = vmatpush.msrb.mxu0 %v166_v55  ;;  %v206_v50 = vld [vmem:[#allocation5 + $0x210] sm:$0xff]  ;;  %v187_v55 = vld [vmem:[#allocation5 + $0x178] sm:$0xff] }
  0x5c   :  { %299 = vmatmul.f32.gmra.mxu0 %v3532_v51  ;;  %388 = vmatmul.f32.gmra.mxu3 %v3538_v54 }
  0x5d   :  { %323 = vmatmul.f32.gmra.mxu2 %v3536_v53  ;;  %599 = vmatpush.msrb.mxu1 %v242_v56  ;;  %v251_v56 = vld [vmem:[#allocation5 + $0x378] sm:$0xff] }
  0x5e   :  { %477 = vmatpush.msrb.mxu3 %v209_v57  ;;  %871 = vperm.xlu1 %3174, %v801_v58   ;;  %v183_v57 = vld [vmem:[#allocation5 + $0x158] sm:$0xff] }
  0x5f   :  { %538 = vmatpush.msrb.mxu0 %v162_v59  ;;  %600 = vmatpush.msrb.mxu1 %v238_v0  ;;  %v247_v58 = vld [vmem:[#allocation5 + $0x358] sm:$0xff] }
  0x60   :  { %413 = vmatpush.msrb.mxu2 %v141_v1  ;;  %478 = vmatpush.msrb.mxu3 %v205_v2  ;;  %v243_v59 = vld [vmem:[#allocation5 + $0x338] sm:$0xff] }
  0x61   :  { %539 = vmatpush.msrb.mxu0 %v158_v3  ;;  %601 = vmatpush.msrb.mxu1 %v234_v4  ;;  %v239_v0 = vld [vmem:[#allocation5 + $0x318] sm:$0xff] }
  0x62   :  { %658 = vmatpush.msra.mxu2 %v203_v5  ;;  %723 = vmatpush.msra.mxu3 %v267_v6  ;;  %v235_v1 = vld [vmem:[#allocation5 + $0x2f8] sm:$0xff]  ;;  %v1919_v6 = vld [vmem:[%s5212_s7 + $0x18] sm:$0xff] }
  0x63   :  { %364 = vmatmul.f32.gmra.mxu1 %v3549_v8  ;;  %540 = vmatpush.msrb.mxu0 %v154_v11  ;;  %v167_v2 = vld [vmem:[#allocation5 + $0xd8] sm:$0xff] }
  0x64   :  { %302 = vmatmul.f32.gmra.mxu0 %v3547_v7  ;;  %391 = vmatmul.f32.gmra.mxu3 %v3553_v10  ;;  %v1921_v3 = vld [vmem:[%s5212_s7 + $0x28] sm:$0xff] }
  0x65   :  { %326 = vmatmul.f32.gmra.mxu2 %v3551_v9  ;;  %602 = vmatpush.msrb.mxu1 %v230_v16  ;;  %v163_v4 = vld [vmem:[#allocation5 + $0xb8] sm:$0xff] }
  0x66   :  { %861 = vperm.xlu2 %3175, %v799_v17   ;;  %659 = vmatpush.msra.mxu2 %v199_v18  ;;  %v227_v5 = vld [vmem:[#allocation5 + $0x2b8] sm:$0xff]  ;;  %v1922_v18 = vld [vmem:[%s5212_s7 + $0x30] sm:$0xff] }
  0x67   :  { %541 = vmatpush.msrb.mxu0 %v150_v19  ;;  %603 = vmatpush.msrb.mxu1 %v226_v20  ;;  %v159_v11 = vld [vmem:[#allocation5 + $0x98] sm:$0xff]  ;;  %v1927_v19 = vld [vmem:[%s5212_s7 + $0x58] sm:$0xff]  ;;  %v1298_v20 = vld [vmem:[#allocation7 + $0xf0] sm:$0xff] }
  0x68   :  { %724 = vmatpush.msra.mxu3 %v263_v21  ;;  %881 = vperm.xlu0 %3173, %v803_v22   ;;  %v223_v16 = vld [vmem:[#allocation5 + $0x298] sm:$0xff] }
  0x69   :  { %542 = vmatpush.msrb.mxu0 %v146_v23  ;;  %604 = vmatpush.msrb.mxu1 %v222_v24  ;;  %v155_v21 = vld [vmem:[#allocation5 + $0x78] sm:$0xff]  ;;  %v1296_v23 = vld [vmem:[#allocation7 + $0xe0] sm:$0xff] }
  0x6a   :  { %660 = vmatpush.msra.mxu2 %v195_v25  ;;  %725 = vmatpush.msra.mxu3 %v259_v26  ;;  %v219_v22 = vld [vmem:[#allocation5 + $0x278] sm:$0xff] }
  0x6b   :  { %367 = vmatmul.f32.gmra.mxu1 %v3567_v32  ;;  %543 = vmatpush.msrb.mxu0 %v142_v38  ;;  %v1292_v38 = vld [vmem:[#allocation7 + $0xc0] sm:$0xff] }
  0x6c   :  { %305 = vmatmul.f32.gmra.mxu0 %v3565_v27  ;;  %394 = vmatmul.f32.gmra.mxu3 %v3571_v37 }
  0x6d   :  { %329 = vmatmul.f32.gmra.mxu2 %v3569_v33  ;;  %605 = vmatpush.msrb.mxu1 %v218_v39  ;;  %v1925_v39 = vld [vmem:[%s5212_s7 + $0x48] sm:$0xff] }
  0x6e   :  { %661 = vmatpush.msra.mxu2 %v191_v41  ;;  %726 = vmatpush.msra.mxu3 %v255_v42  ;;  %v151_v41 = vld [vmem:[#allocation5 + $0x58] sm:$0xff] }
  0x6f   :  { %606 = vmatpush.msrb.mxu1 %v214_v40  ;;  %876 = vperm.xlu2 %3175, %v802_v43   ;;  %v1930_v40 = vld [vmem:[%s5212_s7 + $0x70] sm:$0xff]  ;;  %v215_v42 = vld [vmem:[#allocation5 + $0x258] sm:$0xff] }
  0x70   :  { %662 = vmatpush.msra.mxu2 %v187_v55  ;;  %727 = vmatpush.msra.mxu3 %v251_v56  ;;  %v1288_v55 = vld [vmem:[#allocation7 + $0xa0] sm:$0xff] }
  0x71   :  { %607 = vmatpush.msrb.mxu1 %v210_v44  ;;  %1396 = vmatpush.msra.mxu0 %v1298_v20  ;;  %v1328_v56 = vld [vmem:[#allocation7 + $0x1e0] sm:$0xff] }
  0x72   :  { %663 = vmatpush.msra.mxu2 %v183_v57  ;;  %728 = vmatpush.msra.mxu3 %v247_v58 }
  0x73   :  { %370 = vmatmul.f32.gmra.mxu1 %v3580_v49  ;;  %1397 = vmatpush.msra.mxu0 %v1296_v23 }
  0x74   :  { %544 = vmatmul.f32.vlgmr.msrb.gmra.mxu0 %v3442_v34  ;;  %479 = vmatmul.f32.vlgmr.msrb.gmra.mxu3 %v3459_v46 }
  0x75   :  { %414 = vmatmul.f32.vlgmr.msrb.gmra.mxu2 %v3442_v34  ;;  %608 = vmatpush.msrb.mxu1 %v206_v50  ;;  %v179_v34 = vld [vmem:[#allocation5 + $0x138] sm:$0xff]  ;;  %v1330_v50 = vld [vmem:[#allocation7 + $0x1f0] sm:$0xff] }
  0x76   :  { %664 = vmatpush.msra.mxu2 %v179_v34  ;;  %729 = vmatpush.msra.mxu3 %v243_v59  ;;  %v1286_v34 = vld [vmem:[#allocation7 + $0x90] sm:$0xff] }
  0x77   :  { %1461 = vmatpush.msra.mxu1 %v1330_v50  ;;  %v1928_v59 = vld [vmem:[%s5212_s7 + $0x60] sm:$0xff] }
  0x78   :  { %730 = vmatpush.msra.mxu3 %v239_v0  ;;  %v211_v0 = vld [vmem:[#allocation5 + $0x238] sm:$0xff] }
  0x79   :  { %1462 = vmatpush.msra.mxu1 %v1328_v56  ;;  %v1310_v56 = vld [vmem:[#allocation7 + $0x150] sm:$0xff] }
  0x7a   :  { %731 = vmatpush.msra.mxu3 %v235_v1  ;;  %v1284_v1 = vld [vmem:[#allocation7 + $0x80] sm:$0xff] }
  0x7b   :  { %609 = vmatmul.f32.vlgmr.msrb.gmra.mxu1 %v3459_v46 }
  0x7c   :  { %547 = vmatmul.f32.gmra.mxu0 %v3457_v45  ;;  %482 = vmatmul.f32.gmra.mxu3 %v3480_v61 }
  0x7d   :  { %417 = vmatmul.f32.gmra.mxu2 %v3457_v45  ;;  %v175_v45 = vld [vmem:[#allocation5 + $0x118] sm:$0xff] }
  0x7e   :  { %665 = vmatpush.msra.mxu2 %v175_v45  ;;  %v2367_v45 = vld [vmem:[%s5215_s10 + $0x8] sm:$0xff] }
  0x83   :  { %612 = vmatmul.f32.gmra.mxu1 %v3480_v61 }
  0x84   :  { %550 = vmatmul.f32.gmra.mxu0 %v3478_v60  ;;  %485 = vmatmul.f32.gmra.mxu3 %v3501_v13 }
  0x85   :  { %420 = vmatmul.f32.gmra.mxu2 %v3478_v60  ;;  %v171_v60 = vld [vmem:[#allocation5 + $0xf8] sm:$0xff] }
  0x86   :  { %666 = vmatpush.msra.mxu2 %v171_v60  ;;  %v1326_v60 = vld [vmem:[#allocation7 + $0x1d0] sm:$0xff] }
  0x87   :  { %1463 = vmatpush.msra.mxu1 %v1326_v60 }
  0x88   :  { %667 = vmatpush.msra.mxu2 %v167_v2  ;;  %v1324_v2 = vld [vmem:[#allocation7 + $0x1c0] sm:$0xff] }
  0x89   :  { %1464 = vmatpush.msra.mxu1 %v1324_v2 }
  0x8a   :  { %668 = vmatpush.msra.mxu2 %v163_v4  ;;  %v1280_v4 = vld [vmem:[#allocation7 + $0x60] sm:$0xff] }
  0x8b   :  { %615 = vmatmul.f32.gmra.mxu1 %v3501_v13 }
  0x8c   :  { %553 = vmatmul.f32.gmra.mxu0 %v3499_v12  ;;  %488 = vmatmul.f32.gmra.mxu3 %v3519_v29 }
  0x8d   :  { %423 = vmatmul.f32.gmra.mxu2 %v3499_v12  ;;  %v1918_v12 = vld [vmem:[%s5212_s7 + $0x10] sm:$0xff] }
  0x8e   :  { %1944 = vperm.xlu0 %3173, %v1918_v12   ;;  %669 = vmatpush.msra.mxu2 %v159_v11  ;;  %v207_v11 = vld [vmem:[#allocation5 + $0x218] sm:$0xff] }
  0x90   :  { %670 = vmatpush.msra.mxu2 %v155_v21 }
  0x92   :  { %671 = vmatpush.msra.mxu2 %v151_v41  ;;  %v1272_v41 = vld [vmem:[#allocation7 + $0x20] sm:$0xff] }
  0x93   :  { %618 = vmatmul.f32.gmra.mxu1 %v3519_v29 }
  0x94   :  { %556 = vmatmul.f32.gmra.mxu0 %v3517_v28  ;;  %491 = vmatmul.f32.gmra.mxu3 %v3534_v52 }
  0x95   :  { %426 = vmatmul.f32.gmra.mxu2 %v3517_v28  ;;  %v231_v28 = vld [vmem:[#allocation5 + $0x2d8] sm:$0xff] }
  0x96   :  { %732 = vmatpush.msra.mxu3 %v231_v28  ;;  %1959 = vperm.xlu0 %3173, %v1921_v3   ;;  %v1322_v3 = vld [vmem:[#allocation7 + $0x1b0] sm:$0xff] }
  0x97   :  { %1465 = vmatpush.msra.mxu1 %v1322_v3  ;;  %v1304_v3 = vld [vmem:[#allocation7 + $0x120] sm:$0xff] }
  0x98   :  { %733 = vmatpush.msra.mxu3 %v227_v5  ;;  %v1320_v5 = vld [vmem:[#allocation7 + $0x1a0] sm:$0xff] }
  0x99   :  { %1466 = vmatpush.msra.mxu1 %v1320_v5  ;;  %v1394_v5 = vld [vmem:[#allocation7 + $0x3f0] sm:$0xff] }
  0x9a   :  { %734 = vmatpush.msra.mxu3 %v223_v16  ;;  %v1931_v16 = vld [vmem:[%s5212_s7 + $0x78] sm:$0xff] }
  0x9b   :  { %621 = vmatmul.f32.gmra.mxu1 %v3534_v52 }
  0x9c   :  { %559 = vmatmul.f32.gmra.mxu0 %v3532_v51  ;;  %494 = vmatmul.f32.gmra.mxu3 %v3549_v8 }
  0x9d   :  { %429 = vmatmul.f32.gmra.mxu2 %v3532_v51  ;;  %v1916_v51 = vld [vmem:[%s5212_s7] sm:$0xff]  ;;  %735 = vmatpush.msra.mxu3 %v219_v22 }
  0x9e   :  { %1934 = vperm.xlu1 %3174, %v1916_v51   ;;  %v1282_v51 = vld [vmem:[#allocation7 + $0x70] sm:$0xff] }
  0x9f   :  { %736 = vmatpush.msra.mxu3 %v215_v42  ;;  %v1318_v22 = vld [vmem:[#allocation7 + $0x190] sm:$0xff]  ;;  %v1312_v42 = vld [vmem:[#allocation7 + $0x160] sm:$0xff] }
  0xa0   :  { %1467 = vmatpush.msra.mxu1 %v1318_v22 }
  0xa1   :  { %737 = vmatpush.msra.mxu3 %v211_v0  ;;  %v1306_v0 = vld [vmem:[#allocation7 + $0x130] sm:$0xff] }
  0xa3   :  { %624 = vmatmul.f32.gmra.mxu1 %v3549_v8  ;;  %738 = vmatpush.msra.mxu3 %v207_v11 }
  0xa4   :  { %562 = vmatmul.f32.gmra.mxu0 %v3547_v7  ;;  %497 = vmatmul.f32.gmra.mxu3 %v3567_v32 }
  0xa5   :  { %432 = vmatmul.f32.gmra.mxu2 %v3547_v7  ;;  %v1924_v7 = vld [vmem:[%s5212_s7 + $0x40] sm:$0xff]  ;;  %1591 = vmatpush.msrb.mxu3 %v1394_v5 }
  0xa6   :  { %1949 = vperm.xlu1 %3174, %v1919_v6   ;;  %1974 = vperm.xlu0 %3173, %v1924_v7   ;;  %v1917_v6 = vld [vmem:[%s5212_s7 + $0x8] sm:$0xff] }
  0xa7   :  { %v143_v7 = vld [vmem:[#allocation5 + $0x18] sm:$0xff]  ;;  %1939 = vperm.xlu2 %3175, %v1917_v6   ;;  %v948_v6 = vld [vmem:[%s5210_s5] sm:$0xff] }
  0xab   :  { %627 = vmatmul.f32.gmra.mxu1 %v3567_v32 }
  0xac   :  { %565 = vmatmul.f32.gmra.mxu0 %v3565_v27  ;;  %500 = vmatmul.f32.gmra.mxu3 %v3580_v49 }
  0xad   :  { %435 = vmatmul.f32.gmra.mxu2 %v3565_v27  ;;  %v1294_v27 = vld [vmem:[#allocation7 + $0xd0] sm:$0xff] }
  0xae   :  { %1964 = vperm.xlu1 %3174, %v1922_v18   ;;  %1989 = vperm.xlu0 %3173, %v1927_v19   ;;  %v2368_v19 = vld [vmem:[%s5215_s10 + $0x10] sm:$0xff] }
  0xaf   :  { %1398 = vmatpush.msra.mxu0 %v1294_v27  ;;  %v1274_v27 = vld [vmem:[#allocation7 + $0x30] sm:$0xff] }
  0xb1   :  { %v3629_v17 = vpop.f32.mrf.mxu0  ;;  %1399 = vmatpush.msra.mxu0 %v1292_v38  ;;  %v1314_v38 = vld [vmem:[#allocation7 + $0x170] sm:$0xff] }
  0xb3   :  { %630 = vmatmul.f32.gmra.mxu1 %v3580_v49 }
  0xb4   :  { %568 = vmatmul.f32.gmra.mxu0 %v3444_v35  ;;  %503 = vmatmul.f32.gmra.mxu3 %v3446_v36 }
  0xb5   :  { %438 = vmatmul.f32.gmra.mxu2 %v3444_v35 }
  0xb6   :  { %1979 = vperm.xlu1 %3174, %v1925_v39   ;;  %2004 = vperm.xlu0 %3173, %v1930_v40   ;;  %v1920_v39 = vld [vmem:[%s5212_s7 + $0x20] sm:$0xff] }
  0xb7   :  { %v374_v35 = vpop.f32.mrf.mxu3  ;;  %v2374_v40 = vld [vmem:[%s5215_s10 + $0x40] sm:$0xff]  ;;  %1954 = vperm.xlu2 %3175, %v1920_v39  }
  0xb8   :  { %v309_v24 = vpop.f32.mrf.mxu2  ;;  %v3659_v57 = vpop.f32.mrf.mxu1  ;;  %v952_v39 = vld [vmem:[%s5210_s5 + $0x20] sm:$0xff] }
  0xb9   :  { %v3641_v25 = vadd.f32 %v374_v35, %v309_v24  ;;  %v3643_v26 = vpop.f32.mrf.mxu0  ;;  %v1276_v24 = vld [vmem:[#allocation7 + $0x40] sm:$0xff] }
  0xba   :  { %v1316_v35 = vld [vmem:[#allocation7 + $0x180] sm:$0xff] }
  0xbb   :  { %633 = vmatmul.f32.gmra.mxu1 %v3446_v36  ;;  %v1290_v36 = vld [vmem:[#allocation7 + $0xb0] sm:$0xff] }
  0xbc   :  { %571 = vmatmul.f32.gmra.mxu0 %v3461_v47  ;;  %506 = vmatmul.f32.gmra.mxu3 %v3463_v48 }
  0xbd   :  { %441 = vmatmul.f32.gmra.mxu2 %v3461_v47  ;;  %1400 = vmatpush.msra.mxu0 %v1290_v36 }
  0xbe   :  { %1994 = vperm.xlu1 %3174, %v1928_v59   ;;  %2389 = vperm.xlu0 %3173, %v2367_v45   ;;  %v1308_v59 = vld [vmem:[#allocation7 + $0x140] sm:$0xff]  ;;  %v1923_v45 = vld [vmem:[%s5212_s7 + $0x38] sm:$0xff] }
  0xbf   :  { %v377_v47 = vpop.f32.mrf.mxu3  ;;  %1401 = vmatpush.msra.mxu0 %v1288_v55  ;;  %1468 = vmatpush.msra.mxu1 %v1316_v35  ;;  %v1270_v55 = vld [vmem:[#allocation7 + $0x10] sm:$0xff] }
  0xc0   :  { %v312_v43 = vpop.f32.mrf.mxu2  ;;  %v3683_v18 = vpop.f32.mrf.mxu1  ;;  %1969 = vperm.xlu2 %3175, %v1923_v45   ;;  %v1390_v45 = vld [vmem:[#allocation7 + $0x3d0] sm:$0xff] }
  0xc1   :  { %v3655_v44 = vadd.f32 %v377_v47, %v312_v43  ;;  %v3661_v58 = vpop.f32.mrf.mxu0  ;;  %1402 = vmatpush.msra.mxu0 %v1286_v34  ;;  %1469 = vmatpush.msra.mxu1 %v1314_v38  ;;  %v1268_v34 = vld [vmem:[#allocation7] sm:$0xff] }
  0xc2   :  { %v1392_v38 = vld [vmem:[#allocation7 + $0x3e0] sm:$0xff] }
  0xc3   :  { %636 = vmatmul.f32.gmra.mxu1 %v3463_v48  ;;  %v147_v48 = vld [vmem:[#allocation5 + $0x38] sm:$0xff]  ;;  %1403 = vmatpush.msra.mxu0 %v1284_v1 }
  0xc4   :  { %574 = vmatmul.f32.gmra.mxu0 %v3482_v62  ;;  %509 = vmatmul.f32.gmra.mxu3 %v3484_v63 }
  0xc5   :  { %444 = vmatmul.f32.gmra.mxu2 %v3482_v62  ;;  %1404 = vmatpush.msra.mxu0 %v1282_v51 }
  0xc6   :  { %672 = vmatpush.msra.mxu2 %v147_v48  ;;  %2009 = vperm.xlu1 %3174, %v1931_v16   ;;  %v2376_v48 = vld [vmem:[%s5215_s10 + $0x50] sm:$0xff] }
  0xc7   :  { %v380_v12 = vpop.f32.mrf.mxu3  ;;  %1405 = vmatpush.msra.mxu0 %v1280_v4  ;;  %2394 = vperm.xlu0 %3173, %v2368_v19  }
  0xc8   :  { %v315_v62 = vpop.f32.mrf.mxu2  ;;  %673 = vmatpush.msra.mxu2 %v143_v7  ;;  %v3705_v43 = vpop.f32.mrf.mxu1  ;;  %1470 = vmatpush.msra.mxu1 %v1312_v42  ;;  %v1926_v7 = vld [vmem:[%s5212_s7 + $0x50] sm:$0xff] }
  0xc9   :  { %v3671_v28 = vadd.f32 %v380_v12, %v315_v62  ;;  %v3728_v12 = vpop.permute.xlu0 %806  ;;  %1984 = vperm.xlu2 %3175, %v1926_v7   ;;  %1592 = vmatpush.msrb.mxu3 %v1392_v38 }
  0xca   :  { %1471 = vmatpush.msra.mxu1 %v1310_v56 }
  0xcb   :  { %639 = vmatmul.f32.gmra.mxu1 %v3484_v63  ;;  %v3685_v63 = vpop.f32.mrf.mxu0  ;;  %1593 = vmatpush.msrb.mxu3 %v1390_v45 }
  0xcc   :  { %577 = vmatmul.f32.gmra.mxu0 %v3503_v14  ;;  %512 = vmatmul.f32.gmra.mxu3 %v3505_v15 }
  0xcd   :  { %447 = vmatmul.f32.gmra.mxu2 %v3503_v14  ;;  %v1278_v14 = vld [vmem:[#allocation7 + $0x50] sm:$0xff]  ;;  %1472 = vmatpush.msra.mxu1 %v1308_v59 }
  0xce   :  { %1406 = vmatpush.msra.mxu0 %v1278_v14  ;;  %2424 = vperm.xlu1 %3174, %v2374_v40   ;;  %v2380_v14 = vld [vmem:[%s5215_s10 + $0x70] sm:$0xff]  ;;  %v357_v40 = vadd.f32 %v3705_v43, %v3661_v58  ;;  %v956_v58 = vld [vmem:[%s5210_s5 + $0x40] sm:$0xff] }
  0xcf   :  { %v383_v21 = vpop.f32.mrf.mxu3  ;;  %1473 = vmatpush.msra.mxu1 %v1306_v0  ;;  %v3226_v43 = vld [vmem:[#allocation3] sm:$0xff]  ;;  %v1358_v59 = vld [vmem:[#allocation7 + $0x2d0] sm:$0xff] }
  0xd0   :  { %v318_v20 = vpop.f32.mrf.mxu2  ;;  %1407 = vmatpush.msra.mxu0 %v1276_v24  ;;  %v3730_v2 = vpop.f32.mrf.mxu1 }
  0xd1   :  { %v3690_v23 = vadd.f32 %v383_v21, %v318_v20  ;;  %1474 = vmatpush.msra.mxu1 %v1304_v3  ;;  %v354_v20 = vadd.f32 %v3683_v18, %v3643_v26  ;;  %v3755_v22 = vpop.permute.xlu0 %811  ;;  %v1360_v18 = vld [vmem:[#allocation7 + $0x2e0] sm:$0xff] }
  0xd2   :  { %1408 = vmatpush.msra.mxu0 %v1274_v27 }
  0xd3   :  { %642 = vmatmul.f32.gmra.mxu1 %v3505_v15  ;;  %v3707_v47 = vpop.f32.mrf.mxu0  ;;  %v888_v24 = vmul.f32 %v3755_v22, %v354_v20 }
  0xd4   :  { %580 = vmatmul.f32.gmra.mxu0 %v3521_v30  ;;  %515 = vmatmul.f32.gmra.mxu3 %v3523_v31 }
  0xd5   :  { %450 = vmatmul.f32.gmra.mxu2 %v3521_v30  ;;  %v2377_v30 = vld [vmem:[%s5215_s10 + $0x58] sm:$0xff]  ;;  %1409 = vmatpush.msra.mxu0 %v1272_v41 }
  0xd6   :  { %2439 = vperm.xlu0 %3173, %v2377_v30   ;;  %2434 = vperm.xlu1 %3174, %v2376_v48   ;;  %v2366_v48 = vld [vmem:[%s5215_s10] sm:$0xff] }
  0xd7   :  { %v386_v15 = vpop.f32.mrf.mxu3  ;;  %1410 = vmatpush.msra.mxu0 %v1270_v55  ;;  %v3781_v55 = vpop.permute.xlu1 %816 }
  0xd8   :  { %v321_v36 = vpop.f32.mrf.mxu2  ;;  %v3760_v35 = vpop.f32.mrf.mxu1  ;;  %v892_v56 = vmul.f32 %v3781_v55, %v357_v40  ;;  %v953_v40 = vld [vmem:[%s5210_s5 + $0x28] sm:$0xff] }
  0xd9   :  { %v3709_v50 = vadd.f32 %v386_v15, %v321_v36  ;;  %1411 = vmatpush.msra.mxu0 %v1268_v34  ;;  %v1016_v36 = vadd.f32 %v952_v39, %v888_v24 }
  0xdb   :  { %645 = vmatmul.f32.gmra.mxu1 %v3523_v31  ;;  %v2371_v31 = vld [vmem:[%s5215_s10 + $0x28] sm:$0xff]  ;;  %v3732_v51 = vpop.f32.mrf.mxu0  ;;  %v1144_v34 = vmul.f32 0.01, %v1016_v36  ;;  %vm1080_vm1 = vcmp.gt.f32.partialorder %v1016_v36, 0.0 }
  0xdc   :  { %583 = vmatmul.f32.gmra.mxu0 %v3536_v53  ;;  %518 = vmatmul.f32.gmra.mxu3 %v3538_v54 }
  0xdd   :  { %453 = vmatmul.f32.gmra.mxu2 %v3536_v53  ;;  %v351_v53 = vadd.f32 %v3659_v57, %v3629_v17  ;;  %v1302_v17 = vld [vmem:[#allocation7 + $0x110] sm:$0xff] }
  0xde   :  { %2409 = vperm.xlu0 %3173, %v2371_v31   ;;  %v1362_v57 = vld [vmem:[#allocation7 + $0x2f0] sm:$0xff]  ;;  %1475 = vmatpush.msra.mxu1 %v1302_v17  ;;  %v949_v17 = vld [vmem:[%s5210_s5 + $0x8] sm:$0xff] }
  0xdf   :  { %v389_v1 = vpop.f32.mrf.mxu3  ;;  %v884_v4 = vmul.f32 %v3728_v12, %v351_v53  ;;  %1526 = vmatpush.msrb.mxu2 %v1362_v57  ;;  %v360_v53 = vadd.f32 %v3730_v2, %v3685_v63  ;;  %v3806_v5 = vpop.permute.xlu1 %821  ;;  %v1356_v2 = vld [vmem:[#allocation7 + $0x2c0] sm:$0xff] }
  0xe0   :  { %v324_v60 = vpop.f32.mrf.mxu2  ;;  %v365_v0 = vpop.f32.mrf.mxu1 }
  0xe1   :  { %v3726_v62 = vadd.f32 %v389_v1, %v324_v60  ;;  %v1012_v19 = vadd.f32 %v948_v6, %v884_v4  ;;  %1527 = vmatpush.msrb.mxu2 %v1360_v18  ;;  %v1020_v1 = vadd.f32 %v956_v58, %v892_v56  ;;  %v3800_v4 = vsel %vm1080_vm1, %v1016_v36, %v1144_v34  ;;  %v3228_v36 = vld [vmem:[#allocation3 + $0x20] sm:$0xff]  ;;  %v1354_v58 = vld [vmem:[#allocation7 + $0x2b0] sm:$0xff]  ;;  %v2369_v34 = vld [vmem:[%s5215_s10 + $0x18] sm:$0xff] }
  0xe2   :  { %v896_v6 = vmul.f32 %v3806_v5, %v360_v53  ;;  %v957_v53 = vld [vmem:[%s5210_s5 + $0x48] sm:$0xff] }
  0xe3   :  { %648 = vmatmul.f32.gmra.mxu1 %v3538_v54  ;;  %v2370_v54 = vld [vmem:[%s5215_s10 + $0x20] sm:$0xff]  ;;  %v3762_v27 = vpop.f32.mrf.mxu0  ;;  %v1140_v26 = vmul.f32 0.01, %v1012_v19  ;;  %vm1076_vm0 = vcmp.gt.f32.partialorder %v1012_v19, 0.0  ;;  %1528 = vmatpush.msrb.mxu2 %v1358_v59  ;;  %v1148_v63 = vmul.f32 0.01, %v1020_v1 }
  0xe4   :  { %586 = vmatmul.f32.gmra.mxu0 %v3551_v9  ;;  %521 = vmatmul.f32.gmra.mxu3 %v3553_v10  ;;  %vm1084_vm2 = vcmp.gt.f32.partialorder %v1020_v1, 0.0 }
  0xe5   :  { %456 = vmatmul.f32.gmra.mxu2 %v3551_v9  ;;  %v1300_v9 = vld [vmem:[#allocation7 + $0x100] sm:$0xff]  ;;  %2404 = vperm.xlu1 %3174, %v2370_v54   ;;  %v3779_v30 = vsel %vm1076_vm0, %v1012_v19, %v1140_v26  ;;  %v3227_v54 = vld [vmem:[#allocation3 + $0x10] sm:$0xff]  ;;  %v363_v19 = vadd.f32 %v3760_v35, %v3707_v47 }
  0xe6   :  { %1476 = vmatpush.msra.mxu1 %v1300_v9  ;;  %2454 = vperm.xlu0 %3173, %v2380_v14   ;;  %v1388_v9 = vld [vmem:[#allocation7 + $0x3c0] sm:$0xff] }
  0xe7   :  { %v392_v16 = vpop.f32.mrf.mxu3  ;;  %1529 = vmatpush.msrb.mxu2 %v1356_v2  ;;  %1594 = vmatpush.msrb.mxu3 %v1388_v9  ;;  %v1384_v2 = vld [vmem:[#allocation7 + $0x3a0] sm:$0xff]  ;;  %v968_v9 = vld [vmem:[%s5210_s5 + $0xa0] sm:$0xff] }
  0xe8   :  { %v327_v11 = vpop.f32.mrf.mxu2  ;;  %v368_v26 = vpop.f32.mrf.mxu1 }
  0xe9   :  { %v3753_v21 = vadd.f32 %v392_v16, %v327_v11  ;;  %v960_v11 = vld [vmem:[%s5210_s5 + $0x60] sm:$0xff]  ;;  %v2375_v16 = vld [vmem:[%s5215_s10 + $0x48] sm:$0xff]  ;;  %1530 = vmatpush.msrb.mxu2 %v1354_v58 }
  0xea   :  { %v1024_v24 = vadd.f32 %v960_v11, %v896_v6  ;;  %v2378_v11 = vld [vmem:[%s5215_s10 + $0x60] sm:$0xff] }
  0xeb   :  { %651 = vmatmul.f32.gmra.mxu1 %v3553_v10  ;;  %v1929_v10 = vld [vmem:[%s5212_s7 + $0x68] sm:$0xff]  ;;  %v3796_v60 = vpop.f32.mrf.mxu0 }
  0xec   :  { %589 = vmatmul.f32.gmra.mxu0 %v3569_v33  ;;  %524 = vmatmul.f32.gmra.mxu3 %v3571_v37  ;;  %v1152_v56 = vmul.f32 0.01, %v1024_v24  ;;  %vm1088_vm4 = vcmp.gt.f32.partialorder %v1024_v24, 0.0 }
  0xed   :  { %459 = vmatmul.f32.gmra.mxu2 %v3569_v33  ;;  %v2379_v33 = vld [vmem:[%s5215_s10 + $0x68] sm:$0xff]  ;;  %1999 = vperm.xlu2 %3175, %v1929_v10   ;;  %v3823_v10 = vsel %vm1084_vm2, %v1020_v1, %v1148_v63  ;;  %v366_v1 = vadd.f32 %v365_v0, %v3732_v51  ;;  %v1352_v63 = vld [vmem:[#allocation7 + $0x2a0] sm:$0xff] }
  0xee   :  { %2449 = vperm.xlu1 %3174, %v2379_v33   ;;  %v3825_v33 = vpop.permute.xlu2 %826  ;;  %1531 = vmatpush.msrb.mxu2 %v1352_v63 }
  0xef   :  { %v395_v42 = vpop.f32.mrf.mxu3  ;;  %v900_v35 = vmul.f32 %v3825_v33, %v363_v19 }
  0xf0   :  { %v330_v41 = vpop.f32.mrf.mxu2 }
  0xf1   :  { %v3777_v15 = vadd.f32 %v395_v42, %v330_v41  ;;  %v964_v41 = vld [vmem:[%s5210_s5 + $0x80] sm:$0xff] }
  0xf2   :  { %v1028_v45 = vadd.f32 %v964_v41, %v900_v35 }
  0xf3   :  { %654 = vmatmul.f32.gmra.mxu1 %v3571_v37  ;;  %v2373_v37 = vld [vmem:[%s5215_s10 + $0x38] sm:$0xff]  ;;  %v3819_v18 = vpop.f32.mrf.mxu0 }
  0xf4   :  { %1412 = vmatmul.f32.vlgmr.msra.gmra.mxu0 %v3779_v30  ;;  %739 = vmatmul.f32.vlgmr.msra.gmra.mxu3 %v3459_v46  ;;  %vm1092_vm6 = vcmp.gt.f32.partialorder %v1028_v45, 0.0 }
  0xf5   :  { %674 = vmatmul.f32.vlgmr.msra.gmra.mxu2 %v3226_v43  ;;  %2384 = vperm.xlu2 %3175, %v2366_v48   ;;  %v1386_v43 = vld [vmem:[#allocation7 + $0x3b0] sm:$0xff] }
  0xf6   :  { %2419 = vperm.xlu1 %3174, %v2373_v37   ;;  %1595 = vmatpush.msrb.mxu3 %v1386_v43  ;;  %v3853_v6 = vpop.permute.xlu2 %831  ;;  %v1350_v43 = vld [vmem:[#allocation7 + $0x290] sm:$0xff] }
  0xf7   :  { %v480_v46 = vpop.f32.mrf.mxu3  ;;  %v904_v51 = vmul.f32 %v3853_v6, %v366_v1  ;;  %1532 = vmatpush.msrb.mxu2 %v1350_v43  ;;  %v3232_v43 = vld [vmem:[#allocation3 + $0x60] sm:$0xff] }
  0xf8   :  { %v415_v31 = vpop.f32.mrf.mxu2  ;;  %1596 = vmatpush.msrb.mxu3 %v1384_v2  ;;  %v1348_v2 = vld [vmem:[#allocation7 + $0x280] sm:$0xff] }
  0xf9   :  { %v481_v3 = vadd.f32 %v480_v46, %v415_v31  ;;  %1533 = vmatpush.msrb.mxu2 %v1348_v2 }
  0xfb   :  { %v885_v57 = vmul.f32 %v3728_v12, %v481_v3  ;;  %v371_v3 = vpop.f32.mrf.mxu1 }
  0xfc   :  { %1415 = vmatmul.f32.gmra.mxu0 %v3800_v4  ;;  %742 = vmatmul.f32.gmra.mxu3 %v3480_v61 }
  0xfd   :  { %v1013_v7 = vadd.f32 %v949_v17, %v885_v57  ;;  %677 = vmatmul.f32.gmra.mxu2 %v3227_v54  ;;  %2429 = vperm.xlu2 %3175, %v2375_v16   ;;  %v3850_v17 = vpop.f32.mrf.mxu0  ;;  %v1156_v54 = vmul.f32 0.01, %v1028_v45 }
  0xff   :  { %vm1077_vm3 = vcmp.gt.f32.partialorder %v1013_v7, 0.0  ;;  %v1141_v14 = vmul.f32 0.01, %v1013_v7  ;;  %v483_v20 = vpop.f32.mrf.mxu3 }
 0x100   :  { %v418_v61 = vpop.f32.mrf.mxu2 }
 0x101   :  { %v484_v38 = vadd.f32 %v483_v20, %v418_v61  ;;  %v3821_v39 = vsel %vm1077_vm3, %v1013_v7, %v1141_v14  ;;  %v3229_v7 = vld [vmem:[#allocation3 + $0x30] sm:$0xff]  ;;  %v369_v14 = vadd.f32 %v368_v26, %v3762_v27  ;;  %v1032_v61 = vadd.f32 %v968_v9, %v904_v51  ;;  %v965_v51 = vld [vmem:[%s5210_s5 + $0x88] sm:$0xff]  ;;  %v1380_v9 = vld [vmem:[#allocation7 + $0x380] sm:$0xff] }
 0x102   :  { %1477 = vmatmul.f32.vlgmr.msra.gmra.mxu1 %v3821_v39  ;;  %v972_v26 = vld [vmem:[%s5210_s5 + $0xc0] sm:$0xff] }
 0x103   :  { %v889_v47 = vmul.f32 %v3755_v22, %v484_v38  ;;  %v3867_v38 = vsel %vm1092_vm6, %v1028_v45, %v1156_v54  ;;  %v3881_v41 = vpop.f32.mrf.mxu1  ;;  %v1160_v58 = vmul.f32 0.01, %v1032_v61  ;;  %vm1096_vm8 = vcmp.gt.f32.partialorder %v1032_v61, 0.0  ;;  %v3231_v54 = vld [vmem:[#allocation3 + $0x50] sm:$0xff] }
 0x104   :  { %1418 = vmatmul.f32.gmra.mxu0 %v3823_v10  ;;  %745 = vmatmul.f32.gmra.mxu3 %v3501_v13  ;;  %v3844_v13 = vsel %vm1088_vm4, %v1024_v24, %v1152_v56  ;;  %v3230_v56 = vld [vmem:[#allocation3 + $0x40] sm:$0xff] }
 0x105   :  { %v1017_v42 = vadd.f32 %v953_v40, %v889_v47  ;;  %680 = vmatmul.f32.gmra.mxu2 %v3228_v36  ;;  %2399 = vperm.xlu2 %3175, %v2369_v34   ;;  %v961_v40 = vld [vmem:[%s5210_s5 + $0x68] sm:$0xff]  ;;  %v3873_v47 = vpop.permute.xlu0 %836  ;;  %v1382_v34 = vld [vmem:[#allocation7 + $0x390] sm:$0xff] }
 0x106   :  { %v908_v27 = vmul.f32 %v3873_v47, %v369_v14  ;;  %1597 = vmatpush.msrb.mxu3 %v1382_v34 }
 0x107   :  { %vm1081_vm5 = vcmp.gt.f32.partialorder %v1017_v42, 0.0  ;;  %v1145_v59 = vmul.f32 0.01, %v1017_v42  ;;  %v486_v37 = vpop.f32.mrf.mxu3 }
 0x108   :  { %v421_v48 = vpop.f32.mrf.mxu2  ;;  %1598 = vmatpush.msrb.mxu3 %v1380_v9 }
 0x109   :  { %v487_v31 = vadd.f32 %v486_v37, %v421_v48  ;;  %v3842_v46 = vsel %vm1081_vm5, %v1017_v42, %v1145_v59  ;;  %v3883_v42 = vpop.f32.mrf.mxu0  ;;  %v2372_v59 = vld [vmem:[%s5215_s10 + $0x30] sm:$0xff]  ;;  %v1036_v48 = vadd.f32 %v972_v26, %v908_v27  ;;  %v969_v26 = vld [vmem:[%s5210_s5 + $0xa8] sm:$0xff] }
 0x10a   :  { %1480 = vmatmul.f32.gmra.mxu1 %v3842_v46 }
 0x10b   :  { %v893_v57 = vmul.f32 %v3781_v55, %v487_v31  ;;  %v372_v31 = vadd.f32 %v371_v3, %v3796_v60  ;;  %v1164_v63 = vmul.f32 0.01, %v1036_v48  ;;  %vm1100_vm10 = vcmp.gt.f32.partialorder %v1036_v48, 0.0  ;;  %v3910_v14 = vpop.f32.mrf.mxu1 }
 0x10c   :  { %1421 = vmatmul.f32.gmra.mxu0 %v3844_v13  ;;  %748 = vmatmul.f32.gmra.mxu3 %v3519_v29 }
 0x10d   :  { %v1021_v0 = vadd.f32 %v957_v53, %v893_v57  ;;  %683 = vmatmul.f32.gmra.mxu2 %v3229_v7  ;;  %2444 = vperm.xlu2 %3175, %v2378_v11   ;;  %v3899_v7 = vpop.permute.xlu1 %841  ;;  %v976_v11 = vld [vmem:[%s5210_s5 + $0xe0] sm:$0xff]  ;;  %v3916_v27 = vsel %vm1100_vm10, %v1036_v48, %v1164_v63  ;;  %v3945_v2 = vpop.permute.xlu0 %851 }
 0x10e   :  { %v912_v60 = vmul.f32 %v3899_v7, %v372_v31  ;;  %5237 = vst [vmem:[#allocation13_spill] sm:$0xff] %v3945_v2 }
 0x10f   :  { %vm1085_vm7 = vcmp.gt.f32.partialorder %v1021_v0, 0.0  ;;  %v1149_v16 = vmul.f32 0.01, %v1021_v0  ;;  %v489_v29 = vpop.f32.mrf.mxu3 }
 0x110   :  { %v424_v19 = vpop.f32.mrf.mxu2 }
 0x111   :  { %v490_v20 = vadd.f32 %v489_v29, %v424_v19  ;;  %v3865_v24 = vsel %vm1085_vm7, %v1021_v0, %v1149_v16  ;;  %v2381_v16 = vld [vmem:[%s5215_s10 + $0x78] sm:$0xff]  ;;  %v3912_v19 = vpop.f32.mrf.mxu0 }
 0x112   :  { %1483 = vmatmul.f32.gmra.mxu1 %v3865_v24 }
 0x113   :  { %v897_v35 = vmul.f32 %v3806_v5, %v490_v20  ;;  %v1040_v20 = vadd.f32 %v976_v11, %v912_v60  ;;  %v3233_v11 = vld [vmem:[#allocation3 + $0x70] sm:$0xff] }
 0x114   :  { %1424 = vmatmul.f32.gmra.mxu0 %v3867_v38  ;;  %751 = vmatmul.f32.gmra.mxu3 %v3534_v52  ;;  %v3892_v52 = vsel %vm1096_vm8, %v1032_v61, %v1160_v58 }
 0x115   :  { %v1025_v36 = vadd.f32 %v961_v40, %v897_v35  ;;  %686 = vmatmul.f32.gmra.mxu2 %v3230_v56  ;;  %2414 = vperm.xlu2 %3175, %v2372_v59   ;;  %v3923_v56 = vpop.permute.xlu2 %846  ;;  %v1168_v34 = vmul.f32 0.01, %v1040_v20  ;;  %v1346_v59 = vld [vmem:[#allocation7 + $0x270] sm:$0xff]  ;;  %vm1104_vm12 = vcmp.gt.f32.partialorder %v1040_v20, 0.0 }
 0x116   :  { %1534 = vmatpush.msrb.mxu2 %v1346_v59  ;;  %v916_v48 = vmul.f32 %v3923_v56, %v3641_v25  ;;  %v973_v25 = vld [vmem:[%s5210_s5 + $0xc8] sm:$0xff] }
 0x117   :  { %vm1089_vm9 = vcmp.gt.f32.partialorder %v1025_v36, 0.0  ;;  %v1153_v45 = vmul.f32 0.01, %v1025_v36  ;;  %v492_v1 = vpop.f32.mrf.mxu3 }
 0x118   :  { %v427_v37 = vpop.f32.mrf.mxu2 }
 0x119   :  { %v493_v53 = vadd.f32 %v492_v1, %v427_v37  ;;  %v3890_v57 = vsel %vm1089_vm9, %v1025_v36, %v1153_v45  ;;  %v1378_v45 = vld [vmem:[#allocation7 + $0x370] sm:$0xff] }
 0x11a   :  { %1486 = vmatmul.f32.gmra.mxu1 %v3890_v57  ;;  %1599 = vmatpush.msrb.mxu3 %v1378_v45 }
 0x11b   :  { %v901_v0 = vmul.f32 %v3825_v33, %v493_v53  ;;  %v980_v53 = vld [vmem:[%s5210_s5 + $0x100] sm:$0xff] }
 0x11c   :  { %1427 = vmatmul.f32.gmra.mxu0 %v3892_v52  ;;  %754 = vmatmul.f32.gmra.mxu3 %v3549_v8  ;;  %v1044_v63 = vadd.f32 %v980_v53, %v916_v48  ;;  %v3235_v53 = vld [vmem:[#allocation3 + $0x88] sm:$0xff] }
 0x11d   :  { %v1029_v3 = vadd.f32 %v965_v51, %v901_v0  ;;  %689 = vmatmul.f32.gmra.mxu2 %v3231_v54  ;;  %2459 = vperm.xlu2 %3175, %v2381_v16   ;;  %v3932_v51 = vpop.f32.mrf.mxu1  ;;  %v1344_v16 = vld [vmem:[#allocation7 + $0x260] sm:$0xff] }
 0x11e   :  { %1535 = vmatpush.msrb.mxu2 %v1344_v16  ;;  %vm1108_vm15 = vcmp.gt.f32.partialorder %v1044_v63, 0.0  ;;  %v1297_v16 = vld [vmem:[#allocation7 + $0xe8] sm:$0xff] }
 0x11f   :  { %vm1093_vm11 = vcmp.gt.f32.partialorder %v1029_v3, 0.0  ;;  %v1157_v8 = vmul.f32 0.01, %v1029_v3  ;;  %v495_v61 = vpop.f32.mrf.mxu3 }
 0x120   :  { %v430_v29 = vpop.f32.mrf.mxu2 }
 0x121   :  { %v496_v40 = vadd.f32 %v495_v61, %v430_v29  ;;  %v3914_v35 = vsel %vm1093_vm11, %v1029_v3, %v1157_v8  ;;  %v3938_v3 = vsel %vm1104_vm12, %v1040_v20, %v1168_v34  ;;  %v1376_v8 = vld [vmem:[#allocation7 + $0x360] sm:$0xff]  ;;  %v920_v29 = vmul.f32 %v3945_v2, %v3655_v44 }
 0x122   :  { %1489 = vmatmul.f32.gmra.mxu1 %v3914_v35  ;;  %1600 = vmatpush.msrb.mxu3 %v1376_v8  ;;  %v1172_v20 = vmul.f32 0.01, %v1044_v63 }
 0x123   :  { %v905_v36 = vmul.f32 %v3853_v6, %v496_v40 }
 0x124   :  { %1430 = vmatmul.f32.gmra.mxu0 %v3916_v27  ;;  %757 = vmatmul.f32.gmra.mxu3 %v3567_v32  ;;  %v3934_v32 = vpop.f32.mrf.mxu0  ;;  %v3965_v45 = vsel %vm1108_vm15, %v1044_v63, %v1172_v20 }
 0x125   :  { %v1033_v58 = vadd.f32 %v969_v26, %v905_v36  ;;  %692 = vmatmul.f32.gmra.mxu2 %v3232_v43  ;;  %v984_v36 = vld [vmem:[%s5210_s5 + $0x120] sm:$0xff]  ;;  %v3960_v44 = vpop.f32.mrf.mxu1  ;;  %5239 = vst [vmem:[#allocation15_spill] sm:$0xff] %v3965_v45 }
 0x126   :  { %v1048_v48 = vadd.f32 %v984_v36, %v920_v29 }
 0x127   :  { %vm1097_vm13 = vcmp.gt.f32.partialorder %v1033_v58, 0.0  ;;  %v1161_v37 = vmul.f32 0.01, %v1033_v58  ;;  %v498_v31 = vpop.f32.mrf.mxu3 }
 0x128   :  { %v433_v1 = vpop.f32.mrf.mxu2  ;;  %vm1112_vm1 = vcmp.gt.f32.partialorder %v1048_v48, 0.0 }
 0x129   :  { %v499_v0 = vadd.f32 %v498_v31, %v433_v1  ;;  %v3936_v60 = vsel %vm1097_vm13, %v1033_v58, %v1161_v37  ;;  %v3967_v37 = vpop.permute.xlu1 %856  ;;  %v3234_v31 = vld [vmem:[#allocation3 + $0x80] sm:$0xff] }
 0x12a   :  { %1492 = vmatmul.f32.gmra.mxu1 %v3936_v60  ;;  %5240 = vst [vmem:[#allocation16_spill] sm:$0xff] %v3967_v37 }
 0x12b   :  { %v909_v54 = vmul.f32 %v3873_v47, %v499_v0  ;;  %v1342_v0 = vld [vmem:[#allocation7 + $0x250] sm:$0xff] }
 0x12c   :  { %1433 = vmatmul.f32.gmra.mxu0 %v3938_v3  ;;  %760 = vmatmul.f32.gmra.mxu3 %v3580_v49  ;;  %v977_v49 = vld [vmem:[%s5210_s5 + $0xe8] sm:$0xff]  ;;  %v3962_v34 = vpop.f32.mrf.mxu0 }
 0x12d   :  { %v1037_v9 = vadd.f32 %v973_v25, %v909_v54  ;;  %695 = vmatmul.f32.gmra.mxu2 %v3233_v11  ;;  %v1374_v25 = vld [vmem:[#allocation7 + $0x350] sm:$0xff]  ;;  %v1299_v54 = vld [vmem:[#allocation7 + $0xf8] sm:$0xff]  ;;  %v1176_v11 = vmul.f32 0.01, %v1048_v48 }
 0x12e   :  { %1536 = vmatpush.msrb.mxu2 %v1342_v0  ;;  %1601 = vmatpush.msrb.mxu3 %v1374_v25  ;;  %v3236_v25 = vld [vmem:[#allocation3 + $0x90] sm:$0xff] }
 0x12f   :  { %vm1101_vm14 = vcmp.gt.f32.partialorder %v1037_v9, 0.0  ;;  %v1165_v61 = vmul.f32 0.01, %v1037_v9  ;;  %v501_v26 = vpop.f32.mrf.mxu3  ;;  %1656 = vmatpush.msrb.mxu0 %v1299_v54  ;;  %v3237_v54 = vld [vmem:[#allocation3 + $0x98] sm:$0xff] }
 0x130   :  { %v436_v40 = vpop.f32.mrf.mxu2 }
 0x131   :  { %v502_v58 = vadd.f32 %v501_v26, %v436_v40  ;;  %v3954_v43 = vsel %vm1101_vm14, %v1037_v9, %v1165_v61  ;;  %v924_v9 = vmul.f32 %v3967_v37, %v3671_v28  ;;  %v988_v61 = vld [vmem:[%s5210_s5 + $0x140] sm:$0xff]  ;;  %1657 = vmatpush.msrb.mxu0 %v1297_v16  ;;  %v1295_v26 = vld [vmem:[#allocation7 + $0xd8] sm:$0xff]  ;;  %v1372_v16 = vld [vmem:[#allocation7 + $0x340] sm:$0xff] }
 0x132   :  { %5238 = vst [vmem:[#allocation14_spill] sm:$0xff] %v3954_v43  ;;  %1495 = vmatmul.f32.gmra.mxu1 %v3954_v43  ;;  %v981_v28 = vld [vmem:[%s5210_s5 + $0x108] sm:$0xff]  ;;  %1602 = vmatpush.msrb.mxu3 %v1372_v16  ;;  %v4005_v16 = vpop.permute.xlu0 %866  ;;  %v4026_v43 = vpop.permute.xlu1 %871 }
 0x133   :  { %v913_v59 = vmul.f32 %v3899_v7, %v502_v58  ;;  %v3982_v58 = vsel %vm1112_vm1, %v1048_v48, %v1176_v11  ;;  %1658 = vmatpush.msrb.mxu0 %v1295_v26  ;;  %v1291_v48 = vld [vmem:[#allocation7 + $0xb8] sm:$0xff]  ;;  %v1289_v26 = vld [vmem:[#allocation7 + $0xa8] sm:$0xff] }
 0x134   :  { %1436 = vmatmul.f32.gmra.mxu0 %v3965_v45  ;;  %763 = vmatmul.f32.gmra.mxu3 %v3235_v53  ;;  %5242 = vst [vmem:[#allocation18_spill] sm:$0xff] %v3982_v58  ;;  %v3989_v53 = vpop.f32.mrf.mxu0  ;;  %v1281_v45 = vld [vmem:[#allocation7 + $0x68] sm:$0xff] }
 0x135   :  { %v1041_v1 = vadd.f32 %v977_v49, %v913_v59  ;;  %698 = vmatmul.f32.gmra.mxu2 %v3234_v31  ;;  %v1052_v49 = vadd.f32 %v988_v61, %v924_v9  ;;  %v3984_v59 = vpop.permute.xlu2 %861  ;;  %v3987_v31 = vpop.f32.mrf.mxu1 }
 0x136   :  { %v928_v9 = vmul.f32 %v3984_v59, %v3690_v23  ;;  %v985_v23 = vld [vmem:[%s5210_s5 + $0x128] sm:$0xff] }
 0x137   :  { %vm1105_vm0 = vcmp.gt.f32.partialorder %v1041_v1, 0.0  ;;  %v1169_v63 = vmul.f32 0.01, %v1041_v1  ;;  %v504_v29 = vpop.f32.mrf.mxu3  ;;  %vm1116_vm3 = vcmp.gt.f32.partialorder %v1052_v49, 0.0 }
 0x138   :  { %v439_v8 = vpop.f32.mrf.mxu2 }
 0x139   :  { %v505_v20 = vadd.f32 %v504_v29, %v439_v8  ;;  %v3975_v40 = vsel %vm1105_vm0, %v1041_v1, %v1169_v63  ;;  %v1293_v1 = vld [vmem:[#allocation7 + $0xc8] sm:$0xff]  ;;  %v1340_v63 = vld [vmem:[#allocation7 + $0x240] sm:$0xff]  ;;  %v1180_v8 = vmul.f32 0.01, %v1052_v49 }
 0x13a   :  { %5241 = vst [vmem:[#allocation17_spill] sm:$0xff] %v3975_v40  ;;  %1498 = vmatmul.f32.gmra.mxu1 %v3975_v40  ;;  %1537 = vmatpush.msrb.mxu2 %v1340_v63 }
 0x13b   :  { %v917_v36 = vmul.f32 %v3923_v56, %v505_v20  ;;  %1659 = vmatpush.msrb.mxu0 %v1293_v1  ;;  %v992_v20 = vld [vmem:[%s5210_s5 + $0x160] sm:$0xff] }
 0x13c   :  { %1439 = vmatmul.f32.gmra.mxu0 %v3982_v58  ;;  %766 = vmatmul.f32.gmra.mxu3 %v3237_v54  ;;  %v4003_v54 = vsel %vm1116_vm3, %v1052_v49, %v1180_v8  ;;  %v1056_v63 = vadd.f32 %v992_v20, %v928_v9  ;;  %v1370_v58 = vld [vmem:[#allocation7 + $0x330] sm:$0xff]  ;;  %v1285_v49 = vld [vmem:[#allocation7 + $0x88] sm:$0xff]  ;;  %v1327_v8 = vld [vmem:[#allocation7 + $0x1d8] sm:$0xff]  ;;  %v932_v9 = vmul.f32 %v4005_v16, %v3709_v50 }
 0x13d   :  { %v1045_v0 = vadd.f32 %v981_v28, %v917_v36  ;;  %701 = vmatmul.f32.gmra.mxu2 %v3236_v25  ;;  %1660 = vmatpush.msrb.mxu0 %v1291_v48  ;;  %v1331_v25 = vld [vmem:[#allocation7 + $0x1f8] sm:$0xff]  ;;  %5244 = vst [vmem:[#allocation20_spill] sm:$0xff] %v4003_v54  ;;  %v1329_v48 = vld [vmem:[#allocation7 + $0x1e8] sm:$0xff]  ;;  %v4010_v20 = vpop.f32.mrf.mxu1 }
 0x13e   :  { %1721 = vmatpush.msrb.mxu1 %v1331_v25  ;;  %1603 = vmatpush.msrb.mxu3 %v1370_v58  ;;  %vm1120_vm5 = vcmp.gt.f32.partialorder %v1056_v63, 0.0  ;;  %v996_v58 = vld [vmem:[%s5210_s5 + $0x180] sm:$0xff] }
 0x13f   :  { %vm1109_vm2 = vcmp.gt.f32.partialorder %v1045_v0, 0.0  ;;  %v1173_v11 = vmul.f32 0.01, %v1045_v0  ;;  %v507_v61 = vpop.f32.mrf.mxu3  ;;  %1661 = vmatpush.msrb.mxu0 %v1289_v26  ;;  %v4012_v26 = vpop.f32.mrf.mxu0  ;;  %v1060_v40 = vadd.f32 %v996_v58, %v932_v9  ;;  %v936_v9 = vmul.f32 %v4026_v43, %v3726_v62 }
 0x140   :  { %v442_v29 = vpop.f32.mrf.mxu2  ;;  %1722 = vmatpush.msrb.mxu1 %v1329_v48 }
 0x141   :  { %v508_v28 = vadd.f32 %v507_v61, %v442_v29  ;;  %v3996_v36 = vsel %vm1109_vm2, %v1045_v0, %v1173_v11  ;;  %v1287_v0 = vld [vmem:[#allocation7 + $0x98] sm:$0xff]  ;;  %v3238_v29 = vld [vmem:[#allocation3 + $0xa0] sm:$0xff]  ;;  %v3239_v61 = vld [vmem:[#allocation3 + $0xa8] sm:$0xff]  ;;  %v1188_v58 = vmul.f32 0.01, %v1060_v40  ;;  %vm1124_vm7 = vcmp.gt.f32.partialorder %v1060_v40, 0.0 }
 0x142   :  { %5243 = vst [vmem:[#allocation19_spill] sm:$0xff] %v3996_v36  ;;  %1501 = vmatmul.f32.gmra.mxu1 %v3996_v36  ;;  %v1338_v36 = vld [vmem:[#allocation7 + $0x230] sm:$0xff]  ;;  %1662 = vmatpush.msrb.mxu0 %v1287_v0 }
 0x143   :  { %v921_v1 = vmul.f32 %v3945_v2, %v508_v28  ;;  %1538 = vmatpush.msrb.mxu2 %v1338_v36  ;;  %v1283_v36 = vld [vmem:[#allocation7 + $0x78] sm:$0xff]  ;;  %1723 = vmatpush.msrb.mxu1 %v1327_v8  ;;  %v3240_v8 = vld [vmem:[#allocation3 + $0xb0] sm:$0xff]  ;;  %v3243_v2 = vld [vmem:[#allocation3 + $0xc8] sm:$0xff] }
 0x144   :  { %1442 = vmatmul.f32.gmra.mxu0 %v4003_v54  ;;  %769 = vmatmul.f32.gmra.mxu3 %v3239_v61  ;;  %v989_v54 = vld [vmem:[%s5210_s5 + $0x148] sm:$0xff] }
 0x145   :  { %v1049_v11 = vadd.f32 %v985_v23, %v921_v1  ;;  %704 = vmatmul.f32.gmra.mxu2 %v3238_v29  ;;  %v1184_v23 = vmul.f32 0.01, %v1056_v63  ;;  %v1325_v29 = vld [vmem:[#allocation7 + $0x1c8] sm:$0xff]  ;;  %1663 = vmatpush.msrb.mxu0 %v1285_v49 }
 0x146   :  { %1724 = vmatpush.msrb.mxu1 %v1325_v29 }
 0x147   :  { %vm1113_vm4 = vcmp.gt.f32.partialorder %v1049_v11, 0.0  ;;  %v1177_v28 = vmul.f32 0.01, %v1049_v11  ;;  %v510_v1 = vpop.f32.mrf.mxu3  ;;  %v4024_v48 = vsel %vm1120_vm5, %v1056_v63, %v1184_v23  ;;  %1664 = vmatpush.msrb.mxu0 %v1283_v36  ;;  %v1321_v63 = vld [vmem:[#allocation7 + $0x1a8] sm:$0xff] }
 0x148   :  { %v445_v25 = vpop.f32.mrf.mxu2  ;;  %5246 = vst [vmem:[#allocation22_spill] sm:$0xff] %v4024_v48  ;;  %v1277_v36 = vld [vmem:[#allocation7 + $0x48] sm:$0xff] }
 0x149   :  { %v511_v61 = vadd.f32 %v510_v1, %v445_v25  ;;  %v4017_v50 = vsel %vm1113_vm4, %v1049_v11, %v1177_v28  ;;  %v1323_v11 = vld [vmem:[#allocation7 + $0x1b8] sm:$0xff]  ;;  %v1336_v25 = vld [vmem:[#allocation7 + $0x220] sm:$0xff]  ;;  %1665 = vmatpush.msrb.mxu0 %v1281_v45  ;;  %v4034_v45 = vpop.f32.mrf.mxu1 }
 0x14a   :  { %5245 = vst [vmem:[#allocation21_spill] sm:$0xff] %v4017_v50  ;;  %1504 = vmatmul.f32.gmra.mxu1 %v4017_v50  ;;  %v3241_v28 = vld [vmem:[#allocation3 + $0xb8] sm:$0xff]  ;;  %v1368_v1 = vld [vmem:[#allocation7 + $0x320] sm:$0xff]  ;;  %1539 = vmatpush.msrb.mxu2 %v1336_v25  ;;  %v1334_v25 = vld [vmem:[#allocation7 + $0x210] sm:$0xff] }
 0x14b   :  { %v925_v0 = vmul.f32 %v3967_v37, %v511_v61  ;;  %v1279_v50 = vld [vmem:[#allocation7 + $0x58] sm:$0xff]  ;;  %1604 = vmatpush.msrb.mxu3 %v1368_v1  ;;  %1725 = vmatpush.msrb.mxu1 %v1323_v11  ;;  %v1000_v61 = vld [vmem:[%s5210_s5 + $0x1a0] sm:$0xff] }
 0x14c   :  { %1445 = vmatmul.f32.gmra.mxu0 %v4024_v48  ;;  %772 = vmatmul.f32.gmra.mxu3 %v3241_v28  ;;  %v993_v11 = vld [vmem:[%s5210_s5 + $0x168] sm:$0xff]  ;;  %v1064_v48 = vadd.f32 %v1000_v61, %v936_v9 }
 0x14d   :  { %v1053_v49 = vadd.f32 %v989_v54, %v925_v0  ;;  %707 = vmatmul.f32.gmra.mxu2 %v3240_v8  ;;  %1666 = vmatpush.msrb.mxu0 %v1279_v50  ;;  %v1319_v0 = vld [vmem:[#allocation7 + $0x198] sm:$0xff]  ;;  %v4036_v8 = vpop.f32.mrf.mxu0  ;;  %v4045_v50 = vsel %vm1124_vm7, %v1060_v40, %v1188_v58 }
 0x14e   :  { %1726 = vmatpush.msrb.mxu1 %v1321_v63  ;;  %5248 = vst [vmem:[#allocation24_spill] sm:$0xff] %v4045_v50  ;;  %v1275_v37 = vld [vmem:[#allocation7 + $0x38] sm:$0xff]  ;;  %1540 = vmatpush.msrb.mxu2 %v1334_v25  ;;  %v1332_v63 = vld [vmem:[#allocation7 + $0x200] sm:$0xff]  ;;  %v1192_v58 = vmul.f32 0.01, %v1064_v48  ;;  %vm1128_vm9 = vcmp.gt.f32.partialorder %v1064_v48, 0.0 }
 0x14f   :  { %vm1117_vm6 = vcmp.gt.f32.partialorder %v1053_v49, 0.0  ;;  %v1181_v23 = vmul.f32 0.01, %v1053_v49  ;;  %v513_v29 = vpop.f32.mrf.mxu3  ;;  %1667 = vmatpush.msrb.mxu0 %v1277_v36  ;;  %v1273_v36 = vld [vmem:[#allocation7 + $0x28] sm:$0xff]  ;;  %v1271_v61 = vld [vmem:[#allocation7 + $0x18] sm:$0xff] }
 0x150   :  { %v448_v54 = vpop.f32.mrf.mxu2  ;;  %1727 = vmatpush.msrb.mxu1 %v1319_v0  ;;  %1541 = vmatpush.msrb.mxu2 %v1332_v63 }
 0x151   :  { %v514_v62 = vadd.f32 %v513_v29, %v448_v54  ;;  %v4038_v28 = vsel %vm1117_vm6, %v1053_v49, %v1181_v23  ;;  %v1317_v54 = vld [vmem:[#allocation7 + $0x188] sm:$0xff]  ;;  %v4047_v49 = vpop.permute.xlu2 %876  ;;  %v3242_v29 = vld [vmem:[#allocation3 + $0xc0] sm:$0xff]  ;;  %1668 = vmatpush.msrb.mxu0 %v1275_v37 }
 0x152   :  { %5247 = vst [vmem:[#allocation23_spill] sm:$0xff] %v4038_v28  ;;  %1507 = vmatmul.f32.gmra.mxu1 %v4038_v28  ;;  %v1366_v28 = vld [vmem:[#allocation7 + $0x310] sm:$0xff]  ;;  %v940_v40 = vmul.f32 %v4047_v49, %v3753_v21  ;;  %v1313_v37 = vld [vmem:[#allocation7 + $0x168] sm:$0xff]  ;;  %v997_v21 = vld [vmem:[%s5210_s5 + $0x188] sm:$0xff] }
 0x153   :  { %v929_v1 = vmul.f32 %v3984_v59, %v514_v62  ;;  %v1315_v62 = vld [vmem:[#allocation7 + $0x178] sm:$0xff]  ;;  %1728 = vmatpush.msrb.mxu1 %v1317_v54  ;;  %1605 = vmatpush.msrb.mxu3 %v1366_v28  ;;  %v4061_v28 = vpop.f32.mrf.mxu1 }
 0x154   :  { %1448 = vmatmul.f32.gmra.mxu0 %v4045_v50  ;;  %775 = vmatmul.f32.gmra.mxu3 %v3243_v2  ;;  %v1004_v2 = vld [vmem:[%s5210_s5 + $0x1c0] sm:$0xff]  ;;  %v1364_v50 = vld [vmem:[#allocation7 + $0x300] sm:$0xff] }
 0x155   :  { %v1057_v23 = vadd.f32 %v993_v11, %v929_v1  ;;  %710 = vmatmul.f32.gmra.mxu2 %v3242_v29  ;;  %1669 = vmatpush.msrb.mxu0 %v1273_v36  ;;  %v4063_v54 = vpop.f32.mrf.mxu0  ;;  %v4066_v29 = vsel %vm1128_vm9, %v1064_v48, %v1192_v58  ;;  %v1068_v36 = vadd.f32 %v1004_v2, %v940_v40 }
 0x156   :  { %1729 = vmatpush.msrb.mxu1 %v1315_v62  ;;  %5250 = vst [vmem:[#allocation26_spill] sm:$0xff] %v4066_v29  ;;  %v1269_v62 = vld [vmem:[#allocation7 + $0x8] sm:$0xff]  ;;  %1606 = vmatpush.msrb.mxu3 %v1364_v50 }
 0x157   :  { %vm1121_vm8 = vcmp.gt.f32.partialorder %v1057_v23, 0.0  ;;  %v1185_v9 = vmul.f32 0.01, %v1057_v23  ;;  %v516_v25 = vpop.f32.mrf.mxu3  ;;  %1670 = vmatpush.msrb.mxu0 %v1271_v61  ;;  %v3245_v61 = vld [vmem:[#allocation3 + $0xd8] sm:$0xff]  ;;  %v1196_v58 = vmul.f32 0.01, %v1068_v36 }
 0x158   :  { %v451_v0 = vpop.f32.mrf.mxu2  ;;  %1730 = vmatpush.msrb.mxu1 %v1313_v37  ;;  %vm1132_vm11 = vcmp.gt.f32.partialorder %v1068_v36, 0.0 }
 0x159   :  { %v517_v11 = vadd.f32 %v516_v25, %v451_v0  ;;  %v4055_v1 = vsel %vm1121_vm8, %v1057_v23, %v1185_v9  ;;  %v1311_v23 = vld [vmem:[#allocation7 + $0x158] sm:$0xff]  ;;  %v4068_v9 = vpop.permute.xlu0 %881  ;;  %v3244_v25 = vld [vmem:[#allocation3 + $0xd0] sm:$0xff]  ;;  %1671 = vmatpush.msrb.mxu0 %v1269_v62  ;;  %v611_v62 = vadd.f32 %v3881_v41, %v3819_v18  ;;  %v3246_v41 = vld [vmem:[#allocation3 + $0xe0] sm:$0xff] }
 0x15a   :  { %5249 = vst [vmem:[#allocation25_spill] sm:$0xff] %v4055_v1  ;;  %1510 = vmatmul.f32.gmra.mxu1 %v4055_v1  ;;  %v1309_v1 = vld [vmem:[#allocation7 + $0x148] sm:$0xff]  ;;  %v944_v48 = vmul.f32 %v4068_v9, %v3777_v15  ;;  %v1001_v15 = vld [vmem:[%s5210_s5 + $0x1a8] sm:$0xff] }
 0x15b   :  { %v933_v63 = vmul.f32 %v4005_v16, %v517_v11  ;;  %1731 = vmatpush.msrb.mxu1 %v1311_v23  ;;  %v1008_v11 = vld [vmem:[%s5210_s5 + $0x1e0] sm:$0xff]  ;;  %v4085_v23 = vsel %vm1132_vm11, %v1068_v36, %v1196_v58  ;;  %v886_v36 = vmul.f32 %v3728_v12, %v611_v62  ;;  %v1005_v62 = vld [vmem:[%s5210_s5 + $0x1c8] sm:$0xff] }
 0x15c   :  { %1451 = vmatmul.f32.gmra.mxu0 %v4066_v29  ;;  %778 = vmatmul.f32.gmra.mxu3 %v3245_v61  ;;  %v1072_v61 = vadd.f32 %v1008_v11, %v944_v48  ;;  %v1395_v29 = vld [vmem:[#allocation7 + $0x3f8] sm:$0xff]  ;;  %v950_v48 = vld [vmem:[%s5210_s5 + $0x10] sm:$0xff] }
 0x15d   :  { %v1061_v0 = vadd.f32 %v997_v21, %v933_v63  ;;  %713 = vmatmul.f32.gmra.mxu2 %v3244_v25  ;;  %1732 = vmatpush.msrb.mxu1 %v1309_v1  ;;  %v1307_v21 = vld [vmem:[#allocation7 + $0x138] sm:$0xff]  ;;  %v1305_v1 = vld [vmem:[#allocation7 + $0x128] sm:$0xff] }
 0x15e   :  { %v1200_v11 = vmul.f32 0.01, %v1072_v61  ;;  %1851 = vmatpush.msra.mxu3 %v1395_v29  ;;  %vm1136_vm13 = vcmp.gt.f32.partialorder %v1072_v61, 0.0 }
 0x15f   :  { %vm1125_vm10 = vcmp.gt.f32.partialorder %v1061_v0, 0.0  ;;  %v1189_v40 = vmul.f32 0.01, %v1061_v0  ;;  %v519_v37 = vpop.f32.mrf.mxu3  ;;  %1733 = vmatpush.msrb.mxu1 %v1307_v21 }
 0x160   :  { %v454_v2 = vpop.f32.mrf.mxu2 }
 0x161   :  { %v520_v63 = vadd.f32 %v519_v37, %v454_v2  ;;  %v4076_v25 = vsel %vm1125_vm10, %v1061_v0, %v1189_v40  ;;  %v4088_v0 = vpop.f32.mrf.mxu1  ;;  %v4090_v40 = vpop.f32.mrf.mxu0  ;;  %v3247_v2 = vld [vmem:[#allocation3 + $0xe8] sm:$0xff]  ;;  %v1303_v37 = vld [vmem:[#allocation7 + $0x118] sm:$0xff]  ;;  %1734 = vmatpush.msrb.mxu1 %v1305_v1  ;;  %v4105_v1 = vsel %vm1136_vm13, %v1072_v61, %v1200_v11  ;;  %v954_v61 = vld [vmem:[%s5210_s5 + $0x30] sm:$0xff] }
 0x162   :  { %5251 = vst [vmem:[#allocation27_spill] sm:$0xff] %v4076_v25  ;;  %1513 = vmatmul.f32.gmra.mxu1 %v4076_v25  ;;  %v1363_v25 = vld [vmem:[#allocation7 + $0x2f8] sm:$0xff] }
 0x163   :  { %v937_v50 = vmul.f32 %v4026_v43, %v520_v63  ;;  %1786 = vmatpush.msra.mxu2 %v1363_v25  ;;  %1735 = vmatpush.msrb.mxu1 %v1303_v37  ;;  %v614_v25 = vadd.f32 %v3910_v14, %v3850_v17  ;;  %5252 = vst [vmem:[#allocation28_spill] sm:$0xff] %v4105_v1  ;;  %v1393_v17 = vld [vmem:[#allocation7 + $0x3e8] sm:$0xff] }
 0x164   :  { %1454 = vmatmul.f32.gmra.mxu0 %v4085_v23  ;;  %781 = vmatmul.f32.gmra.mxu3 %v3247_v2  ;;  %v1014_v2 = vadd.f32 %v950_v48, %v886_v36  ;;  %v3249_v36 = vld [vmem:[#allocation3 + $0xf8] sm:$0xff]  ;;  %v1361_v48 = vld [vmem:[#allocation7 + $0x2e8] sm:$0xff] }
 0x165   :  { %v1065_v18 = vadd.f32 %v1001_v15, %v937_v50  ;;  %716 = vmatmul.f32.gmra.mxu2 %v3246_v41  ;;  %v1301_v15 = vld [vmem:[#allocation7 + $0x108] sm:$0xff]  ;;  %v890_v14 = vmul.f32 %v3755_v22, %v614_v25  ;;  %1852 = vmatpush.msra.mxu3 %v1393_v17 }
 0x166   :  { %1736 = vmatpush.msrb.mxu1 %v1301_v15  ;;  %1787 = vmatpush.msra.mxu2 %v1361_v48  ;;  %vm1078_vm15 = vcmp.gt.f32.partialorder %v1014_v2, 0.0 }
 0x167   :  { %vm1129_vm12 = vcmp.gt.f32.partialorder %v1065_v18, 0.0  ;;  %v1193_v58 = vmul.f32 0.01, %v1065_v18  ;;  %v522_v63 = vpop.f32.mrf.mxu3  ;;  %v1018_v25 = vadd.f32 %v954_v61, %v890_v14  ;;  %v1391_v14 = vld [vmem:[#allocation7 + $0x3d8] sm:$0xff] }
 0x168   :  { %v457_v21 = vpop.f32.mrf.mxu2  ;;  %1853 = vmatpush.msra.mxu3 %v1391_v14 }
 0x169   :  { %v523_v50 = vadd.f32 %v522_v63, %v457_v21  ;;  %v4096_v41 = vsel %vm1129_vm12, %v1065_v18, %v1193_v58  ;;  %v3248_v18 = vld [vmem:[#allocation3 + $0xf0] sm:$0xff]  ;;  %v1142_v58 = vmul.f32 0.01, %v1014_v2  ;;  %v4112_v11 = vpop.f32.mrf.mxu1  ;;  %v4114_v21 = vpop.f32.mrf.mxu0  ;;  %vm1082_vm1 = vcmp.gt.f32.partialorder %v1018_v25, 0.0 }
 0x16a   :  { %1516 = vmatmul.f32.gmra.mxu1 %v4096_v41 }
 0x16b   :  { %v941_v29 = vmul.f32 %v4047_v49, %v523_v50  ;;  %v4124_v48 = vsel %vm1078_vm15, %v1014_v2, %v1142_v58 }
 0x16c   :  { %1457 = vmatmul.f32.gmra.mxu0 %v4105_v1  ;;  %784 = vmatmul.f32.gmra.mxu3 %v3249_v36  ;;  %v1009_v36 = vld [vmem:[%s5210_s5 + $0x1e8] sm:$0xff]  ;;  %5253 = vst [vmem:[#allocation29_spill] sm:$0xff] %v4124_v48 }
 0x16d   :  { %v1069_v37 = vadd.f32 %v1005_v62, %v941_v29  ;;  %719 = vmatmul.f32.gmra.mxu2 %v3248_v18  ;;  %v617_v18 = vadd.f32 %v3932_v51, %v3883_v42  ;;  %v1146_v42 = vmul.f32 0.01, %v1018_v25  ;;  %v958_v51 = vld [vmem:[%s5210_s5 + $0x50] sm:$0xff] }
 0x16f   :  { %vm1133_vm14 = vcmp.gt.f32.partialorder %v1069_v37, 0.0  ;;  %v1197_v63 = vmul.f32 0.01, %v1069_v37  ;;  %v525_v50 = vpop.f32.mrf.mxu3  ;;  %v894_v61 = vmul.f32 %v3781_v55, %v617_v18 }
 0x170   :  { %v460_v15 = vpop.f32.mrf.mxu2 }
 0x171   :  { %v526_v62 = vadd.f32 %v525_v50, %v460_v15  ;;  %v4116_v29 = vsel %vm1133_vm14, %v1069_v37, %v1197_v63  ;;  %v1359_v37 = vld [vmem:[#allocation7 + $0x2d8] sm:$0xff]  ;;  %v4135_v15 = vpop.f32.mrf.mxu0  ;;  %v1022_v18 = vadd.f32 %v958_v51, %v894_v61  ;;  %v1389_v61 = vld [vmem:[#allocation7 + $0x3c8] sm:$0xff] }
 0x172   :  { %1519 = vmatmul.f32.gmra.mxu1 %v4116_v29  ;;  %1788 = vmatpush.msra.mxu2 %v1359_v37  ;;  %v4145_v37 = vsel %vm1082_vm1, %v1018_v25, %v1146_v42 }
 0x173   :  { %v945_v17 = vmul.f32 %v4068_v9, %v526_v62  ;;  %1854 = vmatpush.msra.mxu3 %v1389_v61  ;;  %vm1086_vm3 = vcmp.gt.f32.partialorder %v1022_v18, 0.0 }
 0x174   :  { %1672 = vmatmul.f32.vlgmr.msrb.gmra.mxu0 %v3779_v30  ;;  %v4133_v30 = vpop.f32.mrf.mxu1 }
 0x175   :  { %v1073_v1 = vadd.f32 %v1009_v36, %v945_v17  ;;  %1542 = vmatmul.f32.vlgmr.msrb.gmra.mxu2 %v4124_v48  ;;  %v620_v36 = vadd.f32 %v3960_v44, %v3912_v19  ;;  %v951_v17 = vld [vmem:[%s5210_s5 + $0x18] sm:$0xff]  ;;  %v1150_v19 = vmul.f32 0.01, %v1022_v18  ;;  %v962_v44 = vld [vmem:[%s5210_s5 + $0x70] sm:$0xff] }
 0x177   :  { %vm1137_vm0 = vcmp.gt.f32.partialorder %v1073_v1, 0.0  ;;  %v1201_v2 = vmul.f32 0.01, %v1073_v1  ;;  %v740_v63 = vpop.f32.mrf.mxu3  ;;  %v898_v51 = vmul.f32 %v3806_v5, %v620_v36  ;;  %v4163_v36 = vsel %vm1086_vm3, %v1022_v18, %v1150_v19 }
 0x178   :  { %v675_v58 = vpop.f32.mrf.mxu2 }
 0x179   :  { %v741_v50 = vadd.f32 %v740_v63, %v675_v58  ;;  %v4137_v62 = vsel %vm1137_vm0, %v1073_v1, %v1201_v2  ;;  %v1357_v1 = vld [vmem:[#allocation7 + $0x2c8] sm:$0xff]  ;;  %v1026_v58 = vadd.f32 %v962_v44, %v898_v51  ;;  %v623_v63 = vadd.f32 %v3987_v31, %v3934_v32  ;;  %v1355_v32 = vld [vmem:[#allocation7 + $0x2b8] sm:$0xff] }
 0x17a   :  { %1522 = vmatmul.f32.gmra.mxu1 %v4137_v62  ;;  %1789 = vmatpush.msra.mxu2 %v1357_v1  ;;  %v1387_v31 = vld [vmem:[#allocation7 + $0x3b8] sm:$0xff] }
 0x17b   :  { %v887_v14 = vmul.f32 %v3728_v12, %v741_v50  ;;  %v955_v50 = vld [vmem:[%s5210_s5 + $0x38] sm:$0xff]  ;;  %v902_v61 = vmul.f32 %v3825_v33, %v623_v63  ;;  %v1154_v51 = vmul.f32 0.01, %v1026_v58  ;;  %1855 = vmatpush.msra.mxu3 %v1387_v31  ;;  %vm1090_vm5 = vcmp.gt.f32.partialorder %v1026_v58, 0.0 }
 0x17c   :  { %1675 = vmatmul.f32.gmra.mxu0 %v3800_v4  ;;  %1790 = vmatpush.msra.mxu2 %v1355_v32 }
 0x17d   :  { %v1015_v48 = vadd.f32 %v951_v17, %v887_v14  ;;  %1545 = vmatmul.f32.gmra.mxu2 %v4145_v37  ;;  %v4165_v17 = vpop.f32.mrf.mxu1  ;;  %v4167_v14 = vpop.f32.mrf.mxu0 }
 0x17f   :  { %vm1079_vm2 = vcmp.gt.f32.partialorder %v1015_v48, 0.0  ;;  %v1143_v25 = vmul.f32 0.01, %v1015_v48  ;;  %v743_v42 = vpop.f32.mrf.mxu3 }
 0x180   :  { %v678_v12 = vpop.f32.mrf.mxu2 }
 0x181   :  { %v744_v4 = vadd.f32 %v743_v42, %v678_v12  ;;  %v4154_v2 = vsel %vm1079_vm2, %v1015_v48, %v1143_v25  ;;  %v626_v12 = vadd.f32 %v4010_v20, %v3962_v34  ;;  %v959_v42 = vld [vmem:[%s5210_s5 + $0x58] sm:$0xff] }
 0x182   :  { %1607 = vmatmul.f32.vlgmr.msrb.gmra.mxu3 %v4154_v2  ;;  %1737 = vmatmul.f32.vlgmr.msrb.gmra.mxu1 %v3821_v39  ;;  %v966_v39 = vld [vmem:[%s5210_s5 + $0x90] sm:$0xff]  ;;  %v1353_v34 = vld [vmem:[#allocation7 + $0x2a8] sm:$0xff] }
 0x183   :  { %v891_v48 = vmul.f32 %v3755_v22, %v744_v4  ;;  %v1030_v25 = vadd.f32 %v966_v39, %v902_v61  ;;  %v4185_v4 = vsel %vm1090_vm5, %v1026_v58, %v1154_v51  ;;  %v1385_v20 = vld [vmem:[#allocation7 + $0x3a8] sm:$0xff]  ;;  %v906_v32 = vmul.f32 %v3853_v6, %v626_v12  ;;  %1791 = vmatpush.msra.mxu2 %v1353_v34 }
 0x184   :  { %1678 = vmatmul.f32.gmra.mxu0 %v3823_v10  ;;  %1856 = vmatpush.msra.mxu3 %v1385_v20 }
 0x185   :  { %v1019_v1 = vadd.f32 %v955_v50, %v891_v48  ;;  %1548 = vmatmul.f32.gmra.mxu2 %v4163_v36  ;;  %v4189_v50 = vpop.f32.mrf.mxu1  ;;  %v4191_v48 = vpop.f32.mrf.mxu0  ;;  %v1158_v31 = vmul.f32 0.01, %v1030_v25  ;;  %vm1094_vm7 = vcmp.gt.f32.partialorder %v1030_v25, 0.0 }
 0x187   :  { %vm1083_vm4 = vcmp.gt.f32.partialorder %v1019_v1, 0.0  ;;  %v1147_v18 = vmul.f32 0.01, %v1019_v1  ;;  %v746_v19 = vpop.f32.mrf.mxu3 }
 0x188   :  { %v681_v22 = vpop.f32.mrf.mxu2 }
 0x189   :  { %v747_v10 = vadd.f32 %v746_v19, %v681_v22  ;;  %v4176_v44 = vsel %vm1083_vm4, %v1019_v1, %v1147_v18  ;;  %v963_v18 = vld [vmem:[%s5210_s5 + $0x78] sm:$0xff]  ;;  %v4205_v22 = vsel %vm1094_vm7, %v1030_v25, %v1158_v31 }
 0x18a   :  { %1610 = vmatmul.f32.gmra.mxu3 %v4176_v44  ;;  %1740 = vmatmul.f32.gmra.mxu1 %v3842_v46  ;;  %v967_v31 = vld [vmem:[%s5210_s5 + $0x98] sm:$0xff] }
 0x18b   :  { %v895_v63 = vmul.f32 %v3781_v55, %v747_v10  ;;  %v970_v55 = vld [vmem:[%s5210_s5 + $0xb0] sm:$0xff]  ;;  %v629_v10 = vadd.f32 %v4034_v45, %v3989_v53 }
 0x18c   :  { %1681 = vmatmul.f32.gmra.mxu0 %v3844_v13  ;;  %v1034_v39 = vadd.f32 %v970_v55, %v906_v32 }
 0x18d   :  { %v1023_v1 = vadd.f32 %v959_v42, %v895_v63  ;;  %1551 = vmatmul.f32.gmra.mxu2 %v4185_v4  ;;  %v1351_v42 = vld [vmem:[#allocation7 + $0x298] sm:$0xff]  ;;  %v4212_v34 = vpop.f32.mrf.mxu1 }
 0x18e   :  { %v1383_v63 = vld [vmem:[#allocation7 + $0x398] sm:$0xff]  ;;  %1792 = vmatpush.msra.mxu2 %v1351_v42  ;;  %vm1098_vm9 = vcmp.gt.f32.partialorder %v1034_v39, 0.0 }
 0x18f   :  { %vm1087_vm6 = vcmp.gt.f32.partialorder %v1023_v1, 0.0  ;;  %v1151_v46 = vmul.f32 0.01, %v1023_v1  ;;  %v749_v58 = vpop.f32.mrf.mxu3  ;;  %1857 = vmatpush.msra.mxu3 %v1383_v63 }
 0x190   :  { %v684_v13 = vpop.f32.mrf.mxu2 }
 0x191   :  { %v750_v61 = vadd.f32 %v749_v58, %v684_v13  ;;  %v4198_v51 = vsel %vm1087_vm6, %v1023_v1, %v1151_v46  ;;  %v1162_v1 = vmul.f32 0.01, %v1034_v39  ;;  %v632_v58 = vadd.f32 %v4061_v28, %v4012_v26  ;;  %v978_v26 = vld [vmem:[%s5210_s5 + $0xf0] sm:$0xff] }
 0x192   :  { %1613 = vmatmul.f32.gmra.mxu3 %v4198_v51  ;;  %1743 = vmatmul.f32.gmra.mxu1 %v3865_v24  ;;  %v4214_v24 = vpop.f32.mrf.mxu0 }
 0x193   :  { %v899_v19 = vmul.f32 %v3806_v5, %v750_v61  ;;  %v910_v5 = vmul.f32 %v3873_v47, %v629_v10  ;;  %v4227_v55 = vsel %vm1098_vm9, %v1034_v39, %v1162_v1  ;;  %v971_v1 = vld [vmem:[%s5210_s5 + $0xb8] sm:$0xff] }
 0x194   :  { %1684 = vmatmul.f32.gmra.mxu0 %v3867_v38  ;;  %v974_v38 = vld [vmem:[%s5210_s5 + $0xd0] sm:$0xff] }
 0x195   :  { %v1027_v12 = vadd.f32 %v963_v18, %v899_v19  ;;  %1554 = vmatmul.f32.gmra.mxu2 %v4205_v22  ;;  %v1038_v13 = vadd.f32 %v974_v38, %v910_v5  ;;  %v1349_v18 = vld [vmem:[#allocation7 + $0x288] sm:$0xff]  ;;  %v4238_v28 = vpop.f32.mrf.mxu1 }
 0x196   :  { %v1381_v19 = vld [vmem:[#allocation7 + $0x388] sm:$0xff]  ;;  %1793 = vmatpush.msra.mxu2 %v1349_v18 }
 0x197   :  { %vm1091_vm8 = vcmp.gt.f32.partialorder %v1027_v12, 0.0  ;;  %v1155_v25 = vmul.f32 0.01, %v1027_v12  ;;  %v752_v45 = vpop.f32.mrf.mxu3  ;;  %1858 = vmatpush.msra.mxu3 %v1381_v19  ;;  %vm1102_vm11 = vcmp.gt.f32.partialorder %v1038_v13, 0.0 }
 0x198   :  { %v687_v53 = vpop.f32.mrf.mxu2 }
 0x199   :  { %v753_v20 = vadd.f32 %v752_v45, %v687_v53  ;;  %v4220_v32 = vsel %vm1091_vm8, %v1027_v12, %v1155_v25  ;;  %v635_v53 = vadd.f32 %v4088_v0, %v4036_v8  ;;  %v982_v8 = vld [vmem:[%s5210_s5 + $0x110] sm:$0xff] }
 0x19a   :  { %1616 = vmatmul.f32.gmra.mxu3 %v4220_v32  ;;  %1746 = vmatmul.f32.gmra.mxu1 %v3890_v57  ;;  %v914_v57 = vmul.f32 %v3899_v7, %v632_v58 }
 0x19b   :  { %v903_v46 = vmul.f32 %v3825_v33, %v753_v20  ;;  %v1166_v33 = vmul.f32 0.01, %v1038_v13  ;;  %v1347_v20 = vld [vmem:[#allocation7 + $0x278] sm:$0xff] }
 0x19c   :  { %1687 = vmatmul.f32.gmra.mxu0 %v3892_v52  ;;  %v4240_v52 = vpop.f32.mrf.mxu0  ;;  %v1042_v5 = vadd.f32 %v978_v26, %v914_v57  ;;  %1794 = vmatpush.msra.mxu2 %v1347_v20  ;;  %v1345_v26 = vld [vmem:[#allocation7 + $0x268] sm:$0xff] }
 0x19d   :  { %v1031_v61 = vadd.f32 %v967_v31, %v903_v46  ;;  %1557 = vmatmul.f32.gmra.mxu2 %v4227_v55  ;;  %v4252_v45 = vsel %vm1102_vm11, %v1038_v13, %v1166_v33  ;;  %v1379_v31 = vld [vmem:[#allocation7 + $0x378] sm:$0xff]  ;;  %v975_v13 = vld [vmem:[%s5210_s5 + $0xd8] sm:$0xff]  ;;  %v4267_v18 = vpop.f32.mrf.mxu1 }
 0x19e   :  { %1859 = vmatpush.msra.mxu3 %v1379_v31  ;;  %vm1106_vm13 = vcmp.gt.f32.partialorder %v1042_v5, 0.0  ;;  %1795 = vmatpush.msra.mxu2 %v1345_v26  ;;  %v5255_v20 = vld [vmem:[#allocation14_spill] sm:$0xff] }
 0x19f   :  { %vm1095_vm10 = vcmp.gt.f32.partialorder %v1031_v61, 0.0  ;;  %v1159_v10 = vmul.f32 0.01, %v1031_v61  ;;  %v755_v12 = vpop.f32.mrf.mxu3 }
 0x1a0   :  { %v690_v39 = vpop.f32.mrf.mxu2 }
 0x1a1   :  { %v756_v42 = vadd.f32 %v755_v12, %v690_v39  ;;  %v4242_v63 = vsel %vm1095_vm10, %v1031_v61, %v1159_v10  ;;  %v1170_v61 = vmul.f32 0.01, %v1042_v5  ;;  %v638_v39 = vadd.f32 %v4112_v11, %v4063_v54  ;;  %v986_v54 = vld [vmem:[%s5210_s5 + $0x130] sm:$0xff] }
 0x1a2   :  { %1619 = vmatmul.f32.gmra.mxu3 %v4242_v63  ;;  %1749 = vmatmul.f32.gmra.mxu1 %v3914_v35  ;;  %v918_v35 = vmul.f32 %v3923_v56, %v635_v53 }
 0x1a3   :  { %v907_v25 = vmul.f32 %v3853_v6, %v756_v42  ;;  %v4274_v12 = vsel %vm1106_vm13, %v1042_v5, %v1170_v61  ;;  %v1377_v42 = vld [vmem:[#allocation7 + $0x368] sm:$0xff]  ;;  %v5256_v61 = vld [vmem:[#allocation15_spill] sm:$0xff] }
 0x1a4   :  { %1690 = vmatmul.f32.gmra.mxu0 %v3916_v27  ;;  %v4269_v19 = vpop.f32.mrf.mxu0  ;;  %v1046_v57 = vadd.f32 %v982_v8, %v918_v35  ;;  %1860 = vmatpush.msra.mxu3 %v1377_v42  ;;  %v979_v5 = vld [vmem:[%s5210_s5 + $0xf8] sm:$0xff] }
 0x1a5   :  { %v1035_v38 = vadd.f32 %v971_v1, %v907_v25  ;;  %1560 = vmatmul.f32.gmra.mxu2 %v4252_v45  ;;  %v5254_v1 = vld [vmem:[#allocation13_spill] sm:$0xff]  ;;  %v4289_v31 = vpop.f32.mrf.mxu1 }
 0x1a6   :  { %v922_v25 = vmul.f32 %v5254_v1, %v638_v39  ;;  %vm1110_vm15 = vcmp.gt.f32.partialorder %v1046_v57, 0.0 }
 0x1a7   :  { %vm1099_vm12 = vcmp.gt.f32.partialorder %v1035_v38, 0.0  ;;  %v1163_v46 = vmul.f32 0.01, %v1035_v38  ;;  %v758_v58 = vpop.f32.mrf.mxu3 }
 0x1a8   :  { %v693_v6 = vpop.f32.mrf.mxu2  ;;  %v1050_v35 = vadd.f32 %v986_v54, %v922_v25  ;;  %v983_v25 = vld [vmem:[%s5210_s5 + $0x118] sm:$0xff]  ;;  %v644_v54 = vadd.f32 %v4165_v17, %v4114_v21 }
 0x1a9   :  { %v759_v0 = vadd.f32 %v758_v58, %v693_v6  ;;  %v4260_v27 = vsel %vm1099_vm12, %v1035_v38, %v1163_v46  ;;  %v1174_v38 = vmul.f32 0.01, %v1046_v57  ;;  %v641_v6 = vadd.f32 %v4133_v30, %v4090_v40  ;;  %v990_v30 = vld [vmem:[%s5210_s5 + $0x150] sm:$0xff] }
 0x1aa   :  { %1622 = vmatmul.f32.gmra.mxu3 %v4260_v27  ;;  %1752 = vmatmul.f32.gmra.mxu1 %v3936_v60  ;;  %v1178_v40 = vmul.f32 0.01, %v1050_v35  ;;  %vm1114_vm1 = vcmp.gt.f32.partialorder %v1050_v35, 0.0 }
 0x1ab   :  { %v911_v10 = vmul.f32 %v3873_v47, %v759_v0  ;;  %v4294_v58 = vsel %vm1110_vm15, %v1046_v57, %v1174_v38 }
 0x1ac   :  { %1693 = vmatmul.f32.gmra.mxu0 %v3938_v3  ;;  %v4297_v8 = vpop.f32.mrf.mxu0 }
 0x1ad   :  { %v1039_v33 = vadd.f32 %v975_v13, %v911_v10  ;;  %1563 = vmatmul.f32.gmra.mxu2 %v4274_v12  ;;  %v1343_v13 = vld [vmem:[#allocation7 + $0x258] sm:$0xff] }
 0x1ae   :  { %v1375_v10 = vld [vmem:[#allocation7 + $0x358] sm:$0xff]  ;;  %1796 = vmatpush.msra.mxu2 %v1343_v13  ;;  %v930_v13 = vmul.f32 %v3984_v59, %v644_v54 }
 0x1af   :  { %vm1103_vm14 = vcmp.gt.f32.partialorder %v1039_v33, 0.0  ;;  %v1167_v60 = vmul.f32 0.01, %v1039_v33  ;;  %v761_v53 = vpop.f32.mrf.mxu3  ;;  %1861 = vmatpush.msra.mxu3 %v1375_v10  ;;  %v994_v10 = vld [vmem:[%s5210_s5 + $0x170] sm:$0xff]  ;;  %v1339_v54 = vld [vmem:[#allocation7 + $0x238] sm:$0xff] }
 0x1b0   :  { %v696_v47 = vpop.f32.mrf.mxu2 }
 0x1b1   :  { %v762_v11 = vadd.f32 %v761_v53, %v696_v47  ;;  %v4282_v3 = vsel %vm1103_vm14, %v1039_v33, %v1167_v60  ;;  %v5258_v47 = vld [vmem:[#allocation17_spill] sm:$0xff] }
 0x1b2   :  { %1625 = vmatmul.f32.gmra.mxu3 %v4282_v3  ;;  %1755 = vmatmul.f32.gmra.mxu1 %v5255_v20  ;;  %v4317_v20 = vpop.f32.mrf.mxu1 }
 0x1b3   :  { %v915_v46 = vmul.f32 %v3899_v7, %v762_v11  ;;  %v5257_v7 = vld [vmem:[#allocation16_spill] sm:$0xff]  ;;  %v4314_v11 = vsel %vm1114_vm1, %v1050_v35, %v1178_v40 }
 0x1b4   :  { %1696 = vmatmul.f32.gmra.mxu0 %v5256_v61  ;;  %v926_v33 = vmul.f32 %v5257_v7, %v641_v6  ;;  %v1341_v6 = vld [vmem:[#allocation7 + $0x248] sm:$0xff] }
 0x1b5   :  { %v1043_v0 = vadd.f32 %v979_v5, %v915_v46  ;;  %1566 = vmatmul.f32.gmra.mxu2 %v4294_v58  ;;  %v5259_v5 = vld [vmem:[#allocation18_spill] sm:$0xff] }
 0x1b6   :  { %v1054_v38 = vadd.f32 %v990_v30, %v926_v33  ;;  %v1373_v61 = vld [vmem:[#allocation7 + $0x348] sm:$0xff]  ;;  %1797 = vmatpush.msra.mxu2 %v1341_v6  ;;  %v1058_v30 = vadd.f32 %v994_v10, %v930_v13 }
 0x1b7   :  { %vm1107_vm0 = vcmp.gt.f32.partialorder %v1043_v0, 0.0  ;;  %v1171_v39 = vmul.f32 0.01, %v1043_v0  ;;  %v764_v42 = vpop.f32.mrf.mxu3  ;;  %1862 = vmatpush.msra.mxu3 %v1373_v61 }
 0x1b8   :  { %v699_v26 = vpop.f32.mrf.mxu2  ;;  %v1182_v35 = vmul.f32 0.01, %v1054_v38  ;;  %vm1118_vm3 = vcmp.gt.f32.partialorder %v1054_v38, 0.0  ;;  %1798 = vmatpush.msra.mxu2 %v1339_v54  ;;  %vm1122_vm5 = vcmp.gt.f32.partialorder %v1058_v30, 0.0 }
 0x1b9   :  { %v765_v57 = vadd.f32 %v764_v42, %v699_v26  ;;  %v4304_v60 = vsel %vm1107_vm0, %v1043_v0, %v1171_v39  ;;  %v4320_v0 = vpop.f32.mrf.mxu0  ;;  %v987_v26 = vld [vmem:[%s5210_s5 + $0x138] sm:$0xff]  ;;  %v5260_v42 = vld [vmem:[#allocation19_spill] sm:$0xff] }
 0x1ba   :  { %1628 = vmatmul.f32.gmra.mxu3 %v4304_v60  ;;  %1758 = vmatmul.f32.gmra.mxu1 %v5258_v47  ;;  %v5261_v47 = vld [vmem:[#allocation20_spill] sm:$0xff] }
 0x1bb   :  { %v919_v53 = vmul.f32 %v3923_v56, %v765_v57  ;;  %v647_v57 = vadd.f32 %v4189_v50, %v4135_v15  ;;  %v1186_v15 = vmul.f32 0.01, %v1058_v30  ;;  %v998_v50 = vld [vmem:[%s5210_s5 + $0x190] sm:$0xff] }
 0x1bc   :  { %1699 = vmatmul.f32.gmra.mxu0 %v5259_v5  ;;  %v1371_v5 = vld [vmem:[#allocation7 + $0x338] sm:$0xff] }
 0x1bd   :  { %v1047_v46 = vadd.f32 %v983_v25, %v919_v53  ;;  %1569 = vmatmul.f32.gmra.mxu2 %v4314_v11  ;;  %v4336_v25 = vsel %vm1118_vm3, %v1054_v38, %v1182_v35  ;;  %1863 = vmatpush.msra.mxu3 %v1371_v5  ;;  %v5262_v35 = vld [vmem:[#allocation21_spill] sm:$0xff] }
 0x1bf   :  { %vm1111_vm2 = vcmp.gt.f32.partialorder %v1047_v46, 0.0  ;;  %v1175_v56 = vmul.f32 0.01, %v1047_v46  ;;  %v767_v17 = vpop.f32.mrf.mxu3 }
 0x1c0   :  { %v702_v21 = vpop.f32.mrf.mxu2 }
 0x1c1   :  { %v768_v39 = vadd.f32 %v767_v17, %v702_v21  ;;  %v4326_v33 = vsel %vm1111_vm2, %v1047_v46, %v1175_v56  ;;  %v4340_v46 = vpop.f32.mrf.mxu1  ;;  %v4346_v38 = vpop.f32.mrf.mxu0  ;;  %v991_v17 = vld [vmem:[%s5210_s5 + $0x158] sm:$0xff] }
 0x1c2   :  { %1631 = vmatmul.f32.gmra.mxu3 %v4326_v33  ;;  %1761 = vmatmul.f32.gmra.mxu1 %v5260_v42  ;;  %v4358_v42 = vsel %vm1122_vm5, %v1058_v30, %v1186_v15  ;;  %v1335_v15 = vld [vmem:[#allocation7 + $0x218] sm:$0xff] }
 0x1c3   :  { %v923_v40 = vmul.f32 %v5254_v1, %v768_v39  ;;  %v934_v1 = vmul.f32 %v4005_v16, %v647_v57 }
 0x1c4   :  { %1702 = vmatmul.f32.gmra.mxu0 %v5261_v47  ;;  %v1337_v47 = vld [vmem:[#allocation7 + $0x228] sm:$0xff] }
 0x1c5   :  { %v1051_v53 = vadd.f32 %v987_v26, %v923_v40  ;;  %1572 = vmatmul.f32.gmra.mxu2 %v4336_v25  ;;  %v1062_v39 = vadd.f32 %v998_v50, %v934_v1  ;;  %v650_v26 = vadd.f32 %v4212_v34, %v4167_v14  ;;  %v5263_v40 = vld [vmem:[#allocation22_spill] sm:$0xff]  ;;  %v2218_v50 = vld [vmem:[%s5214_s9 + $0x70] sm:$0xff] }
 0x1c6   :  { %1799 = vmatpush.msra.mxu2 %v1337_v47  ;;  %v653_v47 = vadd.f32 %v4238_v28, %v4191_v48  ;;  %v2215_v48 = vld [vmem:[%s5214_s9 + $0x58] sm:$0xff] }
 0x1c7   :  { %vm1115_vm4 = vcmp.gt.f32.partialorder %v1051_v53, 0.0  ;;  %v1179_v6 = vmul.f32 0.01, %v1051_v53  ;;  %v770_v56 = vpop.f32.mrf.mxu3  ;;  %v938_v5 = vmul.f32 %v4026_v43, %v650_v26  ;;  %v1190_v30 = vmul.f32 0.01, %v1062_v39  ;;  %v1333_v26 = vld [vmem:[#allocation7 + $0x208] sm:$0xff] }
 0x1c8   :  { %v705_v61 = vpop.f32.mrf.mxu2  ;;  %vm1126_vm7 = vcmp.gt.f32.partialorder %v1062_v39, 0.0  ;;  %1800 = vmatpush.msra.mxu2 %v1335_v15  ;;  %v942_v28 = vmul.f32 %v4047_v49, %v653_v47 }
 0x1c9   :  { %v771_v13 = vadd.f32 %v770_v56, %v705_v61  ;;  %v4348_v21 = vsel %vm1115_vm4, %v1051_v53, %v1179_v6  ;;  %v1369_v53 = vld [vmem:[#allocation7 + $0x328] sm:$0xff]  ;;  %v1002_v6 = vld [vmem:[%s5210_s5 + $0x1b0] sm:$0xff]  ;;  %v4369_v1 = vpop.f32.mrf.mxu1 }
 0x1ca   :  { %1634 = vmatmul.f32.gmra.mxu3 %v4348_v21  ;;  %1764 = vmatmul.f32.gmra.mxu1 %v5262_v35  ;;  %v4381_v35 = vpop.f32.mrf.mxu0 }
 0x1cb   :  { %v927_v10 = vmul.f32 %v5257_v7, %v771_v13  ;;  %1864 = vmatpush.msra.mxu3 %v1369_v53  ;;  %v2219_v7 = vld [vmem:[%s5214_s9 + $0x78] sm:$0xff]  ;;  %v4389_v53 = vsel %vm1126_vm7, %v1062_v39, %v1190_v30  ;;  %1801 = vmatpush.msra.mxu2 %v1333_v26  ;;  %v2213_v26 = vld [vmem:[%s5214_s9 + $0x48] sm:$0xff] }
 0x1cc   :  { %1705 = vmatmul.f32.gmra.mxu0 %v5263_v40  ;;  %v995_v13 = vld [vmem:[%s5210_s5 + $0x178] sm:$0xff]  ;;  %v2217_v40 = vld [vmem:[%s5214_s9 + $0x68] sm:$0xff] }
 0x1cd   :  { %v1055_v57 = vadd.f32 %v991_v17, %v927_v10  ;;  %1575 = vmatmul.f32.gmra.mxu2 %v4358_v42  ;;  %2236 = vmatpush.msra.mxu0 %v2219_v7  ;;  %v5264_v17 = vld [vmem:[#allocation23_spill] sm:$0xff] }
 0x1cf   :  { %vm1119_vm6 = vcmp.gt.f32.partialorder %v1055_v57, 0.0  ;;  %v1183_v54 = vmul.f32 0.01, %v1055_v57  ;;  %v773_v34 = vpop.f32.mrf.mxu3  ;;  %2237 = vmatpush.msra.mxu0 %v2218_v50  ;;  %v2214_v50 = vld [vmem:[%s5214_s9 + $0x50] sm:$0xff] }
 0x1d0   :  { %v708_v14 = vpop.f32.mrf.mxu2 }
 0x1d1   :  { %v774_v61 = vadd.f32 %v773_v34, %v708_v14  ;;  %v4371_v56 = vsel %vm1119_vm6, %v1055_v57, %v1183_v54  ;;  %v1066_v57 = vadd.f32 %v1002_v6, %v938_v5  ;;  %v5265_v54 = vld [vmem:[#allocation24_spill] sm:$0xff]  ;;  %2238 = vmatpush.msra.mxu0 %v2217_v40  ;;  %v1006_v6 = vld [vmem:[%s5210_s5 + $0x1d0] sm:$0xff]  ;;  %v4416_v40 = vpop.f32.mrf.mxu1 }
 0x1d2   :  { %1637 = vmatmul.f32.gmra.mxu3 %v4371_v56  ;;  %1767 = vmatmul.f32.gmra.mxu1 %v5264_v17  ;;  %v1367_v14 = vld [vmem:[#allocation7 + $0x318] sm:$0xff]  ;;  %v5266_v17 = vld [vmem:[#allocation25_spill] sm:$0xff] }
 0x1d3   :  { %v931_v10 = vmul.f32 %v3984_v59, %v774_v61  ;;  %v2216_v59 = vld [vmem:[%s5214_s9 + $0x60] sm:$0xff]  ;;  %1865 = vmatpush.msra.mxu3 %v1367_v14  ;;  %v1194_v30 = vmul.f32 0.01, %v1066_v57  ;;  %vm1130_vm9 = vcmp.gt.f32.partialorder %v1066_v57, 0.0 }
 0x1d4   :  { %1708 = vmatmul.f32.gmra.mxu0 %v5265_v54  ;;  %v1070_v54 = vadd.f32 %v1006_v6, %v942_v28 }
 0x1d5   :  { %v1059_v7 = vadd.f32 %v995_v13, %v931_v10  ;;  %1578 = vmatmul.f32.gmra.mxu2 %v4389_v53  ;;  %2239 = vmatpush.msra.mxu0 %v2216_v59  ;;  %v999_v13 = vld [vmem:[%s5210_s5 + $0x198] sm:$0xff]  ;;  %v4421_v14 = vsel %vm1130_vm9, %v1066_v57, %v1194_v30  ;;  %v1010_v30 = vld [vmem:[%s5210_s5 + $0x1f0] sm:$0xff] }
 0x1d6   :  { %v1365_v10 = vld [vmem:[#allocation7 + $0x308] sm:$0xff]  ;;  %vm1134_vm11 = vcmp.gt.f32.partialorder %v1070_v54, 0.0 }
 0x1d7   :  { %vm1123_vm8 = vcmp.gt.f32.partialorder %v1059_v7, 0.0  ;;  %v1187_v5 = vmul.f32 0.01, %v1059_v7  ;;  %v776_v34 = vpop.f32.mrf.mxu3  ;;  %2240 = vmatpush.msra.mxu0 %v2215_v48  ;;  %1866 = vmatpush.msra.mxu3 %v1365_v10  ;;  %v5267_v59 = vld [vmem:[#allocation26_spill] sm:$0xff]  ;;  %v2209_v10 = vld [vmem:[%s5214_s9 + $0x28] sm:$0xff] }
 0x1d8   :  { %v711_v39 = vpop.f32.mrf.mxu2 }
 0x1d9   :  { %v777_v61 = vadd.f32 %v776_v34, %v711_v39  ;;  %v4403_v15 = vsel %vm1123_vm8, %v1059_v7, %v1187_v5  ;;  %2241 = vmatpush.msra.mxu0 %v2214_v50  ;;  %v656_v7 = vadd.f32 %v4267_v18, %v4214_v24  ;;  %v4424_v5 = vpop.f32.mrf.mxu0  ;;  %v2211_v24 = vld [vmem:[%s5214_s9 + $0x38] sm:$0xff]  ;;  %v1198_v34 = vmul.f32 0.01, %v1070_v54  ;;  %v2210_v50 = vld [vmem:[%s5214_s9 + $0x30] sm:$0xff] }
 0x1da   :  { %1640 = vmatmul.f32.gmra.mxu3 %v4403_v15  ;;  %1770 = vmatmul.f32.gmra.mxu1 %v5266_v17  ;;  %v5268_v17 = vld [vmem:[#allocation27_spill] sm:$0xff] }
 0x1db   :  { %v935_v47 = vmul.f32 %v4005_v16, %v777_v61  ;;  %2242 = vmatpush.msra.mxu0 %v2213_v26  ;;  %v2212_v16 = vld [vmem:[%s5214_s9 + $0x40] sm:$0xff]  ;;  %v946_v18 = vmul.f32 %v4068_v9, %v656_v7  ;;  %v4451_v7 = vsel %vm1134_vm11, %v1070_v54, %v1198_v34  ;;  %v2207_v54 = vld [vmem:[%s5214_s9 + $0x18] sm:$0xff]  ;;  %v2206_v34 = vld [vmem:[%s5214_s9 + $0x10] sm:$0xff] }
 0x1dc   :  { %1711 = vmatmul.f32.gmra.mxu0 %v5267_v59  ;;  %v4454_v59 = vpop.f32.mrf.mxu1 }
 0x1dd   :  { %v1063_v48 = vadd.f32 %v999_v13, %v935_v47  ;;  %1581 = vmatmul.f32.gmra.mxu2 %v4421_v14  ;;  %2243 = vmatpush.msra.mxu0 %v2212_v16  ;;  %v1003_v13 = vld [vmem:[%s5210_s5 + $0x1b8] sm:$0xff]  ;;  %v1074_v47 = vadd.f32 %v1010_v30, %v946_v18  ;;  %v2208_v16 = vld [vmem:[%s5214_s9 + $0x20] sm:$0xff] }
 0x1de   :  { %v1007_v30 = vld [vmem:[%s5210_s5 + $0x1d8] sm:$0xff] }
 0x1df   :  { %vm1127_vm10 = vcmp.gt.f32.partialorder %v1063_v48, 0.0  ;;  %v1191_v39 = vmul.f32 0.01, %v1063_v48  ;;  %v779_v28 = vpop.f32.mrf.mxu3  ;;  %2244 = vmatpush.msra.mxu0 %v2211_v24  ;;  %v1202_v18 = vmul.f32 0.01, %v1074_v47  ;;  %vm1138_vm13 = vcmp.gt.f32.partialorder %v1074_v47, 0.0 }
 0x1e0   :  { %v714_v57 = vpop.f32.mrf.mxu2 }
 0x1e1   :  { %v780_v6 = vadd.f32 %v779_v28, %v714_v57  ;;  %v4437_v61 = vsel %vm1127_vm10, %v1063_v48, %v1191_v39  ;;  %2245 = vmatpush.msra.mxu0 %v2210_v50  ;;  %v4460_v39 = vpop.f32.mrf.mxu0 }
 0x1e2   :  { %1643 = vmatmul.f32.gmra.mxu3 %v4437_v61  ;;  %1773 = vmatmul.f32.gmra.mxu1 %v5268_v17  ;;  %v5269_v17 = vld [vmem:[#allocation28_spill] sm:$0xff] }
 0x1e3   :  { %v939_v26 = vmul.f32 %v4026_v43, %v780_v6  ;;  %2246 = vmatpush.msra.mxu0 %v2209_v10  ;;  %v2205_v6 = vld [vmem:[%s5214_s9 + $0x8] sm:$0xff] }
 0x1e4   :  { %1714 = vmatmul.f32.gmra.mxu0 %v4085_v23 }
 0x1e5   :  { %v1067_v48 = vadd.f32 %v1003_v13, %v939_v26  ;;  %1584 = vmatmul.f32.gmra.mxu2 %v4451_v7  ;;  %2247 = vmatpush.msra.mxu0 %v2208_v16  ;;  %v4479_v13 = vsel %vm1138_vm13, %v1074_v47, %v1202_v18  ;;  %v2204_v26 = vld [vmem:[%s5214_s9] sm:$0xff] }
 0x1e7   :  { %vm1131_vm12 = vcmp.gt.f32.partialorder %v1067_v48, 0.0  ;;  %v1195_v43 = vmul.f32 0.01, %v1067_v48  ;;  %v782_v24 = vpop.f32.mrf.mxu3  ;;  %2248 = vmatpush.msra.mxu0 %v2207_v54 }
 0x1e8   :  { %v717_v23 = vpop.f32.mrf.mxu2 }
 0x1e9   :  { %v783_v57 = vadd.f32 %v782_v24, %v717_v23  ;;  %v4465_v28 = vsel %vm1131_vm12, %v1067_v48, %v1195_v43  ;;  %2249 = vmatpush.msra.mxu0 %v2206_v34  ;;  %v4488_v43 = vpop.f32.mrf.mxu0  ;;  %v1011_v23 = vld [vmem:[%s5210_s5 + $0x1f8] sm:$0xff]  ;;  %v5270_v34 = vld [vmem:[#allocation29_spill] sm:$0xff] }
 0x1ea   :  { %1646 = vmatmul.f32.gmra.mxu3 %v4465_v28  ;;  %1776 = vmatmul.f32.gmra.mxu1 %v4096_v41  ;;  %v4486_v41 = vpop.f32.mrf.mxu1  ;;  %v2235_v24 = vld [vmem:[%s5214_s9 + $0xf8] sm:$0xff] }
 0x1eb   :  { %v943_v50 = vmul.f32 %v4047_v49, %v783_v57  ;;  %2250 = vmatpush.msra.mxu0 %v2205_v6  ;;  %2301 = vmatpush.msra.mxu1 %v2235_v24 }
 0x1ec   :  { %1717 = vmatmul.f32.gmra.mxu0 %v5269_v17 }
 0x1ed   :  { %v1071_v10 = vadd.f32 %v1007_v30, %v943_v50  ;;  %1587 = vmatmul.f32.gmra.mxu2 %v4479_v13  ;;  %2251 = vmatpush.msra.mxu0 %v2204_v26  ;;  %v1479_v26 = vadd.f32 %v4289_v31, %v4240_v52 }
 0x1ef   :  { %vm1135_vm14 = vcmp.gt.f32.partialorder %v1071_v10, 0.0  ;;  %v1199_v48 = vmul.f32 0.01, %v1071_v10  ;;  %v785_v49 = vpop.f32.mrf.mxu3 }
 0x1f0   :  { %v720_v16 = vpop.f32.mrf.mxu2 }
 0x1f1   :  { %v786_v47 = vadd.f32 %v785_v49, %v720_v16  ;;  %v4490_v54 = vsel %vm1135_vm14, %v1071_v10, %v1199_v48  ;;  %v2233_v48 = vld [vmem:[%s5214_s9 + $0xe8] sm:$0xff] }
 0x1f2   :  { %1649 = vmatmul.f32.gmra.mxu3 %v4490_v54  ;;  %1779 = vmatmul.f32.gmra.mxu1 %v4116_v29  ;;  %v4504_v17 = vpop.f32.mrf.mxu1  ;;  %v2234_v29 = vld [vmem:[%s5214_s9 + $0xf0] sm:$0xff] }
 0x1f3   :  { %v947_v18 = vmul.f32 %v4068_v9, %v786_v47  ;;  %v4511_v9 = vpop.f32.mrf.mxu0  ;;  %2302 = vmatpush.msra.mxu1 %v2234_v29  ;;  %v4533_v29 = vpop.permute.xlu2 %1939 }
 0x1f5   :  { %v1075_v57 = vadd.f32 %v1011_v23, %v947_v18  ;;  %1802 = vmatmul.f32.vlgmr.msra.gmra.mxu2 %v5270_v34  ;;  %2303 = vmatpush.msra.mxu1 %v2233_v48  ;;  %v4523_v23 = vpop.permute.xlu1 %1934  ;;  %v2232_v18 = vld [vmem:[%s5214_s9 + $0xe0] sm:$0xff] }
 0x1f7   :  { %vm1139_vm15 = vcmp.gt.f32.partialorder %v1075_v57, 0.0  ;;  %v1203_v30 = vmul.f32 0.01, %v1075_v57  ;;  %2304 = vmatpush.msra.mxu1 %v2232_v18  ;;  %v2048_v18 = vld [vmem:[#allocation8 + $0x20] sm:$0xff] }
 0x1f8   :  { %v1543_v6 = vpop.f32.mrf.mxu2 }
 0x1f9   :  { %v4502_v50 = vsel %vm1139_vm15, %v1075_v57, %v1203_v30 }
 0x1fa   :  { %1652 = vmatmul.f32.gmra.mxu3 %v4502_v50  ;;  %1782 = vmatmul.f32.gmra.mxu1 %v4137_v62  ;;  %v1544_v62 = vadd.f32 %v1543_v6, %v1479_v26  ;;  %v4538_v48 = vpop.f32.mrf.mxu1 }
 0x1fb   :  { %v4520_v16 = vpop.f32.mrf.mxu0 }
 0x1fd   :  { %1805 = vmatmul.f32.gmra.mxu2 %v4145_v37  ;;  %v2044_v37 = vld [vmem:[#allocation8] sm:$0xff] }
 0x200   :  { %v1546_v10 = vpop.f32.mrf.mxu2 }
 0x202   :  { %1867 = vmatmul.f32.vlgmr.msra.gmra.mxu3 %v4154_v2  ;;  %v1482_v2 = vadd.f32 %v4317_v20, %v4269_v19  ;;  %v2046_v19 = vld [vmem:[#allocation8 + $0x10] sm:$0xff] }
 0x203   :  { %v4535_v26 = vpop.f32.mrf.mxu0 }
 0x204   :  { %v1547_v57 = vadd.f32 %v1546_v10, %v1482_v2  ;;  %v1485_v10 = vadd.f32 %v4340_v46, %v4297_v8 }
 0x205   :  { %v1608_v49 = vpop.f32.mrf.mxu3  ;;  %1808 = vmatmul.f32.gmra.mxu2 %v4163_v36 }
 0x206   :  { %v1609_v47 = vadd.f32 %v1608_v49, %v1544_v62 }
 0x208   :  { %v2012_v24 = vmul.f32 %v4523_v23, %v1609_v47  ;;  %v1549_v52 = vpop.f32.mrf.mxu2 }
 0x209   :  { %v1550_v49 = vadd.f32 %v1549_v52, %v1485_v10  ;;  %v4561_v10 = vpop.permute.xlu1 %1949 }
 0x20a   :  { %v2076_v31 = vadd.f32 %v2044_v37, %v2012_v24  ;;  %1870 = vmatmul.f32.gmra.mxu3 %v4176_v44 }
 0x20b   :  { %v4550_v46 = vpop.f32.mrf.mxu0 }
 0x20c   :  { %vm2108_vm0 = vcmp.gt.f32.partialorder %v2076_v31, 0.0  ;;  %v2140_v36 = vmul.f32 0.01, %v2076_v31 }
 0x20d   :  { %v1611_v34 = vpop.f32.mrf.mxu3  ;;  %1811 = vmatmul.f32.gmra.mxu2 %v4185_v4  ;;  %v2231_v4 = vld [vmem:[%s5214_s9 + $0xd8] sm:$0xff] }
 0x20e   :  { %v1612_v30 = vadd.f32 %v1611_v34, %v1547_v57  ;;  %v2172_v6 = vsel %vm2108_vm0, %v2076_v31, %v2140_v36  ;;  %2305 = vmatpush.msra.mxu1 %v2231_v4  ;;  %v4547_v31 = vpop.permute.xlu0 %1944  ;;  %v1488_v57 = vadd.f32 %v4369_v1, %v4320_v0  ;;  %v4558_v36 = vpop.f32.mrf.mxu1  ;;  %v2050_v0 = vld [vmem:[#allocation8 + $0x30] sm:$0xff] }
 0x20f   :  { %2252 = vmatmul.f32.vlgmr.msra.gmra.mxu0 %v2172_v6 }
 0x210   :  { %v2014_v44 = vmul.f32 %v4533_v29, %v1612_v30  ;;  %v1552_v20 = vpop.f32.mrf.mxu2 }
 0x211   :  { %v1553_v34 = vadd.f32 %v1552_v20, %v1488_v57  ;;  %v2229_v20 = vld [vmem:[%s5214_s9 + $0xc8] sm:$0xff]  ;;  %v1494_v57 = vadd.f32 %v4454_v59, %v4381_v35 }
 0x212   :  { %v2078_v62 = vadd.f32 %v2046_v19, %v2014_v44  ;;  %1873 = vmatmul.f32.gmra.mxu3 %v4198_v51 }
 0x214   :  { %vm2110_vm1 = vcmp.gt.f32.partialorder %v2078_v62, 0.0  ;;  %v2142_v47 = vmul.f32 0.01, %v2078_v62 }
 0x215   :  { %v1614_v37 = vpop.f32.mrf.mxu3  ;;  %1814 = vmatmul.f32.gmra.mxu2 %v4205_v22  ;;  %v2230_v22 = vld [vmem:[%s5214_s9 + $0xd0] sm:$0xff] }
 0x216   :  { %v1615_v24 = vadd.f32 %v1614_v37, %v1550_v49  ;;  %v2174_v2 = vsel %vm2110_vm1, %v2078_v62, %v2142_v47  ;;  %2306 = vmatpush.msra.mxu1 %v2230_v22  ;;  %v1491_v62 = vadd.f32 %v4416_v40, %v4346_v38  ;;  %v4572_v37 = vpop.f32.mrf.mxu1  ;;  %v4575_v40 = vpop.permute.xlu2 %1954 }
 0x217   :  { %2255 = vmatmul.f32.gmra.mxu0 %v2174_v2 }
 0x218   :  { %v2016_v8 = vmul.f32 %v4547_v31, %v1615_v24  ;;  %v1555_v51 = vpop.f32.mrf.mxu2  ;;  %2307 = vmatpush.msra.mxu1 %v2229_v20 }
 0x219   :  { %v1556_v49 = vadd.f32 %v1555_v51, %v1491_v62 }
 0x21a   :  { %v2080_v52 = vadd.f32 %v2048_v18, %v2016_v8  ;;  %1876 = vmatmul.f32.gmra.mxu3 %v4220_v32 }
 0x21c   :  { %vm2112_vm2 = vcmp.gt.f32.partialorder %v2080_v52, 0.0  ;;  %v2144_v30 = vmul.f32 0.01, %v2080_v52 }
 0x21d   :  { %v1617_v6 = vpop.f32.mrf.mxu3  ;;  %1817 = vmatmul.f32.gmra.mxu2 %v4227_v55  ;;  %v4570_v55 = vpop.f32.mrf.mxu0 }
 0x21e   :  { %v1618_v19 = vadd.f32 %v1617_v6, %v1553_v34  ;;  %v2176_v44 = vsel %vm2112_vm2, %v2080_v52, %v2144_v30  ;;  %v2228_v52 = vld [vmem:[%s5214_s9 + $0xc0] sm:$0xff]  ;;  %v4589_v35 = vpop.f32.mrf.mxu1 }
 0x21f   :  { %2258 = vmatmul.f32.gmra.mxu0 %v2176_v44  ;;  %2308 = vmatpush.msra.mxu1 %v2228_v52  ;;  %v4587_v44 = vpop.permute.xlu0 %1959 }
 0x220   :  { %v2018_v32 = vmul.f32 %v4561_v10, %v1618_v19  ;;  %v1558_v1 = vpop.f32.mrf.mxu2 }
 0x222   :  { %v2082_v4 = vadd.f32 %v2050_v0, %v2018_v32  ;;  %1879 = vmatmul.f32.gmra.mxu3 %v4242_v63  ;;  %v2052_v63 = vld [vmem:[#allocation8 + $0x40] sm:$0xff]  ;;  %v1497_v32 = vadd.f32 %v4486_v41, %v4424_v5 }
 0x223   :  { %v2056_v5 = vld [vmem:[#allocation8 + $0x60] sm:$0xff] }
 0x224   :  { %vm2114_vm3 = vcmp.gt.f32.partialorder %v2082_v4, 0.0  ;;  %v2146_v47 = vmul.f32 0.01, %v2082_v4 }
 0x225   :  { %v1620_v24 = vpop.f32.mrf.mxu3  ;;  %1820 = vmatmul.f32.gmra.mxu2 %v4252_v45  ;;  %v1559_v45 = vadd.f32 %v1558_v1, %v1494_v57  ;;  %v4584_v34 = vpop.f32.mrf.mxu0 }
 0x226   :  { %v1621_v2 = vadd.f32 %v1620_v24, %v1556_v49  ;;  %v2178_v38 = vsel %vm2114_vm3, %v2082_v4, %v2146_v47  ;;  %v4599_v24 = vpop.permute.xlu1 %1964 }
 0x227   :  { %2261 = vmatmul.f32.gmra.mxu0 %v2178_v38  ;;  %v4604_v38 = vpop.f32.mrf.mxu1 }
 0x228   :  { %v2020_v18 = vmul.f32 %v4575_v40, %v1621_v2  ;;  %v1561_v8 = vpop.f32.mrf.mxu2 }
 0x229   :  { %v1562_v62 = vadd.f32 %v1561_v8, %v1497_v32 }
 0x22a   :  { %v2084_v51 = vadd.f32 %v2052_v63, %v2020_v18  ;;  %1882 = vmatmul.f32.gmra.mxu3 %v4260_v27  ;;  %v2054_v27 = vld [vmem:[#allocation8 + $0x50] sm:$0xff]  ;;  %v1500_v63 = vadd.f32 %v4504_v17, %v4460_v39 }
 0x22c   :  { %vm2116_vm4 = vcmp.gt.f32.partialorder %v2084_v51, 0.0  ;;  %v2148_v22 = vmul.f32 0.01, %v2084_v51 }
 0x22d   :  { %v1623_v30 = vpop.f32.mrf.mxu3  ;;  %1823 = vmatmul.f32.gmra.mxu2 %v4274_v12  ;;  %v2227_v12 = vld [vmem:[%s5214_s9 + $0xb8] sm:$0xff]  ;;  %v4601_v2 = vpop.f32.mrf.mxu0 }
 0x22e   :  { %v1624_v6 = vadd.f32 %v1623_v30, %v1559_v45  ;;  %v2180_v19 = vsel %vm2116_vm4, %v2084_v51, %v2148_v22  ;;  %2309 = vmatpush.msra.mxu1 %v2227_v12  ;;  %v4613_v22 = vpop.permute.xlu2 %1969  ;;  %v2058_v30 = vld [vmem:[#allocation8 + $0x70] sm:$0xff] }
 0x22f   :  { %2264 = vmatmul.f32.gmra.mxu0 %v2180_v19 }
 0x230   :  { %v2022_v59 = vmul.f32 %v4587_v44, %v1624_v6  ;;  %v1564_v0 = vpop.f32.mrf.mxu2  ;;  %v1503_v6 = vadd.f32 %v4538_v48, %v4488_v43  ;;  %v2060_v43 = vld [vmem:[#allocation8 + $0x80] sm:$0xff] }
 0x231   :  { %v1565_v8 = vadd.f32 %v1564_v0, %v1500_v63 }
 0x232   :  { %v2086_v1 = vadd.f32 %v2054_v27, %v2022_v59  ;;  %1885 = vmatmul.f32.gmra.mxu3 %v4282_v3  ;;  %v4624_v27 = vpop.f32.mrf.mxu1 }
 0x234   :  { %vm2118_vm5 = vcmp.gt.f32.partialorder %v2086_v1, 0.0  ;;  %v2150_v4 = vmul.f32 0.01, %v2086_v1 }
 0x235   :  { %v1626_v20 = vpop.f32.mrf.mxu3  ;;  %1826 = vmatmul.f32.gmra.mxu2 %v4294_v58  ;;  %v2226_v58 = vld [vmem:[%s5214_s9 + $0xb0] sm:$0xff]  ;;  %v4616_v17 = vpop.f32.mrf.mxu0 }
 0x236   :  { %v1627_v49 = vadd.f32 %v1626_v20, %v1562_v62  ;;  %v2182_v47 = vsel %vm2118_vm5, %v2086_v1, %v2150_v4  ;;  %2310 = vmatpush.msra.mxu1 %v2226_v58  ;;  %v4627_v62 = vpop.permute.xlu0 %1974  ;;  %v1506_v4 = vadd.f32 %v4558_v36, %v4511_v9  ;;  %v4641_v36 = vpop.permute.xlu1 %1979 }
 0x237   :  { %2267 = vmatmul.f32.gmra.mxu0 %v2182_v47 }
 0x238   :  { %v2024_v3 = vmul.f32 %v4599_v24, %v1627_v49  ;;  %v1567_v41 = vpop.f32.mrf.mxu2  ;;  %v2224_v49 = vld [vmem:[%s5214_s9 + $0xa0] sm:$0xff] }
 0x239   :  { %v1568_v59 = vadd.f32 %v1567_v41, %v1503_v6  ;;  %v4653_v6 = vpop.permute.xlu2 %1984 }
 0x23a   :  { %v2088_v18 = vadd.f32 %v2056_v5, %v2024_v3  ;;  %1888 = vmatmul.f32.gmra.mxu3 %v4304_v60  ;;  %v4638_v3 = vpop.f32.mrf.mxu1 }
 0x23c   :  { %vm2120_vm6 = vcmp.gt.f32.partialorder %v2088_v18, 0.0  ;;  %v2152_v57 = vmul.f32 0.01, %v2088_v18 }
 0x23d   :  { %v1629_v51 = vpop.f32.mrf.mxu3  ;;  %1829 = vmatmul.f32.gmra.mxu2 %v4314_v11  ;;  %v2225_v11 = vld [vmem:[%s5214_s9 + $0xa8] sm:$0xff] }
 0x23e   :  { %v1630_v52 = vadd.f32 %v1629_v51, %v1565_v8  ;;  %v2184_v45 = vsel %vm2120_vm6, %v2088_v18, %v2152_v57  ;;  %2311 = vmatpush.msra.mxu1 %v2225_v11  ;;  %v1509_v8 = vadd.f32 %v4572_v37, %v4520_v16  ;;  %v2223_v51 = vld [vmem:[%s5214_s9 + $0x98] sm:$0xff]  ;;  %v1512_v11 = vadd.f32 %v4589_v35, %v4535_v26  ;;  %v2066_v26 = vld [vmem:[#allocation8 + $0xb0] sm:$0xff] }
 0x23f   :  { %2270 = vmatmul.f32.gmra.mxu0 %v2184_v45 }
 0x240   :  { %v2026_v39 = vmul.f32 %v4613_v22, %v1630_v52  ;;  %v1570_v60 = vpop.f32.mrf.mxu2  ;;  %2312 = vmatpush.msra.mxu1 %v2224_v49 }
 0x241   :  { %v1571_v47 = vadd.f32 %v1570_v60, %v1506_v4 }
 0x242   :  { %v2090_v19 = vadd.f32 %v2058_v30, %v2026_v39  ;;  %1891 = vmatmul.f32.gmra.mxu3 %v4326_v33  ;;  %2313 = vmatpush.msra.mxu1 %v2223_v51  ;;  %v4655_v16 = vpop.f32.mrf.mxu1 }
 0x244   :  { %vm2122_vm7 = vcmp.gt.f32.partialorder %v2090_v19, 0.0  ;;  %v2154_v0 = vmul.f32 0.01, %v2090_v19 }
 0x245   :  { %v1632_v32 = vpop.f32.mrf.mxu3  ;;  %1832 = vmatmul.f32.gmra.mxu2 %v4336_v25  ;;  %v4636_v25 = vpop.f32.mrf.mxu0 }
 0x246   :  { %v1633_v1 = vadd.f32 %v1632_v32, %v1568_v59  ;;  %v2186_v12 = vsel %vm2122_vm7, %v2090_v19, %v2154_v0 }
 0x247   :  { %2273 = vmatmul.f32.gmra.mxu0 %v2186_v12 }
 0x248   :  { %v2028_v33 = vmul.f32 %v4627_v62, %v1633_v1  ;;  %v1573_v48 = vpop.f32.mrf.mxu2 }
 0x24a   :  { %v2092_v20 = vadd.f32 %v2060_v43, %v2028_v33  ;;  %1894 = vmatmul.f32.gmra.mxu3 %v4348_v21  ;;  %v2062_v21 = vld [vmem:[#allocation8 + $0x90] sm:$0xff]  ;;  %v4665_v33 = vpop.permute.xlu0 %1989  ;;  %v4670_v4 = vpop.f32.mrf.mxu1 }
 0x24c   :  { %vm2124_vm8 = vcmp.gt.f32.partialorder %v2092_v20, 0.0  ;;  %v2156_v5 = vmul.f32 0.01, %v2092_v20 }
 0x24d   :  { %v1635_v41 = vpop.f32.mrf.mxu3  ;;  %1835 = vmatmul.f32.gmra.mxu2 %v4358_v42  ;;  %v1574_v42 = vadd.f32 %v1573_v48, %v1509_v8  ;;  %v4650_v45 = vpop.f32.mrf.mxu0 }
 0x24e   :  { %v1636_v63 = vadd.f32 %v1635_v41, %v1571_v47  ;;  %v2188_v9 = vsel %vm2124_vm8, %v2092_v20, %v2156_v5  ;;  %v1515_v20 = vadd.f32 %v4604_v38, %v4550_v46 }
 0x24f   :  { %2276 = vmatmul.f32.gmra.mxu0 %v2188_v9 }
 0x250   :  { %v2030_v18 = vmul.f32 %v4641_v36, %v1636_v63  ;;  %v1576_v58 = vpop.f32.mrf.mxu2 }
 0x251   :  { %v1577_v0 = vadd.f32 %v1576_v58, %v1512_v11  ;;  %v1518_v58 = vadd.f32 %v4624_v27, %v4570_v55  ;;  %v2070_v55 = vld [vmem:[#allocation8 + $0xd0] sm:$0xff] }
 0x252   :  { %v2094_v57 = vadd.f32 %v2062_v21, %v2030_v18  ;;  %1897 = vmatmul.f32.gmra.mxu3 %v4371_v56  ;;  %v2064_v56 = vld [vmem:[#allocation8 + $0xa0] sm:$0xff]  ;;  %v4679_v21 = vpop.permute.xlu1 %1994 }
 0x253   :  { %v2068_v18 = vld [vmem:[#allocation8 + $0xc0] sm:$0xff] }
 0x254   :  { %vm2126_vm9 = vcmp.gt.f32.partialorder %v2094_v57, 0.0  ;;  %v2158_v52 = vmul.f32 0.01, %v2094_v57 }
 0x255   :  { %v1638_v30 = vpop.f32.mrf.mxu3  ;;  %1838 = vmatmul.f32.gmra.mxu2 %v4389_v53  ;;  %v2222_v53 = vld [vmem:[%s5214_s9 + $0x90] sm:$0xff]  ;;  %v4667_v48 = vpop.f32.mrf.mxu0 }
 0x256   :  { %v1639_v39 = vadd.f32 %v1638_v30, %v1574_v42  ;;  %v2190_v60 = vsel %vm2126_vm9, %v2094_v57, %v2158_v52  ;;  %2314 = vmatpush.msra.mxu1 %v2222_v53  ;;  %v1741_v57 = vpop.f32.mrf.mxu1  ;;  %v2220_v42 = vld [vmem:[%s5214_s9 + $0x80] sm:$0xff] }
 0x257   :  { %2279 = vmatmul.f32.gmra.mxu0 %v2190_v60  ;;  %v4691_v60 = vpop.permute.xlu2 %1999 }
 0x258   :  { %v2032_v37 = vmul.f32 %v4653_v6, %v1639_v39  ;;  %v1579_v19 = vpop.f32.mrf.mxu2 }
 0x259   :  { %v1580_v47 = vadd.f32 %v1579_v19, %v1515_v20 }
 0x25a   :  { %v2096_v59 = vadd.f32 %v2064_v56, %v2032_v37  ;;  %1900 = vmatmul.f32.gmra.mxu3 %v4403_v15  ;;  %v1521_v56 = vadd.f32 %v4638_v3, %v4584_v34  ;;  %v1524_v34 = vadd.f32 %v4655_v16, %v4601_v2  ;;  %v1739_v2 = vadd.f32 %v4670_v4, %v4616_v17 }
 0x25c   :  { %vm2128_vm10 = vcmp.gt.f32.partialorder %v2096_v59, 0.0  ;;  %v2160_v32 = vmul.f32 0.01, %v2096_v59 }
 0x25d   :  { %v1641_v1 = vpop.f32.mrf.mxu3  ;;  %1841 = vmatmul.f32.gmra.mxu2 %v4421_v14  ;;  %v2221_v14 = vld [vmem:[%s5214_s9 + $0x88] sm:$0xff]  ;;  %v4682_v38 = vpop.f32.mrf.mxu0 }
 0x25e   :  { %v1642_v12 = vadd.f32 %v1641_v1, %v1577_v0  ;;  %v2192_v43 = vsel %vm2128_vm10, %v2096_v59, %v2160_v32  ;;  %2315 = vmatpush.msra.mxu1 %v2221_v14  ;;  %v1744_v59 = vpop.f32.mrf.mxu1  ;;  %v4699_v1 = vpop.permute.xlu0 %2004 }
 0x25f   :  { %2282 = vmatmul.f32.gmra.mxu0 %v2192_v43 }
 0x260   :  { %v2034_v15 = vmul.f32 %v4665_v33, %v1642_v12  ;;  %v1582_v35 = vpop.f32.mrf.mxu2  ;;  %2316 = vmatpush.msra.mxu1 %v2220_v42  ;;  %v2072_v12 = vld [vmem:[#allocation8 + $0xe0] sm:$0xff] }
 0x261   :  { %v1583_v51 = vadd.f32 %v1582_v35, %v1518_v58 }
 0x262   :  { %v2098_v49 = vadd.f32 %v2066_v26, %v2034_v15  ;;  %1903 = vmatmul.f32.gmra.mxu3 %v4437_v61 }
 0x264   :  { %vm2130_vm11 = vcmp.gt.f32.partialorder %v2098_v49, 0.0  ;;  %v2162_v5 = vmul.f32 0.01, %v2098_v49 }
 0x265   :  { %v1644_v41 = vpop.f32.mrf.mxu3  ;;  %1844 = vmatmul.f32.gmra.mxu2 %v4451_v7  ;;  %v4697_v19 = vpop.f32.mrf.mxu0 }
 0x266   :  { %v1645_v63 = vadd.f32 %v1644_v41, %v1580_v47  ;;  %v2194_v9 = vsel %vm2130_vm11, %v2098_v49, %v2162_v5  ;;  %v4707_v47 = vpop.permute.xlu1 %2009  ;;  %v1747_v5 = vpop.f32.mrf.mxu1  ;;  %v2074_v41 = vld [vmem:[#allocation8 + $0xf0] sm:$0xff] }
 0x267   :  { %2285 = vmatmul.f32.gmra.mxu0 %v2194_v9 }
 0x268   :  { %v2036_v46 = vmul.f32 %v4679_v21, %v1645_v63  ;;  %v1585_v61 = vpop.f32.mrf.mxu2 }
 0x269   :  { %v1586_v11 = vadd.f32 %v1585_v61, %v1521_v56  ;;  %v2047_v56 = vld [vmem:[#allocation8 + $0x18] sm:$0xff] }
 0x26a   :  { %v2100_v8 = vadd.f32 %v2068_v18, %v2036_v46  ;;  %1906 = vmatmul.f32.gmra.mxu3 %v4465_v28 }
 0x26c   :  { %vm2132_vm12 = vcmp.gt.f32.partialorder %v2100_v8, 0.0  ;;  %v2164_v7 = vmul.f32 0.01, %v2100_v8 }
 0x26d   :  { %v1647_v52 = vpop.f32.mrf.mxu3  ;;  %1847 = vmatmul.f32.gmra.mxu2 %v4479_v13  ;;  %v4705_v35 = vpop.f32.mrf.mxu0 }
 0x26e   :  { %v1648_v30 = vadd.f32 %v1647_v52, %v1583_v51  ;;  %v2196_v39 = vsel %vm2132_vm12, %v2100_v8, %v2164_v7  ;;  %v2045_v51 = vld [vmem:[#allocation8 + $0x8] sm:$0xff]  ;;  %v1750_v52 = vpop.f32.mrf.mxu1 }
 0x26f   :  { %2288 = vmatmul.f32.gmra.mxu0 %v2196_v39 }
 0x270   :  { %v2038_v28 = vmul.f32 %v4691_v60, %v1648_v30  ;;  %v1588_v27 = vpop.f32.mrf.mxu2  ;;  %v1742_v30 = vadd.f32 %v1741_v57, %v4636_v25 }
 0x271   :  { %v1589_v3 = vadd.f32 %v1588_v27, %v1524_v34 }
 0x272   :  { %v2102_v37 = vadd.f32 %v2070_v55, %v2038_v28  ;;  %1909 = vmatmul.f32.gmra.mxu3 %v4490_v54 }
 0x274   :  { %vm2134_vm13 = vcmp.gt.f32.partialorder %v2102_v37, 0.0  ;;  %v2166_v13 = vmul.f32 0.01, %v2102_v37 }
 0x275   :  { %v1650_v53 = vpop.f32.mrf.mxu3  ;;  %v4712_v8 = vpop.f32.mrf.mxu0 }
 0x276   :  { %v1651_v0 = vadd.f32 %v1650_v53, %v1586_v11  ;;  %v2198_v32 = vsel %vm2134_vm13, %v2102_v37, %v2166_v13  ;;  %v1745_v13 = vadd.f32 %v1744_v59, %v4650_v45 }
 0x277   :  { %2291 = vmatmul.f32.gmra.mxu0 %v2198_v32 }
 0x278   :  { %v2040_v43 = vmul.f32 %v4699_v1, %v1651_v0  ;;  %v1803_v26 = vpop.f32.mrf.mxu2 }
 0x279   :  { %v1804_v16 = vadd.f32 %v1803_v26, %v1739_v2  ;;  %v1751_v2 = vadd.f32 %v1750_v52, %v4682_v38 }
 0x27a   :  { %v2104_v54 = vadd.f32 %v2072_v12, %v2040_v43  ;;  %1912 = vmatmul.f32.gmra.mxu3 %v4502_v50  ;;  %v2049_v43 = vld [vmem:[#allocation8 + $0x28] sm:$0xff] }
 0x27c   :  { %vm2136_vm14 = vcmp.gt.f32.partialorder %v2104_v54, 0.0  ;;  %v2168_v15 = vmul.f32 0.01, %v2104_v54 }
 0x27d   :  { %v1653_v20 = vpop.f32.mrf.mxu3 }
 0x27e   :  { %v1654_v49 = vadd.f32 %v1653_v20, %v1589_v3  ;;  %v2200_v14 = vsel %vm2136_vm14, %v2104_v54, %v2168_v15  ;;  %v1748_v54 = vadd.f32 %v1747_v5, %v4667_v48 }
 0x27f   :  { %2294 = vmatmul.f32.gmra.mxu0 %v2200_v14  ;;  %v2051_v14 = vld [vmem:[#allocation8 + $0x38] sm:$0xff] }
 0x280   :  { %v2042_v63 = vmul.f32 %v4707_v47, %v1654_v49  ;;  %v1806_v9 = vpop.f32.mrf.mxu2 }
 0x281   :  { %v1807_v55 = vadd.f32 %v1806_v9, %v1742_v30 }
 0x282   :  { %v2106_v50 = vadd.f32 %v2074_v41, %v2042_v63  ;;  %v1697_v41 = vpop.f32.mrf.mxu0 }
 0x284   :  { %vm2138_vm15 = vcmp.gt.f32.partialorder %v2106_v50, 0.0  ;;  %v2170_v18 = vmul.f32 0.01, %v2106_v50 }
 0x285   :  { %v1868_v46 = vpop.f32.mrf.mxu3 }
 0x286   :  { %v1869_v61 = vadd.f32 %v1868_v46, %v1804_v16  ;;  %v2202_v58 = vsel %vm2138_vm15, %v2106_v50, %v2170_v18 }
 0x287   :  { %2297 = vmatmul.f32.gmra.mxu0 %v2202_v58 }
 0x288   :  { %v2013_v7 = vmul.f32 %v4523_v23, %v1869_v61  ;;  %v1809_v42 = vpop.f32.mrf.mxu2  ;;  %v1753_v23 = vpop.f32.mrf.mxu1  ;;  %v2053_v61 = vld [vmem:[#allocation8 + $0x48] sm:$0xff] }
 0x289   :  { %v1810_v0 = vadd.f32 %v1809_v42, %v1745_v13 }
 0x28a   :  { %v2077_v39 = vadd.f32 %v2045_v51, %v2013_v7  ;;  %v1754_v7 = vadd.f32 %v1753_v23, %v4697_v19  ;;  %v1700_v42 = vpop.f32.mrf.mxu0 }
 0x28c   :  { %v2141_v17 = vmul.f32 0.01, %v2077_v39  ;;  %vm2109_vm0 = vcmp.gt.f32.partialorder %v2077_v39, 0.0 }
 0x28d   :  { %v1871_v4 = vpop.f32.mrf.mxu3 }
 0x28e   :  { %v1872_v28 = vadd.f32 %v1871_v4, %v1807_v55  ;;  %v2173_v27 = vsel %vm2109_vm0, %v2077_v39, %v2141_v17  ;;  %v2055_v17 = vld [vmem:[#allocation8 + $0x58] sm:$0xff]  ;;  %vm2510_vm0 = vcmask 818176  }
 0x28f   :  { %2317 = vmatmul.f32.vlgmr.msra.gmra.mxu1 %v2173_v27 }
 0x290   :  { %v2015_v37 = vmul.f32 %v4533_v29, %v1872_v28  ;;  %v1812_v11 = vpop.f32.mrf.mxu2  ;;  %v1756_v45 = vpop.f32.mrf.mxu1 }
 0x291   :  { %v1813_v29 = vadd.f32 %v1812_v11, %v1748_v54 }
 0x292   :  { %v2079_v53 = vadd.f32 %v2047_v56, %v2015_v37  ;;  %v1757_v56 = vadd.f32 %v1756_v45, %v4705_v35  ;;  %v1703_v37 = vpop.f32.mrf.mxu0 }
 0x294   :  { %vm2111_vm1 = vcmp.gt.f32.partialorder %v2079_v53, 0.0  ;;  %v2143_v32 = vmul.f32 0.01, %v2079_v53 }
 0x295   :  { %v1874_v25 = vpop.f32.mrf.mxu3 }
 0x296   :  { %v1875_v57 = vadd.f32 %v1874_v25, %v1810_v0  ;;  %v2175_v12 = vsel %vm2111_vm1, %v2079_v53, %v2143_v32  ;;  %v2057_v0 = vld [vmem:[#allocation8 + $0x68] sm:$0xff] }
 0x297   :  { %2320 = vmatmul.f32.gmra.mxu1 %v2175_v12 }
 0x298   :  { %v2017_v26 = vmul.f32 %v4547_v31, %v1875_v57  ;;  %v1815_v34 = vpop.f32.mrf.mxu2  ;;  %v1759_v46 = vpop.f32.mrf.mxu1 }
 0x299   :  { %v1816_v50 = vadd.f32 %v1815_v34, %v1751_v2  ;;  %v1760_v57 = vadd.f32 %v1759_v46, %v4712_v8  ;;  %v2061_v2 = vld [vmem:[#allocation8 + $0x88] sm:$0xff] }
 0x29a   :  { %v2081_v3 = vadd.f32 %v2049_v43, %v2017_v26  ;;  %v1706_v34 = vpop.f32.mrf.mxu0 }
 0x29c   :  { %vm2113_vm2 = vcmp.gt.f32.partialorder %v2081_v3, 0.0  ;;  %v2145_v15 = vmul.f32 0.01, %v2081_v3 }
 0x29d   :  { %v1877_v59 = vpop.f32.mrf.mxu3 }
 0x29e   :  { %v1878_v20 = vadd.f32 %v1877_v59, %v1813_v29  ;;  %v2177_v49 = vsel %vm2113_vm2, %v2081_v3, %v2145_v15  ;;  %v2059_v29 = vld [vmem:[#allocation8 + $0x78] sm:$0xff]  ;;  %vm2646_vm2 = vcmask 811008  }
 0x29f   :  { %2323 = vmatmul.f32.gmra.mxu1 %v2177_v49 }
 0x2a0   :  { %v2019_v63 = vmul.f32 %v4561_v10, %v1878_v20  ;;  %v1818_v9 = vpop.f32.mrf.mxu2  ;;  %v1762_v27 = vpop.f32.mrf.mxu1 }
 0x2a1   :  { %v1819_v30 = vadd.f32 %v1818_v9, %v1754_v7  ;;  %v1763_v59 = vadd.f32 %v1762_v27, %v1697_v41 }
 0x2a2   :  { %v2083_v31 = vadd.f32 %v2051_v14, %v2019_v63 }
 0x2a4   :  { %vm2115_vm3 = vcmp.gt.f32.partialorder %v2083_v31, 0.0  ;;  %v2147_v48 = vmul.f32 0.01, %v2083_v31 }
 0x2a5   :  { %v1880_v5 = vpop.f32.mrf.mxu3 }
 0x2a6   :  { %v1881_v16 = vadd.f32 %v1880_v5, %v1816_v50  ;;  %v2179_v18 = vsel %vm2115_vm3, %v2083_v31, %v2147_v48  ;;  %v1709_v31 = vpop.f32.mrf.mxu0 }
 0x2a7   :  { %2326 = vmatmul.f32.gmra.mxu1 %v2179_v18 }
 0x2a8   :  { %v2021_v58 = vmul.f32 %v4575_v40, %v1881_v16  ;;  %v1821_v51 = vpop.f32.mrf.mxu2  ;;  %v1765_v12 = vpop.f32.mrf.mxu1 }
 0x2a9   :  { %v1822_v11 = vadd.f32 %v1821_v51, %v1757_v56  ;;  %v1766_v5 = vadd.f32 %v1765_v12, %v1700_v42  ;;  %v2063_v51 = vld [vmem:[#allocation8 + $0x98] sm:$0xff] }
 0x2aa   :  { %v2085_v10 = vadd.f32 %v2053_v61, %v2021_v58 }
 0x2ac   :  { %vm2117_vm4 = vcmp.gt.f32.partialorder %v2085_v10, 0.0  ;;  %v2149_v38 = vmul.f32 0.01, %v2085_v10 }
 0x2ad   :  { %v1883_v52 = vpop.f32.mrf.mxu3 }
 0x2ae   :  { %v1884_v39 = vadd.f32 %v1883_v52, %v1819_v30  ;;  %v2181_v55 = vsel %vm2117_vm4, %v2085_v10, %v2149_v38  ;;  %v1712_v38 = vpop.f32.mrf.mxu0 }
 0x2af   :  { %2329 = vmatmul.f32.gmra.mxu1 %v2181_v55 }
 0x2b0   :  { %v2023_v4 = vmul.f32 %v4587_v44, %v1884_v39  ;;  %v1824_v28 = vpop.f32.mrf.mxu2  ;;  %v1768_v8 = vpop.f32.mrf.mxu1 }
 0x2b1   :  { %v1825_v43 = vadd.f32 %v1824_v28, %v1760_v57  ;;  %v1769_v30 = vadd.f32 %v1768_v8, %v1703_v37 }
 0x2b2   :  { %v2087_v40 = vadd.f32 %v2055_v17, %v2023_v4  ;;  %v2065_v4 = vld [vmem:[#allocation8 + $0xa8] sm:$0xff] }
 0x2b4   :  { %vm2119_vm5 = vcmp.gt.f32.partialorder %v2087_v40, 0.0  ;;  %v2151_v19 = vmul.f32 0.01, %v2087_v40 }
 0x2b5   :  { %v1886_v13 = vpop.f32.mrf.mxu3 }
 0x2b6   :  { %v1887_v53 = vadd.f32 %v1886_v13, %v1822_v11  ;;  %v2183_v23 = vsel %vm2119_vm5, %v2087_v40, %v2151_v19  ;;  %v1715_v19 = vpop.f32.mrf.mxu0 }
 0x2b7   :  { %2332 = vmatmul.f32.gmra.mxu1 %v2183_v23 }
 0x2b8   :  { %v2025_v32 = vmul.f32 %v4599_v24, %v1887_v53  ;;  %v1827_v25 = vpop.f32.mrf.mxu2  ;;  %v1771_v58 = vpop.f32.mrf.mxu1 }
 0x2b9   :  { %v1828_v24 = vadd.f32 %v1827_v25, %v1763_v59  ;;  %v1772_v56 = vadd.f32 %v1771_v58, %v1706_v34 }
 0x2ba   :  { %v2089_v44 = vadd.f32 %v2057_v0, %v2025_v32  ;;  %v2067_v0 = vld [vmem:[#allocation8 + $0xb8] sm:$0xff] }
 0x2bc   :  { %vm2121_vm6 = vcmp.gt.f32.partialorder %v2089_v44, 0.0  ;;  %v2153_v35 = vmul.f32 0.01, %v2089_v44 }
 0x2bd   :  { %v1889_v26 = vpop.f32.mrf.mxu3 }
 0x2be   :  { %v1890_v54 = vadd.f32 %v1889_v26, %v1825_v43  ;;  %v2185_v3 = vsel %vm2121_vm6, %v2089_v44, %v2153_v35  ;;  %v1718_v26 = vpop.f32.mrf.mxu0 }
 0x2bf   :  { %2335 = vmatmul.f32.gmra.mxu1 %v2185_v3  ;;  %v2069_v3 = vld [vmem:[#allocation8 + $0xc8] sm:$0xff] }
 0x2c0   :  { %v2027_v15 = vmul.f32 %v4613_v22, %v1890_v54  ;;  %v1830_v45 = vpop.f32.mrf.mxu2  ;;  %v1774_v27 = vpop.f32.mrf.mxu1 }
 0x2c1   :  { %v1831_v18 = vadd.f32 %v1830_v45, %v1766_v5  ;;  %v1775_v25 = vadd.f32 %v1774_v27, %v1709_v31 }
 0x2c2   :  { %v2091_v20 = vadd.f32 %v2059_v29, %v2027_v15 }
 0x2c4   :  { %vm2123_vm7 = vcmp.gt.f32.partialorder %v2091_v20, 0.0  ;;  %v2155_v49 = vmul.f32 0.01, %v2091_v20 }
 0x2c5   :  { %v1892_v14 = vpop.f32.mrf.mxu3 }
 0x2c6   :  { %v1893_v63 = vadd.f32 %v1892_v14, %v1828_v24  ;;  %v2187_v9 = vsel %vm2123_vm7, %v2091_v20, %v2155_v49  ;;  %v2253_v49 = vpop.f32.mrf.mxu0 }
 0x2c7   :  { %2338 = vmatmul.f32.gmra.mxu1 %v2187_v9  ;;  %v2071_v9 = vld [vmem:[#allocation8 + $0xd8] sm:$0xff] }
 0x2c8   :  { %v2029_v50 = vmul.f32 %v4627_v62, %v1893_v63  ;;  %v1833_v48 = vpop.f32.mrf.mxu2  ;;  %v1777_v44 = vpop.f32.mrf.mxu1 }
 0x2c9   :  { %v1834_v39 = vadd.f32 %v1833_v48, %v1769_v30  ;;  %v1778_v15 = vadd.f32 %v1777_v44, %v1712_v38 }
 0x2ca   :  { %v2093_v16 = vadd.f32 %v2061_v2, %v2029_v50 }
 0x2cc   :  { %vm2125_vm8 = vcmp.gt.f32.partialorder %v2093_v16, 0.0  ;;  %v2157_v22 = vmul.f32 0.01, %v2093_v16 }
 0x2cd   :  { %v1895_v41 = vpop.f32.mrf.mxu3 }
 0x2ce   :  { %v1896_v46 = vadd.f32 %v1895_v41, %v1831_v18  ;;  %v2189_v61 = vsel %vm2125_vm8, %v2093_v16, %v2157_v22  ;;  %v2073_v41 = vld [vmem:[#allocation8 + $0xe8] sm:$0xff] }
 0x2cf   :  { %2341 = vmatmul.f32.gmra.mxu1 %v2189_v61 }
 0x2d0   :  { %v2031_v7 = vmul.f32 %v4641_v36, %v1896_v46  ;;  %v1836_v10 = vpop.f32.mrf.mxu2  ;;  %v1780_v20 = vpop.f32.mrf.mxu1 }
 0x2d1   :  { %v1837_v36 = vadd.f32 %v1836_v10, %v1772_v56  ;;  %v1781_v31 = vadd.f32 %v1780_v20, %v1715_v19  ;;  %v2256_v46 = vpop.f32.mrf.mxu0  ;;  %v2385_v19 = vpop.permute.xlu2 %2384 }
 0x2d2   :  { %v2095_v52 = vadd.f32 %v2063_v51, %v2031_v7 }
 0x2d4   :  { %vm2127_vm9 = vcmp.gt.f32.partialorder %v2095_v52, 0.0  ;;  %v2159_v62 = vmul.f32 0.01, %v2095_v52 }
 0x2d5   :  { %v1898_v42 = vpop.f32.mrf.mxu3 }
 0x2d6   :  { %v1899_v55 = vadd.f32 %v1898_v42, %v1834_v39  ;;  %v2191_v17 = vsel %vm2127_vm9, %v2095_v52, %v2159_v62  ;;  %v2075_v39 = vld [vmem:[#allocation8 + $0xf8] sm:$0xff]  ;;  %vm3098_vm9 = vcmask 1041409  }
 0x2d7   :  { %2344 = vmatmul.f32.gmra.mxu1 %v2191_v17 }
 0x2d8   :  { %v2033_v28 = vmul.f32 %v4653_v6, %v1899_v55  ;;  %v1839_v11 = vpop.f32.mrf.mxu2  ;;  %v1783_v22 = vpop.f32.mrf.mxu1 }
 0x2d9   :  { %v1840_v12 = vadd.f32 %v1839_v11, %v1775_v25  ;;  %v1784_v51 = vadd.f32 %v1783_v22, %v1718_v26  ;;  %v2259_v42 = vpop.f32.mrf.mxu0 }
 0x2da   :  { %v2097_v40 = vadd.f32 %v2065_v4, %v2033_v28  ;;  %v3361_v4 = vmov 8.0  }
 0x2db   :  { %3192 = vrcp.f32 %v3361_v4 }
 0x2dc   :  { %vm2129_vm10 = vcmp.gt.f32.partialorder %v2097_v40, 0.0  ;;  %v2161_v37 = vmul.f32 0.01, %v2097_v40 }
 0x2dd   :  { %v1901_v13 = vpop.f32.mrf.mxu3 }
 0x2de   :  { %v1902_v53 = vadd.f32 %v1901_v13, %v1837_v36  ;;  %v2193_v23 = vsel %vm2129_vm10, %v2097_v40, %v2161_v37  ;;  %v2478_v36 = vld [vmem:[%s5216_s11] sm:$0xff] }
 0x2df   :  { %2347 = vmatmul.f32.gmra.mxu1 %v2193_v23  ;;  %v2390_v23 = vpop.permute.xlu0 %2389 }
 0x2e0   :  { %v2035_v32 = vmul.f32 %v4665_v33, %v1902_v53  ;;  %v1842_v43 = vpop.f32.mrf.mxu2 }
 0x2e1   :  { %v1843_v59 = vadd.f32 %v1842_v43, %v1778_v15  ;;  %v3193_v28 = vpop.eup %3192  ;;  %v2262_v27 = vpop.f32.mrf.mxu0 }
 0x2e2   :  { %v2099_v57 = vadd.f32 %v2067_v0, %v2035_v32  ;;  %v2624_v11 = vmul.f32 8.0, %v3193_v28  ;;  %vm2628_vm1 = vweird.f32 %v3193_v28  ;;  %v4747_v15 = vpop.permute.xlu2 %2429 }
 0x2e4   :  { %vm2131_vm11 = vcmp.gt.f32.partialorder %v2099_v57, 0.0  ;;  %v2163_v6 = vmul.f32 0.01, %v2099_v57  ;;  %v2625_v13 = vsub.f32 1.0, %v2624_v11  ;;  %v2680_v11 = vld [vmem:[%s5206_s1 + $0x8] sm:$0xff] }
 0x2e5   :  { %v1904_v35 = vpop.f32.mrf.mxu3 }
 0x2e6   :  { %v1905_v34 = vadd.f32 %v1904_v35, %v1840_v12  ;;  %v2195_v54 = vsel %vm2131_vm11, %v2099_v57, %v2163_v6  ;;  %v2626_v25 = vmul.f32 %v3193_v28, %v2625_v13  ;;  %v2479_v6 = vld [vmem:[%s5216_s11 + $0x8] sm:$0xff] }
 0x2e7   :  { %2350 = vmatmul.f32.gmra.mxu1 %v2195_v54  ;;  %v4744_v54 = vpop.permute.xlu1 %2424 }
 0x2e8   :  { %v2037_v29 = vmul.f32 %v4679_v21, %v1905_v34  ;;  %v1845_v63 = vpop.f32.mrf.mxu2  ;;  %v2627_v26 = vadd.f32 %v3193_v28, %v2626_v25 }
 0x2e9   :  { %v1846_v48 = vadd.f32 %v1845_v63, %v1781_v31  ;;  %v2265_v44 = vpop.f32.mrf.mxu0  ;;  %v2480_v63 = vld [vmem:[%s5216_s11 + $0x10] sm:$0xff] }
 0x2ea   :  { %v2101_v45 = vadd.f32 %v2069_v3, %v2037_v29  ;;  %v4749_v20 = vsel %vm2628_vm1, %v3193_v28, %v2627_v26 }
 0x2ec   :  { %vm2133_vm12 = vcmp.gt.f32.partialorder %v2101_v45, 0.0  ;;  %v2165_v33 = vmul.f32 0.01, %v2101_v45 }
 0x2ed   :  { %v1907_v24 = vpop.f32.mrf.mxu3 }
 0x2ee   :  { %v1908_v8 = vadd.f32 %v1907_v24, %v1843_v59  ;;  %v2197_v14 = vsel %vm2133_vm12, %v2101_v45, %v2165_v33  ;;  %vm3100_vm12 = vcmask 1042434  }
 0x2ef   :  { %2353 = vmatmul.f32.gmra.mxu1 %v2197_v14 }
 0x2f0   :  { %v2039_v2 = vmul.f32 %v4691_v60, %v1908_v8  ;;  %v1848_v58 = vpop.f32.mrf.mxu2 }
 0x2f1   :  { %v1849_v10 = vadd.f32 %v1848_v58, %v1784_v51  ;;  %v2400_v51 = vpop.permute.xlu2 %2399 }
 0x2f2   :  { %v2103_v50 = vadd.f32 %v2071_v9, %v2039_v2  ;;  %v2268_v2 = vpop.f32.mrf.mxu0 }
 0x2f4   :  { %vm2135_vm13 = vcmp.gt.f32.partialorder %v2103_v50, 0.0  ;;  %v2167_v21 = vmul.f32 0.01, %v2103_v50 }
 0x2f5   :  { %v1910_v5 = vpop.f32.mrf.mxu3 }
 0x2f6   :  { %v1911_v16 = vadd.f32 %v1910_v5, %v1846_v48  ;;  %v2199_v18 = vsel %vm2135_vm13, %v2103_v50, %v2167_v21 }
 0x2f7   :  { %2356 = vmatmul.f32.gmra.mxu1 %v2199_v18 }
 0x2f8   :  { %v2041_v61 = vmul.f32 %v4699_v1, %v1911_v16  ;;  %v4757_v16 = vpop.permute.xlu1 %2434 }
 0x2fa   :  { %v2105_v7 = vadd.f32 %v2073_v41, %v2041_v61  ;;  %v2695_v61 = vld [vmem:[%s5207_s2] sm:$0xff] }
 0x2fc   :  { %vm2137_vm14 = vcmp.gt.f32.partialorder %v2105_v7, 0.0  ;;  %v2169_v60 = vmul.f32 0.01, %v2105_v7 }
 0x2fd   :  { %v1913_v30 = vpop.f32.mrf.mxu3 }
 0x2fe   :  { %v1914_v38 = vadd.f32 %v1913_v30, %v1849_v10  ;;  %v2201_v52 = vsel %vm2137_vm14, %v2105_v7, %v2169_v60  ;;  %v2481_v60 = vld [vmem:[%s5216_s11 + $0x18] sm:$0xff] }
 0x2ff   :  { %2359 = vmatmul.f32.gmra.mxu1 %v2201_v52 }
 0x300   :  { %v2043_v62 = vmul.f32 %v4707_v47, %v1914_v38 }
 0x302   :  { %v2107_v55 = vadd.f32 %v2075_v39, %v2043_v62 }
 0x304   :  { %vm2139_vm15 = vcmp.gt.f32.partialorder %v2107_v55, 0.0  ;;  %v2171_v17 = vmul.f32 0.01, %v2107_v55 }
 0x306   :  { %v2203_v1 = vsel %vm2139_vm15, %v2107_v55, %v2171_v17  ;;  %v2271_v55 = vpop.f32.mrf.mxu0 }
 0x307   :  { %2362 = vmatmul.f32.gmra.mxu1 %v2203_v1 }
 0x30c   :  { %v2318_v56 = vpop.f32.mrf.mxu1 }
 0x30d   :  { %v2319_v40 = vadd.f32 %v2318_v56, %v2253_v49  ;;  %v2395_v49 = vpop.permute.xlu0 %2394 }
 0x30f   :  { %v2462_v37 = vmul.f32 %v2385_v19, %v2319_v40  ;;  %v2696_v19 = vld [vmem:[%s5207_s2 + $0x8] sm:$0xff] }
 0x310   :  { %v2712_v25 = vadd.f32 %v2696_v19, %v2680_v11 }
 0x311   :  { %v2494_v47 = vadd.f32 %v2478_v36, %v2462_v37 }
 0x313   :  { %v2511_v53 = vsel %vm2510_vm0, %v2494_v47, 0.0  ;;  %v2405_v47 = vpop.permute.xlu1 %2404 }
 0x314   :  { %v2512_v0 = vrot.slane %v2511_v53, 4  ;;  %v2321_v32 = vpop.f32.mrf.mxu1 }
 0x315   :  { %v2322_v57 = vadd.f32 %v2321_v32, %v2256_v46  ;;  %v2679_v46 = vld [vmem:[%s5206_s1] sm:$0xff]  ;;  %v4771_v28 = vpop.permute.xlu0 %2439 }
 0x316   :  { %v2513_v12 = vadd.f32 %v2512_v0, %v2511_v53  ;;  %v2711_v38 = vadd.f32 %v2695_v61, %v2679_v46 }
 0x317   :  { %v2463_v43 = vmul.f32 %v2390_v23, %v2322_v57  ;;  %v2482_v23 = vld [vmem:[%s5216_s11 + $0x20] sm:$0xff] }
 0x318   :  { %v2514_v35 = vrot.slane %v2513_v12, 2 }
 0x319   :  { %v2495_v34 = vadd.f32 %v2479_v6, %v2463_v43 }
 0x31a   :  { %v2515_v3 = vadd.f32 %v2514_v35, %v2513_v12  ;;  %v4785_v35 = vpop.permute.xlu2 %2444 }
 0x31b   :  { %v2518_v29 = vsel %vm2510_vm0, %v2495_v34, 0.0 }
 0x31c   :  { %v2516_v45 = vrot.slane %v2515_v3, 1  ;;  %v2519_v59 = vrot.slane %v2518_v29, 4  ;;  %v2324_v33 = vpop.f32.mrf.mxu1 }
 0x31d   :  { %v2325_v24 = vadd.f32 %v2324_v33, %v2259_v42  ;;  %v2681_v33 = vld [vmem:[%s5206_s1 + $0x10] sm:$0xff] }
 0x31e   :  { %v2517_v8 = vadd.f32 %v2516_v45, %v2515_v3  ;;  %v2520_v14 = vadd.f32 %v2519_v59, %v2518_v29  ;;  %v2274_v3 = vpop.f32.mrf.mxu0 }
 0x31f   :  { %v2464_v9 = vmul.f32 %v2395_v49, %v2325_v24  ;;  %v2697_v24 = vld [vmem:[%s5207_s2 + $0x10] sm:$0xff] }
 0x320   :  { %v2630_v31 = vmul.f32 %v4749_v20, %v2517_v8  ;;  %v2521_v50 = vrot.slane %v2520_v14, 2 }
 0x321   :  { %v2496_v48 = vadd.f32 %v2480_v63, %v2464_v9 }
 0x322   :  { %2647 = vst.msk [vmem:[#allocation2] sm:$0x1] %vm2646_vm2, %v2630_v31  ;;  %v2522_v21 = vadd.f32 %v2521_v50, %v2520_v14  ;;  %v2410_v14 = vpop.permute.xlu0 %2409  ;;  %v2483_v31 = vld [vmem:[%s5216_s11 + $0x28] sm:$0xff] }
 0x323   :  { %v2525_v5 = vsel %vm2510_vm0, %v2496_v48, 0.0 }
 0x324   :  { %v2523_v18 = vrot.slane %v2522_v21, 1  ;;  %v2526_v22 = vrot.slane %v2525_v5, 4  ;;  %v2327_v41 = vpop.f32.mrf.mxu1 }
 0x325   :  { %v2328_v58 = vadd.f32 %v2327_v41, %v2262_v27 }
 0x326   :  { %v2524_v7 = vadd.f32 %v2523_v18, %v2522_v21  ;;  %v2527_v10 = vadd.f32 %v2526_v22, %v2525_v5  ;;  %v2713_v21 = vadd.f32 %v2697_v24, %v2681_v33 }
 0x327   :  { %v2465_v30 = vmul.f32 %v2400_v51, %v2328_v58  ;;  %v4801_v58 = vpop.permute.xlu1 %2449 }
 0x328   :  { %v2631_v52 = vmul.f32 %v4749_v20, %v2524_v7  ;;  %v2528_v39 = vrot.slane %v2527_v10, 2 }
 0x329   :  { %v2497_v62 = vadd.f32 %v2481_v60, %v2465_v30  ;;  %v3176_v42 = vld [vmem:[#allocation2] ss:$0 sm:$0xff]  ;;  %v2682_v60 = vld [vmem:[%s5206_s1 + $0x18] sm:$0xff] }
 0x32a   :  { %2648 = vst.msk [vmem:[#allocation2 + $0x1] sm:$0x1] %vm2646_vm2, %v2631_v52  ;;  %v2529_v17 = vadd.f32 %v2528_v39, %v2527_v10  ;;  %v2775_v1 = vsub.f32 %v2711_v38, %v3176_v42  ;;  %v2698_v30 = vld [vmem:[%s5207_s2 + $0x18] sm:$0xff]  ;;  %v2415_v39 = vpop.permute.xlu2 %2414 }
 0x32b   :  { %v2532_v4 = vsel %vm2510_vm0, %v2497_v62, 0.0  ;;  %v2277_v62 = vpop.f32.mrf.mxu0 }
 0x32c   :  { %v2530_v27 = vrot.slane %v2529_v17, 1  ;;  %v2533_v56 = vrot.slane %v2532_v4, 4  ;;  %v2330_v40 = vpop.f32.mrf.mxu1  ;;  %v2791_v37 = vmul.f32 %v2775_v1, %v2775_v1 }
 0x32d   :  { %v2331_v36 = vadd.f32 %v2330_v40, %v2265_v44 }
 0x32e   :  { %v2531_v13 = vadd.f32 %v2530_v27, %v2529_v17  ;;  %v2534_v53 = vadd.f32 %v2533_v56, %v2532_v4  ;;  %v2808_v32 = vsel %vm2510_vm0, %v2791_v37, 0.0  ;;  %v2484_v4 = vld [vmem:[%s5216_s11 + $0x30] sm:$0xff]  ;;  %v2714_v56 = vadd.f32 %v2698_v30, %v2682_v60 }
 0x32f   :  { %v2466_v0 = vmul.f32 %v2405_v47, %v2331_v36  ;;  %2809 = vadd.xlane.f32.xlu0 %v2808_v32  ;;  %v2699_v32 = vld [vmem:[%s5207_s2 + $0x20] sm:$0xff] }
 0x330   :  { %v2632_v57 = vmul.f32 %v4749_v20, %v2531_v13  ;;  %v2535_v12 = vrot.slane %v2534_v53, 2 }
 0x331   :  { %v2498_v6 = vadd.f32 %v2482_v23, %v2466_v0  ;;  %v3177_v43 = vld [vmem:[#allocation2 + $0x1] ss:$0 sm:$0xff] }
 0x332   :  { %2649 = vst.msk [vmem:[#allocation2 + $0x2] sm:$0x1] %vm2646_vm2, %v2632_v57  ;;  %v2536_v44 = vadd.f32 %v2535_v12, %v2534_v53  ;;  %v2776_v34 = vsub.f32 %v2712_v25, %v3177_v43  ;;  %v2683_v0 = vld [vmem:[%s5206_s1 + $0x20] sm:$0xff]  ;;  %v2420_v12 = vpop.permute.xlu1 %2419 }
 0x333   :  { %v2539_v26 = vsel %vm2510_vm0, %v2498_v6, 0.0 }
 0x334   :  { %v2537_v29 = vrot.slane %v2536_v44, 1  ;;  %v2540_v45 = vrot.slane %v2539_v26, 4  ;;  %v2333_v59 = vpop.f32.mrf.mxu1  ;;  %v2792_v8 = vmul.f32 %v2776_v34, %v2776_v34 }
 0x335   :  { %v2334_v49 = vadd.f32 %v2333_v59, %v2268_v2 }
 0x336   :  { %v2538_v63 = vadd.f32 %v2537_v29, %v2536_v44  ;;  %v2541_v9 = vadd.f32 %v2540_v45, %v2539_v26  ;;  %v2811_v48 = vsel %vm2510_vm0, %v2792_v8, 0.0  ;;  %v2485_v44 = vld [vmem:[%s5216_s11 + $0x38] sm:$0xff]  ;;  %v2715_v29 = vadd.f32 %v2699_v32, %v2683_v0  ;;  %v2280_v45 = vpop.f32.mrf.mxu0 }
 0x337   :  { %v2467_v50 = vmul.f32 %v2410_v14, %v2334_v49  ;;  %2812 = vadd.xlane.f32.xlu1 %v2811_v48  ;;  %v2700_v48 = vld [vmem:[%s5207_s2 + $0x28] sm:$0xff] }
 0x338   :  { %v2633_v5 = vmul.f32 %v4749_v20, %v2538_v63  ;;  %v2542_v18 = vrot.slane %v2541_v9, 2 }
 0x339   :  { %v2499_v22 = vadd.f32 %v2483_v31, %v2467_v50  ;;  %v3178_v41 = vld [vmem:[#allocation2 + $0x2] ss:$0 sm:$0xff]  ;;  %v2684_v50 = vld [vmem:[%s5206_s1 + $0x28] sm:$0xff] }
 0x33a   :  { %2650 = vst.msk [vmem:[#allocation2 + $0x3] sm:$0x1] %vm2646_vm2, %v2633_v5  ;;  %v2543_v2 = vadd.f32 %v2542_v18, %v2541_v9  ;;  %v2777_v61 = vsub.f32 %v2713_v21, %v3178_v41  ;;  %v2486_v41 = vld [vmem:[%s5216_s11 + $0x40] sm:$0xff] }
 0x33b   :  { %v2546_v46 = vsel %vm2510_vm0, %v2499_v22, 0.0 }
 0x33c   :  { %v2544_v51 = vrot.slane %v2543_v2, 1  ;;  %v2547_v7 = vrot.slane %v2546_v46, 4  ;;  %v2336_v10 = vpop.f32.mrf.mxu1  ;;  %v2793_v52 = vmul.f32 %v2777_v61, %v2777_v61  ;;  %v2716_v61 = vadd.f32 %v2700_v48, %v2684_v50 }
 0x33d   :  { %v2337_v38 = vadd.f32 %v2336_v10, %v2271_v55 }
 0x33e   :  { %v2545_v42 = vadd.f32 %v2544_v51, %v2543_v2  ;;  %v2548_v17 = vadd.f32 %v2547_v7, %v2546_v46  ;;  %v2814_v27 = vsel %vm2510_vm0, %v2793_v52, 0.0  ;;  %v2283_v30 = vpop.f32.mrf.mxu0 }
 0x33f   :  { %v2468_v1 = vmul.f32 %v2415_v39, %v2337_v38  ;;  %2815 = vadd.xlane.f32.xlu0 %v2814_v27 }
 0x340   :  { %v2634_v40 = vmul.f32 %v4749_v20, %v2545_v42  ;;  %v2549_v11 = vrot.slane %v2548_v17, 2 }
 0x341   :  { %v2500_v19 = vadd.f32 %v2484_v4, %v2468_v1  ;;  %v3179_v36 = vld [vmem:[#allocation2 + $0x3] ss:$0 sm:$0xff]  ;;  %v2701_v4 = vld [vmem:[%s5207_s2 + $0x30] sm:$0xff] }
 0x342   :  { %2651 = vst.msk [vmem:[#allocation2 + $0x4] sm:$0x1] %vm2646_vm2, %v2634_v40  ;;  %v2550_v55 = vadd.f32 %v2549_v11, %v2548_v17  ;;  %v2778_v47 = vsub.f32 %v2714_v56, %v3179_v36  ;;  %v2487_v11 = vld [vmem:[%s5216_s11 + $0x48] sm:$0xff] }
 0x343   :  { %v2553_v37 = vsel %vm2510_vm0, %v2500_v19, 0.0 }
 0x344   :  { %v2551_v13 = vrot.slane %v2550_v55, 1  ;;  %v2554_v53 = vrot.slane %v2553_v37, 4  ;;  %v2339_v23 = vpop.f32.mrf.mxu1  ;;  %v2794_v57 = vmul.f32 %v2778_v47, %v2778_v47 }
 0x345   :  { %v2340_v25 = vadd.f32 %v2339_v23, %v2274_v3 }
 0x346   :  { %v2552_v6 = vadd.f32 %v2551_v13, %v2550_v55  ;;  %v2555_v43 = vadd.f32 %v2554_v53, %v2553_v37  ;;  %v2817_v34 = vsel %vm2510_vm0, %v2794_v57, 0.0 }
 0x347   :  { %v2469_v26 = vmul.f32 %v2420_v12, %v2340_v25  ;;  %2818 = vadd.xlane.f32.xlu2 %v2817_v34  ;;  %v2286_v25 = vpop.f32.mrf.mxu0  ;;  %v2488_v34 = vld [vmem:[%s5216_s11 + $0x50] sm:$0xff] }
 0x348   :  { %v2635_v59 = vmul.f32 %v4749_v20, %v2552_v6  ;;  %v2556_v33 = vrot.slane %v2555_v43, 2 }
 0x349   :  { %v2501_v24 = vadd.f32 %v2485_v44, %v2469_v26  ;;  %v3180_v49 = vld [vmem:[#allocation2 + $0x4] ss:$0 sm:$0xff] }
 0x34a   :  { %2652 = vst.msk [vmem:[#allocation2 + $0x5] sm:$0x1] %vm2646_vm2, %v2635_v59  ;;  %v2557_v3 = vadd.f32 %v2556_v33, %v2555_v43  ;;  %v2779_v14 = vsub.f32 %v2715_v29, %v3180_v49 }
 0x34b   :  { %v2560_v8 = vsel %vm2510_vm0, %v2501_v24, 0.0 }
 0x34c   :  { %v2558_v63 = vrot.slane %v2557_v3, 1  ;;  %v2561_v9 = vrot.slane %v2560_v8, 4  ;;  %v2342_v31 = vpop.f32.mrf.mxu1  ;;  %v2795_v5 = vmul.f32 %v2779_v14, %v2779_v14 }
 0x34d   :  { %v2343_v21 = vadd.f32 %v2342_v31, %v2277_v62 }
 0x34e   :  { %v2559_v18 = vadd.f32 %v2558_v63, %v2557_v3  ;;  %v2562_v22 = vadd.f32 %v2561_v9, %v2560_v8  ;;  %v2820_v46 = vsel %vm2510_vm0, %v2795_v5, 0.0  ;;  %v2687_v9 = vld [vmem:[%s5206_s1 + $0x40] sm:$0xff]  ;;  %v2489_v5 = vld [vmem:[%s5216_s11 + $0x58] sm:$0xff] }
 0x34f   :  { %v2470_v2 = vmul.f32 %v4744_v54, %v2343_v21  ;;  %2821 = vadd.xlane.f32.xlu1 %v2820_v46  ;;  %v2685_v54 = vld [vmem:[%s5206_s1 + $0x30] sm:$0xff]  ;;  %v2289_v50 = vpop.f32.mrf.mxu0 }
 0x350   :  { %v2636_v51 = vmul.f32 %v4749_v20, %v2559_v18  ;;  %v2563_v7 = vrot.slane %v2562_v22, 2  ;;  %v2717_v55 = vadd.f32 %v2701_v4, %v2685_v54  ;;  %v2490_v54 = vld [vmem:[%s5216_s11 + $0x60] sm:$0xff] }
 0x351   :  { %v2502_v10 = vadd.f32 %v2486_v41, %v2470_v2  ;;  %v3181_v60 = vld [vmem:[#allocation2 + $0x5] ss:$0 sm:$0xff] }
 0x352   :  { %2653 = vst.msk [vmem:[#allocation2 + $0x6] sm:$0x1] %vm2646_vm2, %v2636_v51  ;;  %v2564_v38 = vadd.f32 %v2563_v7, %v2562_v22  ;;  %v2780_v39 = vsub.f32 %v2716_v61, %v3181_v60 }
 0x353   :  { %v2567_v52 = vsel %vm2510_vm0, %v2502_v10, 0.0 }
 0x354   :  { %v2565_v62 = vrot.slane %v2564_v38, 1  ;;  %v2568_v42 = vrot.slane %v2567_v52, 4  ;;  %v2345_v17 = vpop.f32.mrf.mxu1  ;;  %v2796_v27 = vmul.f32 %v2780_v39, %v2780_v39 }
 0x355   :  { %v2346_v1 = vadd.f32 %v2345_v17, %v2280_v45 }
 0x356   :  { %v2566_v56 = vadd.f32 %v2565_v62, %v2564_v38  ;;  %v2569_v40 = vadd.f32 %v2568_v42, %v2567_v52  ;;  %v2823_v36 = vsel %vm2510_vm0, %v2796_v27, 0.0  ;;  %v2688_v52 = vld [vmem:[%s5206_s1 + $0x48] sm:$0xff] }
 0x357   :  { %v2471_v19 = vmul.f32 %v4747_v15, %v2346_v1  ;;  %2824 = vadd.xlane.f32.xlu0 %v2823_v36 }
 0x358   :  { %v2637_v37 = vmul.f32 %v4749_v20, %v2566_v56  ;;  %v2570_v47 = vrot.slane %v2569_v40, 2  ;;  %v2292_v56 = vpop.f32.mrf.mxu0 }
 0x359   :  { %v2503_v13 = vadd.f32 %v2487_v11, %v2471_v19  ;;  %v3182_v53 = vld [vmem:[#allocation2 + $0x6] ss:$0 sm:$0xff] }
 0x35a   :  { %2654 = vst.msk [vmem:[#allocation2 + $0x7] sm:$0x1] %vm2646_vm2, %v2637_v37  ;;  %v2571_v23 = vadd.f32 %v2570_v47, %v2569_v40  ;;  %v2781_v32 = vsub.f32 %v2717_v55, %v3182_v53 }
 0x35b   :  { %v2574_v0 = vsel %vm2510_vm0, %v2503_v13, 0.0 }
 0x35c   :  { %v2572_v57 = vrot.slane %v2571_v23, 1  ;;  %v2575_v12 = vrot.slane %v2574_v0, 4  ;;  %v2348_v6 = vpop.f32.mrf.mxu1  ;;  %v2797_v43 = vmul.f32 %v2781_v32, %v2781_v32 }
 0x35d   :  { %v2349_v15 = vadd.f32 %v2348_v6, %v2283_v30  ;;  %v2491_v6 = vld [vmem:[%s5216_s11 + $0x68] sm:$0xff] }
 0x35e   :  { %v2573_v44 = vadd.f32 %v2572_v57, %v2571_v23  ;;  %v2576_v26 = vadd.f32 %v2575_v12, %v2574_v0  ;;  %v2826_v45 = vsel %vm2510_vm0, %v2797_v43, 0.0  ;;  %v2705_v0 = vld [vmem:[%s5207_s2 + $0x50] sm:$0xff] }
 0x35f   :  { %v2472_v29 = vmul.f32 %v4757_v16, %v2349_v15  ;;  %2827 = vadd.xlane.f32.xlu2 %v2826_v45  ;;  %v2703_v16 = vld [vmem:[%s5207_s2 + $0x40] sm:$0xff] }
 0x360   :  { %v2638_v59 = vmul.f32 %v4749_v20, %v2573_v44  ;;  %v2577_v33 = vrot.slane %v2576_v26, 2  ;;  %v2719_v22 = vadd.f32 %v2703_v16, %v2687_v9 }
 0x361   :  { %v2504_v24 = vadd.f32 %v2488_v34, %v2472_v29 }
 0x362   :  { %2655 = vst.msk [vmem:[#allocation2 + $0x8] sm:$0x1] %vm2646_vm2, %v2638_v59  ;;  %v2578_v49 = vadd.f32 %v2577_v33, %v2576_v26  ;;  %v2295_v59 = vpop.f32.mrf.mxu0 }
 0x363   :  { %v2581_v3 = vsel %vm2510_vm0, %v2504_v24, 0.0 }
 0x364   :  { %v2579_v8 = vrot.slane %v2578_v49, 1  ;;  %v2582_v14 = vrot.slane %v2581_v3, 4  ;;  %v2351_v63 = vpop.f32.mrf.mxu1 }
 0x365   :  { %v2352_v31 = vadd.f32 %v2351_v63, %v2286_v25  ;;  %v2706_v63 = vld [vmem:[%s5207_s2 + $0x58] sm:$0xff] }
 0x366   :  { %v2580_v48 = vadd.f32 %v2579_v8, %v2578_v49  ;;  %v2583_v21 = vadd.f32 %v2582_v14, %v2581_v3 }
 0x367   :  { %v2473_v18 = vmul.f32 %v4771_v28, %v2352_v31  ;;  %v2704_v28 = vld [vmem:[%s5207_s2 + $0x48] sm:$0xff]  ;;  %v2455_v31 = vpop.permute.xlu0 %2454 }
 0x368   :  { %v2639_v41 = vmul.f32 %v4749_v20, %v2580_v48  ;;  %v2584_v2 = vrot.slane %v2583_v21, 2  ;;  %v2720_v27 = vadd.f32 %v2704_v28, %v2688_v52  ;;  %v2691_v28 = vld [vmem:[%s5206_s1 + $0x60] sm:$0xff] }
 0x369   :  { %v2505_v46 = vadd.f32 %v2489_v5, %v2473_v18  ;;  %v3183_v61 = vld [vmem:[#allocation2 + $0x8] ss:$0 sm:$0xff] }
 0x36a   :  { %2656 = vst.msk [vmem:[#allocation2 + $0x9] sm:$0x1] %vm2646_vm2, %v2639_v41  ;;  %v2585_v51 = vadd.f32 %v2584_v2, %v2583_v21  ;;  %v2783_v10 = vsub.f32 %v2719_v22, %v3183_v61  ;;  %v2492_v21 = vld [vmem:[%s5216_s11 + $0x70] sm:$0xff] }
 0x36b   :  { %v2588_v7 = vsel %vm2510_vm0, %v2505_v46, 0.0 }
 0x36c   :  { %v2586_v60 = vrot.slane %v2585_v51, 1  ;;  %v2589_v30 = vrot.slane %v2588_v7, 4  ;;  %v2354_v38 = vpop.f32.mrf.mxu1  ;;  %v2799_v62 = vmul.f32 %v2783_v10, %v2783_v10 }
 0x36d   :  { %v2355_v39 = vadd.f32 %v2354_v38, %v2289_v50 }
 0x36e   :  { %v2587_v42 = vadd.f32 %v2586_v60, %v2585_v51  ;;  %v2590_v17 = vadd.f32 %v2589_v30, %v2588_v7  ;;  %v2832_v1 = vsel %vm2510_vm0, %v2799_v62, 0.0  ;;  %v2298_v60 = vpop.f32.mrf.mxu0 }
 0x36f   :  { %v2474_v4 = vmul.f32 %v4785_v35, %v2355_v39  ;;  %2833 = vadd.xlane.f32.xlu2 %v2832_v1  ;;  %v2689_v35 = vld [vmem:[%s5206_s1 + $0x50] sm:$0xff]  ;;  %v2707_v39 = vld [vmem:[%s5207_s2 + $0x60] sm:$0xff]  ;;  %v2493_v1 = vld [vmem:[%s5216_s11 + $0x78] sm:$0xff] }
 0x370   :  { %v2640_v40 = vmul.f32 %v4749_v20, %v2587_v42  ;;  %v2591_v11 = vrot.slane %v2590_v17, 2  ;;  %v2721_v44 = vadd.f32 %v2705_v0, %v2689_v35  ;;  %v2692_v35 = vld [vmem:[%s5206_s1 + $0x68] sm:$0xff] }
 0x371   :  { %v2506_v19 = vadd.f32 %v2490_v54, %v2474_v4  ;;  %v3184_v36 = vld [vmem:[#allocation2 + $0x9] ss:$0 sm:$0xff] }
 0x372   :  { %2657 = vst.msk [vmem:[#allocation2 + $0xa] sm:$0x1] %vm2646_vm2, %v2640_v40  ;;  %v2592_v55 = vadd.f32 %v2591_v11, %v2590_v17  ;;  %v2784_v47 = vsub.f32 %v2720_v27, %v3184_v36  ;;  %v2460_v17 = vpop.permute.xlu2 %2459  ;;  %v2723_v40 = vadd.f32 %v2707_v39, %v2691_v28  ;;  %v2708_v0 = vld [vmem:[%s5207_s2 + $0x68] sm:$0xff] }
 0x373   :  { %v2595_v37 = vsel %vm2510_vm0, %v2506_v19, 0.0 }
 0x374   :  { %v2593_v13 = vrot.slane %v2592_v55, 1  ;;  %v2596_v53 = vrot.slane %v2595_v37, 4  ;;  %v2357_v23 = vpop.f32.mrf.mxu1  ;;  %v2800_v25 = vmul.f32 %v2784_v47, %v2784_v47 }
 0x375   :  { %v2358_v32 = vadd.f32 %v2357_v23, %v2292_v56 }
 0x376   :  { %v2594_v57 = vadd.f32 %v2593_v13, %v2592_v55  ;;  %v2597_v12 = vadd.f32 %v2596_v53, %v2595_v37  ;;  %v2835_v43 = vsel %vm2510_vm0, %v2800_v25, 0.0 }
 0x377   :  { %v2475_v15 = vmul.f32 %v4801_v58, %v2358_v32  ;;  %2836 = vadd.xlane.f32.xlu2 %v2835_v43  ;;  %v2690_v58 = vld [vmem:[%s5206_s1 + $0x58] sm:$0xff] }
 0x378   :  { %v2641_v26 = vmul.f32 %v4749_v20, %v2594_v57  ;;  %v2598_v34 = vrot.slane %v2597_v12, 2  ;;  %v2722_v22 = vadd.f32 %v2706_v63, %v2690_v58 }
 0x379   :  { %v2507_v29 = vadd.f32 %v2491_v6, %v2475_v15  ;;  %v3185_v45 = vld [vmem:[#allocation2 + $0xa] ss:$0 sm:$0xff]  ;;  %v2724_v6 = vadd.f32 %v2708_v0, %v2692_v35 }
 0x37a   :  { %2658 = vst.msk [vmem:[#allocation2 + $0xb] sm:$0x1] %vm2646_vm2, %v2641_v26  ;;  %v2599_v33 = vadd.f32 %v2598_v34, %v2597_v12  ;;  %v2785_v49 = vsub.f32 %v2721_v44, %v3185_v45  ;;  %v2686_v44 = vld [vmem:[%s5206_s1 + $0x38] sm:$0xff] }
 0x37b   :  { %v2602_v24 = vsel %vm2510_vm0, %v2507_v29, 0.0  ;;  %v2702_v26 = vld [vmem:[%s5207_s2 + $0x38] sm:$0xff] }
 0x37c   :  { %v2600_v3 = vrot.slane %v2599_v33, 1  ;;  %v2603_v8 = vrot.slane %v2602_v24, 4  ;;  %v2360_v14 = vpop.f32.mrf.mxu1  ;;  %v2801_v16 = vmul.f32 %v2785_v49, %v2785_v49  ;;  %v2693_v49 = vld [vmem:[%s5206_s1 + $0x70] sm:$0xff] }
 0x37d   :  { %v2361_v9 = vadd.f32 %v2360_v14, %v2295_v59  ;;  %v2718_v59 = vadd.f32 %v2702_v26, %v2686_v44 }
 0x37e   :  { %v2601_v50 = vadd.f32 %v2600_v3, %v2599_v33  ;;  %v2604_v48 = vadd.f32 %v2603_v8, %v2602_v24  ;;  %v2838_v18 = vsel %vm2510_vm0, %v2801_v16, 0.0  ;;  %v3189_v33 = vld [vmem:[#allocation2 + $0x7] ss:$0 sm:$0xff]  ;;  %v2709_v3 = vld [vmem:[%s5207_s2 + $0x70] sm:$0xff] }
 0x37f   :  { %v2476_v5 = vmul.f32 %v2455_v31, %v2361_v9  ;;  %2839 = vadd.xlane.f32.xlu1 %v2838_v18  ;;  %v2782_v63 = vsub.f32 %v2718_v59, %v3189_v33  ;;  %v2725_v9 = vadd.f32 %v2709_v3, %v2693_v49 }
 0x380   :  { %v2642_v41 = vmul.f32 %v4749_v20, %v2601_v50  ;;  %v2605_v2 = vrot.slane %v2604_v48, 2 }
 0x381   :  { %v2508_v46 = vadd.f32 %v2492_v21, %v2476_v5  ;;  %v3186_v61 = vld [vmem:[#allocation2 + $0xb] ss:$0 sm:$0xff]  ;;  %v2798_v50 = vmul.f32 %v2782_v63, %v2782_v63  ;;  %v2694_v21 = vld [vmem:[%s5206_s1 + $0x78] sm:$0xff] }
 0x382   :  { %2659 = vst.msk [vmem:[#allocation2 + $0xc] sm:$0x1] %vm2646_vm2, %v2642_v41  ;;  %v2606_v51 = vadd.f32 %v2605_v2, %v2604_v48  ;;  %v2786_v10 = vsub.f32 %v2722_v22, %v3186_v61  ;;  %v2710_v5 = vld [vmem:[%s5207_s2 + $0x78] sm:$0xff] }
 0x383   :  { %v2609_v7 = vsel %vm2510_vm0, %v2508_v46, 0.0  ;;  %v2829_v22 = vsel %vm2510_vm0, %v2798_v50, 0.0 }
 0x384   :  { %v2607_v30 = vrot.slane %v2606_v51, 1  ;;  %v2610_v38 = vrot.slane %v2609_v7, 4  ;;  %v2363_v52 = vpop.f32.mrf.mxu1  ;;  %v2802_v42 = vmul.f32 %v2786_v10, %v2786_v10 }
 0x385   :  { %v2364_v62 = vadd.f32 %v2363_v52, %v2298_v60 }
 0x386   :  { %v2608_v54 = vadd.f32 %v2607_v30, %v2606_v51  ;;  %v2611_v4 = vadd.f32 %v2610_v38, %v2609_v7  ;;  %v2841_v56 = vsel %vm2510_vm0, %v2802_v42, 0.0 }
 0x387   :  { %v2477_v27 = vmul.f32 %v2460_v17, %v2364_v62  ;;  %2842 = vadd.xlane.f32.xlu0 %v2841_v56 }
 0x388   :  { %v2643_v11 = vmul.f32 %v4749_v20, %v2608_v54  ;;  %v2612_v19 = vrot.slane %v2611_v4, 2 }
 0x389   :  { %v2509_v36 = vadd.f32 %v2493_v1, %v2477_v27  ;;  %v3187_v55 = vld [vmem:[#allocation2 + $0xc] ss:$0 sm:$0xff] }
 0x38a   :  { %2660 = vst.msk [vmem:[#allocation2 + $0xd] sm:$0x1] %vm2646_vm2, %v2643_v11  ;;  %v2613_v37 = vadd.f32 %v2612_v19, %v2611_v4  ;;  %v2787_v13 = vsub.f32 %v2723_v40, %v3187_v55 }
 0x38b   :  { %v2616_v47 = vsel %vm2510_vm0, %v2509_v36, 0.0 }
 0x38c   :  { %v2614_v53 = vrot.slane %v2613_v37, 1  ;;  %v2617_v23 = vrot.slane %v2616_v47, 4  ;;  %v2803_v32 = vmul.f32 %v2787_v13, %v2787_v13 }
 0x38e   :  { %v2615_v25 = vadd.f32 %v2614_v53, %v2613_v37  ;;  %v2618_v57 = vadd.f32 %v2617_v23, %v2616_v47  ;;  %v2844_v12 = vsel %vm2510_vm0, %v2803_v32, 0.0 }
 0x38f   :  { %2845 = vadd.xlane.f32.xlu2 %v2844_v12 }
 0x390   :  { %v2644_v15 = vmul.f32 %v4749_v20, %v2615_v25  ;;  %v2619_v43 = vrot.slane %v2618_v57, 2 }
 0x391   :  { %v3188_v34 = vld [vmem:[#allocation2 + $0xd] ss:$0 sm:$0xff] }
 0x392   :  { %2661 = vst.msk [vmem:[#allocation2 + $0xe] sm:$0x1] %vm2646_vm2, %v2644_v15  ;;  %v2620_v29 = vadd.f32 %v2619_v43, %v2618_v57  ;;  %v2788_v45 = vsub.f32 %v2724_v6, %v3188_v34  ;;  %v3080_v34 = vlaneseq }
 0x394   :  { %v2621_v24 = vrot.slane %v2620_v29, 1  ;;  %v2804_v8 = vmul.f32 %v2788_v45, %v2788_v45 }
 0x396   :  { %v2622_v14 = vadd.f32 %v2621_v24, %v2620_v29  ;;  %v2847_v58 = vsel %vm2510_vm0, %v2804_v8, 0.0 }
 0x397   :  { %2848 = vadd.xlane.f32.xlu1 %v2847_v58  ;;  %v5013_v58 = vand.u32 127, %v3080_v34 }
 0x398   :  { %v2645_v16 = vmul.f32 %v4749_v20, %v2622_v14  ;;  %v2726_v20 = vadd.f32 %v2710_v5, %v2694_v21 }
 0x399   :  { %v3190_v31 = vld [vmem:[#allocation2 + $0xe] ss:$0 sm:$0xff] }
 0x39a   :  { %2662 = vst.msk [vmem:[#allocation2 + $0xf] sm:$0x1] %vm2646_vm2, %v2645_v16  ;;  %v2789_v48 = vsub.f32 %v2725_v9, %v3190_v31  ;;  %vm3104_vm2 = vcmask 1044484  }
 0x39c   :  { %v2805_v18 = vmul.f32 %v2789_v48, %v2789_v48 }
 0x39e   :  { %v2850_v41 = vsel %vm2510_vm0, %v2805_v18, 0.0 }
 0x39f   :  { %2830 = vadd.xlane.f32.xlu1 %v2829_v22  ;;  %2851 = vadd.xlane.f32.xlu0 %v2850_v41 }
 0x3a1   :  { %v3191_v2 = vld [vmem:[#allocation2 + $0xf] ss:$0 sm:$0xff] }
 0x3a2   :  { %v2790_v46 = vsub.f32 %v2726_v20, %v3191_v2  ;;  %v4965_v7 = vpop.xlane.xlu0 %2809 }
 0x3a3   :  { %3194 = vrsqrt.f32 %v4965_v7  ;;  %vm2863_vm3 = vcmp.eq.f32.partialorder %v4965_v7, inf  ;;  %vm2865_vm4 = vcmp.eq.f32.partialorder %v4965_v7, 0.0  ;;  %v2866_v22 = vand.u32 2147483648, %v4965_v7 }
 0x3a4   :  { %v2806_v61 = vmul.f32 %v2790_v46, %v2790_v46 }
 0x3a6   :  { %v2853_v51 = vsel %vm2510_vm0, %v2806_v61, 0.0  ;;  %vm3102_vm0 = vcmask 1043459  }
 0x3a7   :  { %2854 = vadd.xlane.f32.xlu2 %v2853_v51 }
 0x3a9   :  { %v3195_v28 = vpop.eup %3194 }
 0x3aa   :  { %v4967_v10 = vpop.xlane.xlu1 %2812  ;;  %v2857_v17 = vmul.f32 %v3195_v28, %v4965_v7 }
 0x3ab   :  { %3196 = vrsqrt.f32 %v4967_v10  ;;  %vm2875_vm5 = vcmp.eq.f32.partialorder %v4967_v10, inf  ;;  %vm2877_vm6 = vcmp.eq.f32.partialorder %v4967_v10, 0.0  ;;  %v2878_v2 = vand.u32 2147483648, %v4967_v10 }
 0x3ac   :  { %v2858_v40 = vmul.f32 %v3195_v28, %v2857_v17 }
 0x3ae   :  { %v2859_v47 = vmul.f32 0.5, %v2858_v40 }
 0x3b0   :  { %v2860_v32 = vsub.f32 1.5, %v2859_v47 }
 0x3b1   :  { %v3197_v39 = vpop.eup %3196 }
 0x3b2   :  { %v4971_v30 = vpop.xlane.xlu0 %2815  ;;  %v2869_v54 = vmul.f32 %v3197_v39, %v4967_v10  ;;  %v2861_v29 = vmul.f32 %v3195_v28, %v2860_v32 }
 0x3b3   :  { %3198 = vrsqrt.f32 %v4971_v30  ;;  %vm2887_vm7 = vcmp.eq.f32.partialorder %v4971_v30, inf  ;;  %vm2889_vm8 = vcmp.eq.f32.partialorder %v4971_v30, 0.0 }
 0x3b4   :  { %v2870_v11 = vmul.f32 %v3197_v39, %v2869_v54  ;;  %v2862_v63 = vmul.f32 %v2861_v29, %v4965_v7 }
 0x3b6   :  { %v2871_v13 = vmul.f32 0.5, %v2870_v11  ;;  %v2864_v20 = vsel %vm2863_vm3, %v4965_v7, %v2862_v63 }
 0x3b8   :  { %v2872_v25 = vsub.f32 1.5, %v2871_v13 }
 0x3b9   :  { %v3199_v62 = vpop.eup %3198 }
 0x3ba   :  { %v4969_v60 = vpop.xlane.xlu2 %2818  ;;  %v2881_v4 = vmul.f32 %v3199_v62, %v4971_v30  ;;  %v2873_v45 = vmul.f32 %v3197_v39, %v2872_v25 }
 0x3bb   :  { %3200 = vrsqrt.f32 %v4969_v60  ;;  %vm2899_vm10 = vcmp.eq.f32.partialorder %v4969_v60, inf  ;;  %vm2901_vm11 = vcmp.eq.f32.partialorder %v4969_v60, 0.0 }
 0x3bc   :  { %v2882_v19 = vmul.f32 %v3199_v62, %v2881_v4  ;;  %v2874_v16 = vmul.f32 %v2873_v45, %v4967_v10 }
 0x3be   :  { %v2883_v53 = vmul.f32 0.5, %v2882_v19  ;;  %v2876_v61 = vsel %vm2875_vm5, %v4967_v10, %v2874_v16 }
 0x3bf   :  { %v2879_v19 = vsel %vm2877_vm6, %v2878_v2, %v2876_v61 }
 0x3c0   :  { %v2884_v12 = vsub.f32 1.5, %v2883_v53  ;;  %v3049_v53 = vsub.f32 0.0, %v2879_v19 }
 0x3c1   :  { %v3201_v1 = vpop.eup %3200 }
 0x3c2   :  { %v4976_v38 = vpop.xlane.xlu1 %2821  ;;  %v2893_v36 = vmul.f32 %v3201_v1, %v4969_v60  ;;  %v2885_v59 = vmul.f32 %v3199_v62, %v2884_v12 }
 0x3c3   :  { %3202 = vrsqrt.f32 %v4976_v38  ;;  %vm2911_vm13 = vcmp.eq.f32.partialorder %v4976_v38, inf  ;;  %vm2913_vm14 = vcmp.eq.f32.partialorder %v4976_v38, 0.0 }
 0x3c4   :  { %v2894_v23 = vmul.f32 %v3201_v1, %v2893_v36  ;;  %v2886_v31 = vmul.f32 %v2885_v59, %v4971_v30 }
 0x3c6   :  { %v2895_v6 = vmul.f32 0.5, %v2894_v23  ;;  %v2888_v51 = vsel %vm2887_vm7, %v4971_v30, %v2886_v31  ;;  %v2914_v23 = vand.u32 2147483648, %v4976_v38 }
 0x3c8   :  { %v2896_v33 = vsub.f32 1.5, %v2895_v6 }
 0x3c9   :  { %v3203_v56 = vpop.eup %3202 }
 0x3ca   :  { %v4982_v42 = vpop.xlane.xlu0 %2824  ;;  %v2905_v55 = vmul.f32 %v3203_v56, %v4976_v38  ;;  %v2897_v50 = vmul.f32 %v3201_v1, %v2896_v33  ;;  %v2867_v1 = vsel %vm2865_vm4, %v2866_v22, %v2864_v20 }
 0x3cb   :  { %3204 = vrsqrt.f32 %v4982_v42  ;;  %vm2923_vm15 = vcmp.eq.f32.partialorder %v4982_v42, inf  ;;  %vm2925_vm1 = vcmp.eq.f32.partialorder %v4982_v42, 0.0 }
 0x3cc   :  { %v2906_v35 = vmul.f32 %v3203_v56, %v2905_v55  ;;  %v2898_v28 = vmul.f32 %v2897_v50, %v4969_v60 }
 0x3ce   :  { %v2907_v43 = vmul.f32 0.5, %v2906_v35  ;;  %v2900_v55 = vsel %vm2899_vm10, %v4969_v60, %v2898_v28 }
 0x3d0   :  { %v2908_v49 = vsub.f32 1.5, %v2907_v43  ;;  %v3048_v43 = vsub.f32 0.0, %v2867_v1 }
 0x3d1   :  { %v4992_v37 = vpop.eup %3204 }
 0x3d2   :  { %v4978_v52 = vpop.xlane.xlu2 %2827  ;;  %v2917_v0 = vmul.f32 %v4992_v37, %v4982_v42  ;;  %v2909_v21 = vmul.f32 %v3203_v56, %v2908_v49  ;;  %v2890_v56 = vand.u32 2147483648, %v4971_v30  ;;  %v3082_v31 = vperm.slane %v3048_v43, %v5013_v58 }
 0x3d3   :  { %3206 = vrsqrt.f32 %v4978_v52  ;;  %vm2935_vm3 = vcmp.eq.f32.partialorder %v4978_v52, inf  ;;  %vm2937_vm4 = vcmp.eq.f32.partialorder %v4978_v52, 0.0 }
 0x3d4   :  { %v2918_v26 = vmul.f32 %v4992_v37, %v2917_v0  ;;  %v2910_v17 = vmul.f32 %v2909_v21, %v4976_v38  ;;  %v2891_v7 = vsel %vm2889_vm8, %v2890_v56, %v2888_v51 }
 0x3d5   :  { %v3050_v25 = vsub.f32 0.0, %v2891_v7 }
 0x3d6   :  { %v2919_v8 = vmul.f32 0.5, %v2918_v26  ;;  %v2912_v47 = vsel %vm2911_vm13, %v4976_v38, %v2910_v17  ;;  %vm3106_vm13 = vcmask 1045509  }
 0x3d7   :  { %v2915_v26 = vsel %vm2913_vm14, %v2914_v23, %v2912_v47 }
 0x3d8   :  { %v2920_v41 = vsub.f32 1.5, %v2919_v8  ;;  %v3084_v8 = vperm.slane %v3050_v25, %v5013_v58  ;;  %v3052_v63 = vsub.f32 0.0, %v2915_v26 }
 0x3d9   :  { %v5000_v15 = vpop.eup %3206 }
 0x3da   :  { %v2929_v24 = vmul.f32 %v5000_v15, %v4978_v52  ;;  %v2921_v40 = vmul.f32 %v4992_v37, %v2920_v41  ;;  %v2902_v37 = vand.u32 2147483648, %v4969_v60  ;;  %v3083_v60 = vperm.slane %v3049_v53, %v5013_v58 }
 0x3db   :  { %v3086_v51 = vperm.slane %v3052_v63, %v5013_v58 }
 0x3dc   :  { %v2930_v48 = vmul.f32 %v5000_v15, %v2929_v24  ;;  %v2922_v35 = vmul.f32 %v2921_v40, %v4982_v42  ;;  %v2903_v12 = vsel %vm2901_vm11, %v2902_v37, %v2900_v55  ;;  %v3099_v41 = vsel %vm3098_vm9, %v3083_v60, %v3082_v31 }
 0x3dd   :  { %v3051_v24 = vsub.f32 0.0, %v2903_v12  ;;  %v3101_v61 = vsel %vm3100_vm12, %v3084_v8, %v3099_v41 }
 0x3de   :  { %v2931_v39 = vmul.f32 0.5, %v2930_v48  ;;  %v2924_v38 = vsel %vm2923_vm15, %v4982_v42, %v2922_v35 }
 0x3df   :  { %v3085_v20 = vperm.slane %v3051_v24, %v5013_v58 }
 0x3e0   :  { %v2932_v30 = vsub.f32 1.5, %v2931_v39  ;;  %v2938_v39 = vand.u32 2147483648, %v4978_v52 }
 0x3e2   :  { %v4988_v27 = vpop.xlane.xlu2 %2833  ;;  %v2933_v34 = vmul.f32 %v5000_v15, %v2932_v30  ;;  %v2926_v15 = vand.u32 2147483648, %v4982_v42 }
 0x3e3   :  { %3208 = vrsqrt.f32 %v4988_v27  ;;  %vm2959_vm5 = vcmp.eq.f32.partialorder %v4988_v27, inf  ;;  %vm2961_vm6 = vcmp.eq.f32.partialorder %v4988_v27, 0.0  ;;  %v2962_v53 = vand.u32 2147483648, %v4988_v27 }
 0x3e4   :  { %v2934_v50 = vmul.f32 %v2933_v34, %v4978_v52  ;;  %v2927_v48 = vsel %vm2925_vm1, %v2926_v15, %v2924_v38 }
 0x3e5   :  { %v3053_v28 = vsub.f32 0.0, %v2927_v48 }
 0x3e7   :  { %v5113_v30 = vperm.slane %v3053_v28, %v5013_v58 }
 0x3e9   :  { %v5009_v3 = vpop.eup %3208 }
 0x3ea   :  { %v4997_v57 = vpop.xlane.xlu2 %2836  ;;  %v2953_v5 = vmul.f32 %v5009_v3, %v4988_v27 }
 0x3eb   :  { %3210 = vrsqrt.f32 %v4997_v57  ;;  %vm2971_vm7 = vcmp.eq.f32.partialorder %v4997_v57, inf  ;;  %vm2973_vm8 = vcmp.eq.f32.partialorder %v4997_v57, 0.0  ;;  %v2974_v12 = vand.u32 2147483648, %v4997_v57 }
 0x3ec   :  { %v2954_v54 = vmul.f32 %v5009_v3, %v2953_v5 }
 0x3ee   :  { %v2955_v13 = vmul.f32 0.5, %v2954_v54 }
 0x3f0   :  { %v2956_v45 = vsub.f32 1.5, %v2955_v13 }
 0x3f1   :  { %v5017_v9 = vpop.eup %3210 }
 0x3f2   :  { %v5002_v44 = vpop.xlane.xlu1 %2839  ;;  %v2965_v46 = vmul.f32 %v5017_v9, %v4997_v57  ;;  %v2957_v21 = vmul.f32 %v5009_v3, %v2956_v45  ;;  %v2936_v3 = vsel %vm2935_vm3, %v4978_v52, %v2934_v50  ;;  %vm3108_vm3 = vcmask 1046534  }
 0x3f3   :  { %3212 = vrsqrt.f32 %v5002_v44  ;;  %vm2983_vm10 = vcmp.eq.f32.partialorder %v5002_v44, inf  ;;  %vm2985_vm11 = vcmp.eq.f32.partialorder %v5002_v44, 0.0 }
 0x3f4   :  { %v2966_v36 = vmul.f32 %v5017_v9, %v2965_v46  ;;  %v2958_v1 = vmul.f32 %v2957_v21, %v4988_v27 }
 0x3f6   :  { %v2967_v6 = vmul.f32 0.5, %v2966_v36  ;;  %v2960_v47 = vsel %vm2959_vm5, %v4988_v27, %v2958_v1  ;;  %v2986_v27 = vand.u32 2147483648, %v5002_v44 }
 0x3f7   :  { %v5125_v43 = vsel %vm2961_vm6, %v2962_v53, %v2960_v47 }
 0x3f8   :  { %v2968_v16 = vsub.f32 1.5, %v2967_v6 }
 0x3f9   :  { %v5026_v18 = vpop.eup %3212 }
 0x3fa   :  { %v5011_v14 = vpop.xlane.xlu0 %2842  ;;  %v2977_v4 = vmul.f32 %v5026_v18, %v5002_v44  ;;  %v2969_v42 = vmul.f32 %v5017_v9, %v2968_v16  ;;  %v3103_v9 = vsel %vm3102_vm0, %v3085_v20, %v3101_v61 }
 0x3fb   :  { %3214 = vrsqrt.f32 %v5011_v14  ;;  %v5108_v7 = vsel %vm3104_vm2, %v3086_v51, %v3103_v9  ;;  %vm2995_vm14 = vcmp.eq.f32.partialorder %v5011_v14, inf  ;;  %vm2997_vm15 = vcmp.eq.f32.partialorder %v5011_v14, 0.0 }
 0x3fc   :  { %v2978_v10 = vmul.f32 %v5026_v18, %v2977_v4  ;;  %v2970_v55 = vmul.f32 %v2969_v42, %v4997_v57  ;;  %v2998_v16 = vand.u32 2147483648, %v5011_v14 }
 0x3fe   :  { %v2979_v59 = vmul.f32 0.5, %v2978_v10  ;;  %v2972_v25 = vsel %vm2971_vm7, %v4997_v57, %v2970_v55 }
 0x3ff   :  { %v2975_v57 = vsel %vm2973_vm8, %v2974_v12, %v2972_v25 }
 0x400   :  { %v2980_v5 = vsub.f32 1.5, %v2979_v59  ;;  %v3057_v15 = vsub.f32 0.0, %v2975_v57 }
 0x401   :  { %v5051_v11 = vpop.eup %3214 }
 0x402   :  { %v5039_v62 = vpop.xlane.xlu2 %2845  ;;  %v2989_v0 = vmul.f32 %v5051_v11, %v5011_v14  ;;  %v2981_v56 = vmul.f32 %v5026_v18, %v2980_v5  ;;  %v2939_v18 = vsel %vm2937_vm4, %v2938_v39, %v2936_v3 }
 0x403   :  { %3216 = vrsqrt.f32 %v5039_v62  ;;  %vm3007_vm1 = vcmp.eq.f32.partialorder %v5039_v62, inf  ;;  %vm3009_vm4 = vcmp.eq.f32.partialorder %v5039_v62, 0.0  ;;  %v3010_v41 = vand.u32 2147483648, %v5039_v62 }
 0x404   :  { %v2990_v49 = vmul.f32 %v5051_v11, %v2989_v0  ;;  %v2982_v13 = vmul.f32 %v2981_v56, %v5002_v44  ;;  %v3054_v0 = vsub.f32 0.0, %v2939_v18 }
 0x406   :  { %v2991_v2 = vmul.f32 0.5, %v2990_v49  ;;  %v3088_v38 = vperm.slane %v3054_v0, %v5013_v58  ;;  %v3056_v49 = vsub.f32 0.0, %v5125_v43 }
 0x408   :  { %v2992_v19 = vsub.f32 1.5, %v2991_v2  ;;  %v3090_v25 = vperm.slane %v3056_v49, %v5013_v58 }
 0x409   :  { %v5067_v32 = vpop.eup %3216 }
 0x40a   :  { %v5074_v29 = vpop.xlane.xlu1 %2848  ;;  %v3001_v33 = vmul.f32 %v5067_v32, %v5039_v62  ;;  %v2993_v52 = vmul.f32 %v5051_v11, %v2992_v19  ;;  %v2984_v11 = vsel %vm2983_vm10, %v5002_v44, %v2982_v13 }
 0x40b   :  { %3218 = vrsqrt.f32 %v5074_v29  ;;  %v2987_v63 = vsel %vm2985_vm11, %v2986_v27, %v2984_v11  ;;  %vm3019_vm5 = vcmp.eq.f32.partialorder %v5074_v29, inf  ;;  %vm3021_vm6 = vcmp.eq.f32.partialorder %v5074_v29, 0.0 }
 0x40c   :  { %v3002_v22 = vmul.f32 %v5067_v32, %v3001_v33  ;;  %v2994_v33 = vmul.f32 %v2993_v52, %v5011_v14  ;;  %v3022_v42 = vand.u32 2147483648, %v5074_v29 }
 0x40e   :  { %v3003_v40 = vmul.f32 0.5, %v3002_v22  ;;  %v2996_v48 = vsel %vm2995_vm14, %v5011_v14, %v2994_v33  ;;  %v3058_v22 = vsub.f32 0.0, %v2987_v63  ;;  %vm3110_vm14 = vcmask 1047559  }
 0x40f   :  { %v2999_v61 = vsel %vm2997_vm15, %v2998_v16, %v2996_v48  ;;  %vm3121_vm15 = vcmask 64512  }
 0x410   :  { %v3004_v10 = vsub.f32 1.5, %v3003_v40 }
 0x411   :  { %v3219_v46 = vpop.eup %3218 }
 0x412   :  { %v3013_v17 = vmul.f32 %v3219_v46, %v5074_v29  ;;  %v5098_v54 = vpop.xlane.xlu1 %2830  ;;  %v5100_v4 = vpop.xlane.xlu0 %2851  ;;  %v3005_v45 = vmul.f32 %v5067_v32, %v3004_v10 }
 0x413   :  { %3220 = vrsqrt.f32 %v5098_v54  ;;  %vm2947_vm7 = vcmp.eq.f32.partialorder %v5098_v54, inf  ;;  %vm2949_vm8 = vcmp.eq.f32.partialorder %v5098_v54, 0.0  ;;  %v2950_v1 = vand.u32 2147483648, %v5098_v54 }
 0x414   :  { %v3014_v36 = vmul.f32 %v3219_v46, %v3013_v17  ;;  %3222 = vrsqrt.f32 %v5100_v4  ;;  %v3006_v31 = vmul.f32 %v3005_v45, %v5039_v62  ;;  %vm3031_vm10 = vcmp.eq.f32.partialorder %v5100_v4, inf }
 0x415   :  { %v3034_v9 = vand.u32 2147483648, %v5100_v4  ;;  %vm3033_vm11 = vcmp.eq.f32.partialorder %v5100_v4, 0.0 }
 0x416   :  { %v3015_v37 = vmul.f32 0.5, %v3014_v36  ;;  %v3008_v51 = vsel %vm3007_vm1, %v5039_v62, %v3006_v31  ;;  %v3107_v62 = vsel %vm3106_vm13, %v5113_v30, %v5108_v7 }
 0x417   :  { %v3011_v14 = vsel %vm3009_vm4, %v3010_v41, %v3008_v51 }
 0x418   :  { %v3016_v23 = vsub.f32 1.5, %v3015_v37  ;;  %v3059_v37 = vsub.f32 0.0, %v2999_v61  ;;  %v3060_v53 = vsub.f32 0.0, %v3011_v14 }
 0x419   :  { %v3221_v35 = vpop.eup %3220 }
 0x41a   :  { %v3223_v6 = vpop.eup %3222  ;;  %v2941_v26 = vmul.f32 %v3221_v35, %v5098_v54  ;;  %v5130_v34 = vpop.xlane.xlu2 %2854  ;;  %v3017_v60 = vmul.f32 %v3219_v46, %v3016_v23  ;;  %v3093_v12 = vperm.slane %v3059_v37, %v5013_v58 }
 0x41b   :  { %v3025_v59 = vmul.f32 %v3223_v6, %v5100_v4  ;;  %3224 = vrsqrt.f32 %v5130_v34  ;;  %vm3043_vm1 = vcmp.eq.f32.partialorder %v5130_v34, inf  ;;  %v3046_v43 = vand.u32 2147483648, %v5130_v34 }
 0x41c   :  { %v2942_v24 = vmul.f32 %v3221_v35, %v2941_v26  ;;  %v3018_v44 = vmul.f32 %v3017_v60, %v5074_v29  ;;  %vm3045_vm4 = vcmp.eq.f32.partialorder %v5130_v34, 0.0 }
 0x41d   :  { %v3026_v8 = vmul.f32 %v3223_v6, %v3025_v59 }
 0x41e   :  { %v2943_v32 = vmul.f32 0.5, %v2942_v24  ;;  %v3020_v3 = vsel %vm3019_vm5, %v5074_v29, %v3018_v44 }
 0x41f   :  { %v3027_v50 = vmul.f32 0.5, %v3026_v8  ;;  %v3023_v36 = vsel %vm3021_vm6, %v3022_v42, %v3020_v3 }
 0x420   :  { %v2944_v21 = vsub.f32 1.5, %v2943_v32  ;;  %v3061_v52 = vsub.f32 0.0, %v3023_v36 }
 0x421   :  { %v3225_v5 = vpop.eup %3224  ;;  %v3028_v20 = vsub.f32 1.5, %v3027_v50 }
 0x422   :  { %v2945_v2 = vmul.f32 %v3221_v35, %v2944_v21  ;;  %v3037_v46 = vmul.f32 %v3225_v5, %v5130_v34  ;;  %v3092_v35 = vperm.slane %v3058_v22, %v5013_v58  ;;  %v3095_v26 = vperm.slane %v3061_v52, %v5013_v58 }
 0x423   :  { %v3029_v28 = vmul.f32 %v3223_v6, %v3028_v20  ;;  %v3094_v6 = vperm.slane %v3060_v53, %v5013_v58 }
 0x424   :  { %v2946_v39 = vmul.f32 %v2945_v2, %v5098_v54  ;;  %v3038_v17 = vmul.f32 %v3225_v5, %v3037_v46 }
 0x425   :  { %v3030_v56 = vmul.f32 %v3029_v28, %v5100_v4 }
 0x426   :  { %v2948_v40 = vsel %vm2947_vm7, %v5098_v54, %v2946_v39  ;;  %v3039_v19 = vmul.f32 0.5, %v3038_v17  ;;  %v3091_v54 = vperm.slane %v3057_v15, %v5013_v58 }
 0x427   :  { %v2951_v55 = vsel %vm2949_vm8, %v2950_v1, %v2948_v40  ;;  %v3032_v18 = vsel %vm3031_vm10, %v5100_v4, %v3030_v56  ;;  %v3109_v4 = vsel %vm3108_vm3, %v3088_v38, %v3107_v62 }
 0x428   :  { %v3055_v47 = vsub.f32 0.0, %v2951_v55  ;;  %v3035_v13 = vsel %vm3033_vm11, %v3034_v9, %v3032_v18  ;;  %v3040_v10 = vsub.f32 1.5, %v3039_v19  ;;  %v3112_v27 = vsel %vm3098_vm9, %v3091_v54, %v3090_v25 }
 0x429   :  { %v3062_v0 = vsub.f32 0.0, %v3035_v13  ;;  %v3113_v45 = vsel %vm3100_vm12, %v3092_v35, %v3112_v27 }
 0x42a   :  { %v3089_v29 = vperm.slane %v3055_v47, %v5013_v58  ;;  %v3041_v23 = vmul.f32 %v3225_v5, %v3040_v10  ;;  %v3114_v33 = vsel %vm3102_vm0, %v3093_v12, %v3113_v45 }
 0x42b   :  { %v3096_v59 = vperm.slane %v3062_v0, %v5013_v58  ;;  %v3115_v24 = vsel %vm3104_vm2, %v3094_v6, %v3114_v33 }
 0x42c   :  { %v3111_v7 = vsel %vm3110_vm14, %v3089_v29, %v3109_v4  ;;  %v3042_v30 = vmul.f32 %v3041_v23, %v5130_v34  ;;  %v3116_v38 = vsel %vm3106_vm13, %v3095_v26, %v3115_v24 }
 0x42d   :  { %3122 = vst.msk [vmem:[%s5217_s12] sm:$0xff] %vm3121_vm15, %v3111_v7  ;;  %v3117_v8 = vsel %vm3108_vm3, %v3096_v59, %v3116_v38 }
 0x42e   :  { %v3044_v11 = vsel %vm3043_vm1, %v5130_v34, %v3042_v30 }
 0x42f   :  { %v3047_v57 = vsel %vm3045_vm4, %v3046_v43, %v3044_v11 }
 0x430   :  { %v3063_v60 = vsub.f32 0.0, %v3047_v57 }
 0x432   :  { %v3097_v49 = vperm.slane %v3063_v60, %v5013_v58 }
 0x434   :  { %v3118_v63 = vsel %vm3110_vm14, %v3097_v49, %v3117_v8 }
 0x435   :  { %3123 = vst.msk [vmem:[%s5217_s12 + $0x8] sm:$0xff] %vm3121_vm15, %v3118_v63 }
 0x436   :  { %3128 = vsyncpa [#allocation4], 1 }
 0x437   :  { %3129 = vsyncpa [#allocation6], 1 }
 0x438   :  { %3130 = vsyncpa [#allocation9], 1 }

</bundles_post_ra>
